<compile_context>
chip_gen: v5e
topology: v5e:2x2
jax: 0.10.0
libtpu: 0.0.40
codegen_flags: <defaults>
</compile_context>

<pallas_src>
import functools
import math

import jax
import jax.numpy as jnp
import numpy as np
from jax.experimental import pallas as pl
from jax.experimental.pallas import tpu as pltpu


# --------------------------------- kernel ----------------------------------------

def fused_encoder_kernel(x_ref, wq_ref, wkv_ref, wo_ref, w1_ref, w2_ref,
                         dvec_ref, fvec_ref, out_ref,
                         *, num_heads, ensemble_size, matmul_dtype):
    layer = pl.program_id(1)

    H, E = num_heads, ensemble_size
    G, S, D = x_ref.shape            # G = Nb * E   (batch-block * ensemble rows)
    F = w1_ref.shape[2]
    Nb = G // E
    hd = D // H
    M = G * S                        # GEMM rows: batch * ensemble * sequence
    B = H * G                        # attention batch: (head, batch, ensemble)
    scale = 1.0 / math.sqrt(hd)
    # exact reciprocal only on the f32 verification path; bf16 path uses EUP vrcp
    use_approx_recip = jnp.dtype(matmul_dtype) != jnp.dtype(jnp.float32)

    # Layer 0 copies the input block into the output block; the output block index is
    # constant along the layer axis, so the activation stays resident in VMEM across
    # all L layers (fused-layer accumulator pattern).  x_ref itself is only DMA'd when
    # the batch-block index changes (its index_map does not depend on the layer axis).
    @pl.when(layer == 0)
    def _():
        out_ref[...] = x_ref[...]

    x_gsd = out_ref[...]                                   # (G, S, D) f32
    x_md = x_gsd.reshape(M, D)                             # rows ordered (n, e, s)

    # ---- per-layer parameters (lane-dense packed slabs, streamed by BlockSpec) ----
    wq = wq_ref[0]                                         # (D, D)    Wq^T   (matmul dtype)
    wkv = wkv_ref[0]                                       # (D, 2D)   [Wk^T | Wv^T]
    wo = wo_ref[0]                                         # (D, D)    Wo^T
    w1 = w1_ref[0]                                         # (D, F)    W1^T
    w2 = w2_ref[0]                                         # (F, D)    W2^T

    dvec = dvec_ref[0]                                     # (2E + 9, D) f32
    rq = dvec[:E]                                          # (E, D)  ensemble 'r' scaler
    sq = dvec[E:2 * E]                                     # (E, D)  ensemble 's' scaler
    bq = dvec[2 * E]                                       # (D,)
    bk = dvec[2 * E + 1]
    bv = dvec[2 * E + 2]
    bo = dvec[2 * E + 3]
    g1, be1 = dvec[2 * E + 4], dvec[2 * E + 5]
    b2 = dvec[2 * E + 6]
    g2, be2 = dvec[2 * E + 7], dvec[2 * E + 8]
    b1 = fvec_ref[0, 0]                                    # (F,)

    def mm(a, w):                                          # full-width 2-D MXU GEMM
        return jnp.dot(a.astype(matmul_dtype), w,
                       preferred_element_type=jnp.float32)

    def layer_norm(t, g, b):
        mu = jnp.mean(t, axis=-1, keepdims=True)
        var = jnp.mean(jnp.square(t - mu), axis=-1, keepdims=True)
        return (t - mu) * jax.lax.rsqrt(var + 1e-5) * g + b

    # ---- projections: full-width (M, D) GEMMs (MXU N dim = D / 2D, not hd) ----
    # BatchEnsemble on the query projection only: q = ((x * r) @ Wq^T) * s + bq
    q_in = (x_gsd.reshape(Nb, E, S, D) * rq[None, :, None, :]).reshape(M, D)
    q_md = mm(q_in, wq)                                    # (M, D)
    q_md = (q_md.reshape(Nb, E, S, D) * sq[None, :, None, :] + bq).reshape(M, D)

    kv = mm(x_md, wkv)                                     # (M, 2D)
    k_md = kv[:, :D] + bk                                  # (M, D)
    v_md = kv[:, D:] + bv                                  # (M, D)

    # ---- split heads: static lane slices + leading-dim concat -> (B, S, hd) ----
    def split_heads(t_md):
        return jnp.concatenate(
            [t_md[:, h * hd:(h + 1) * hd].reshape(G, S, hd) for h in range(H)],
            axis=0)                                        # batch order (h, n, e)

    q = split_heads(q_md)
    k = split_heads(k_md)
    v = split_heads(v_md)

    # ---- attention: single batched dot_generals over B = H*Nb*E ----
    scores = jax.lax.dot_general(
        q.astype(matmul_dtype), k.astype(matmul_dtype),
        (((2,), (2,)), ((0,), (0,))),
        preferred_element_type=jnp.float32) * scale        # (B, S, S)
    scores = scores - jnp.max(scores, axis=-1, keepdims=True)
    p = jnp.exp(scores)
    attn = p * pl.reciprocal(jnp.sum(p, axis=-1, keepdims=True),
                             approx=use_approx_recip)
    ctx = jax.lax.dot_general(
        attn.astype(matmul_dtype), v.astype(matmul_dtype),
        (((2,), (1,)), ((0,), (0,))),
        preferred_element_type=jnp.float32)                # (B, S, hd)

    # ---- merge heads back to (M, H*hd) lanes, one output-projection GEMM ----
    ctx_h = ctx.reshape(H, G, S, hd)
    ctx_md = jnp.concatenate([ctx_h[h].reshape(M, hd) for h in range(H)], axis=-1)
    attn_out = mm(ctx_md, wo) + bo                         # (M, D)

    # residual + LayerNorm1 (dropout == identity)
    x1 = layer_norm(x_md + attn_out, g1, be1)

    # ---- shared feed-forward network: plain 2-D GEMMs over all M rows ----
    h1 = jnp.maximum(mm(x1, w1) + b1, 0.0)                 # (M, F)
    y = mm(h1, w2) + b2                                    # (M, D)

    # residual + LayerNorm2
    x2 = layer_norm(x1 + y, g2, be2)

    out_ref[...] = x2.reshape(G, S, D)


# ------------------------------ parameter packing ---------------------------------

def pack_fused_params(layer_params, matmul_dtype):
    """Stack per-layer params with a leading L axis; pre-transpose weights to (in, out)
    and cast them to the MXU dtype; pack the small D/F-wide vectors into f32 slabs."""
    wqs, wkvs, wos, w1s, w2s, dvecs, fvecs = [], [], [], [], [], [], []
    for p in layer_params:
        wqs.append(jnp.transpose(p['wq']))                                # (D, D)
        wkvs.append(jnp.concatenate([jnp.transpose(p['wk']),
                                     jnp.transpose(p['wv'])], axis=1))    # (D, 2D)
        wos.append(jnp.transpose(p['wo']))                                # (D, D)
        w1s.append(jnp.transpose(p['w1']))                                # (D, F)
        w2s.append(jnp.transpose(p['w2']))                                # (F, D)
        dvecs.append(jnp.concatenate(
            [p['rq'], p['sq'], p['bq'], p['bk'], p['bv'], p['bo'],
             p['g1'], p['be1'], p['b2'], p['g2'], p['be2']], axis=0))     # (2E+9, D)
        fvecs.append(p['b1'])                                             # (1, F)
    md = matmul_dtype
    return dict(wq=jnp.stack(wqs).astype(md),
                wkv=jnp.stack(wkvs).astype(md),
                wo=jnp.stack(wos).astype(md),
                w1=jnp.stack(w1s).astype(md),
                w2=jnp.stack(w2s).astype(md),
                dvec=jnp.stack(dvecs).astype(jnp.float32),
                fvec=jnp.stack(fvecs).astype(jnp.float32))


# ----------------------- block-batch / VMEM budget picking ------------------------

def _min_parallel_blocks():
    """v7x has 2 TensorCores per chip that the 'parallel' grid axis shards over."""
    try:
        kind = jax.devices()[0].device_kind.lower()
        if 'v7' in kind or '7x' in kind:
            return 2
    except Exception:
        pass
    return 1


def _vmem_estimate_bytes(Nb, S, D, F, H, E, per_layer_weight_bytes):
    G = Nb * E
    M = G * S
    B = H * G
    act = 2 * 2 * G * S * D * 4                         # x block + out block (double-buffered)
    inter = (4 * M * D + B * S * S + M * F) * 4         # q/k/v/ctx + scores + FFN hidden (f32)
    return act + inter + 2 * per_layer_weight_bytes     # weights double-buffered


def _pick_block_batch(N, S, D, F, H, E, per_layer_weight_bytes,
                      requested=None, min_parallel=1,
                      vmem_budget=40 * 1024 * 1024):
    """Largest batch block that fits the VMEM budget (maximize on single-TC v5e/v6e so
    each layer's weights stream once) while keeping >= min_parallel parallel grid steps
    (v7x: keep both TensorCores busy)."""
    if requested is not None:
        if N % requested:
            raise ValueError('block_batch must divide the batch size')
        return requested
    max_nb = N // min_parallel if N >= min_parallel else N
    max_nb = max(1, max_nb)
    best = 1
    for nb in range(1, max_nb + 1):
        if N % nb:
            continue
        if _vmem_estimate_bytes(nb, S, D, F, H, E, per_layer_weight_bytes) <= vmem_budget:
            best = nb
    return best


# ---------------------------------- wrapper ---------------------------------------

def batch_ensemble_transformer_encoder(x, layer_params, ensemble_size, num_heads,
                                       block_batch=None, matmul_dtype=jnp.bfloat16):
    """x: (N, S, D) or (N, S, E, D)  ->  (N, S, E, D)  (PyTorch layout)."""
    x = x.astype(jnp.float32)
    E = ensemble_size
    if x.ndim == 3:
        N, S, D = x.shape
        x = jnp.broadcast_to(x[:, :, None, :], (N, S, E, D))
    elif x.ndim == 4 and x.shape[2] == E:
        N, S, _, D = x.shape
    else:
        raise ValueError(f'Invalid input shape {x.shape}')

    L = len(layer_params)
    H = num_heads
    F = layer_params[0]['w1'].shape[0]

    itemsize = jnp.dtype(matmul_dtype).itemsize
    per_layer_weight_bytes = ((D * D) + (D * 2 * D) + (D * D) + (D * F) + (F * D)) * itemsize \
        + ((2 * E + 9) * D + F) * 4

    min_parallel = _min_parallel_blocks() if block_batch is None else 1
    Nb = _pick_block_batch(N, S, D, F, H, E, per_layer_weight_bytes,
                           requested=block_batch, min_parallel=min_parallel)
    G = Nb * E

    est = _vmem_estimate_bytes(Nb, S, D, F, H, E, per_layer_weight_bytes)
    vmem_limit = None
    if est > 16 * 1024 * 1024:                       # only raise when actually needed
        vmem_limit = min(2 * est, 56 * 1024 * 1024)  # stays under v7x's 64 MiB physical

    packed = pack_fused_params(layer_params, matmul_dtype)

    # kernel layout: ensemble-major rows, (N*E, S, D) -- XLA-side layout plumbing.
    x_kernel = jnp.transpose(x, (0, 2, 1, 3)).reshape(N * E, S, D)

    kernel = functools.partial(fused_encoder_kernel, num_heads=H,
                               ensemble_size=E, matmul_dtype=matmul_dtype)

    out = pl.pallas_call(
        kernel,
        out_shape=jax.ShapeDtypeStruct((N * E, S, D), jnp.float32),
        grid=(N // Nb, L),
        in_specs=[
            pl.BlockSpec((G, S, D), lambda n, l: (n, 0, 0)),              # activation (layer 0 only)
            pl.BlockSpec((1, D, D), lambda n, l: (l, 0, 0)),              # Wq^T
            pl.BlockSpec((1, D, 2 * D), lambda n, l: (l, 0, 0)),          # [Wk^T | Wv^T]
            pl.BlockSpec((1, D, D), lambda n, l: (l, 0, 0)),              # Wo^T
            pl.BlockSpec((1, D, F), lambda n, l: (l, 0, 0)),              # W1^T
            pl.BlockSpec((1, F, D), lambda n, l: (l, 0, 0)),              # W2^T
            pl.BlockSpec((1, 2 * E + 9, D), lambda n, l: (l, 0, 0)),      # rq/sq/biases/LN slab
            pl.BlockSpec((1, 1, F), lambda n, l: (l, 0, 0)),              # b1
        ],
        out_specs=pl.BlockSpec((G, S, D), lambda n, l: (n, 0, 0)),
        compiler_params=pltpu.CompilerParams(
            dimension_semantics=("parallel", "arbitrary"),
            vmem_limit_bytes=vmem_limit),
    )(x_kernel, packed['wq'], packed['wkv'], packed['wo'], packed['w1'],
      packed['w2'], packed['dvec'], packed['fvec'])

    out = out.reshape(N, E, S, D)
    return jnp.transpose(out, (0, 2, 1, 3))                # back to (N, S, E, D)


# ------------------------- deterministic parameter init ---------------------------

def init_layer_params(key, D, F, E, scaling_init):
    ks = jax.random.split(key, 16)

    def lin_w(k, out_f, in_f):
        return jax.random.normal(k, (out_f, in_f), jnp.float32) / math.sqrt(in_f)

    def lin_b(k, out_f):
        return 0.01 * jax.random.normal(k, (1, out_f), jnp.float32)

    p = {}
    if scaling_init == 'normal':           # first encoder layer uses 'normal'
        p['rq'] = 1.0 + 0.1 * jax.random.normal(ks[0], (E, D), jnp.float32)
        p['sq'] = 1.0 + 0.1 * jax.random.normal(ks[1], (E, D), jnp.float32)
    else:                                  # 'ones'
        p['rq'] = jnp.ones((E, D), jnp.float32)
        p['sq'] = jnp.ones((E, D), jnp.float32)
    p['wq'], p['bq'] = lin_w(ks[2], D, D), lin_b(ks[3], D)
    p['wk'], p['bk'] = lin_w(ks[4], D, D), lin_b(ks[5], D)
    p['wv'], p['bv'] = lin_w(ks[6], D, D), lin_b(ks[7], D)
    p['wo'], p['bo'] = lin_w(ks[8], D, D), lin_b(ks[9], D)
    p['g1'], p['be1'] = jnp.ones((1, D), jnp.float32), jnp.zeros((1, D), jnp.float32)
    p['w1'], p['b1'] = lin_w(ks[10], F, D), lin_b(ks[11], F)
    p['w2'], p['b2'] = lin_w(ks[12], D, F), lin_b(ks[13], D)
    p['g2'], p['be2'] = jnp.ones((1, D), jnp.float32), jnp.zeros((1, D), jnp.float32)
    return p


# ----------------------------- pure-JAX reference ---------------------------------

def _layer_norm(x, g, b):
    mu = jnp.mean(x, axis=-1, keepdims=True)
    var = jnp.mean((x - mu) ** 2, axis=-1, keepdims=True)
    return (x - mu) * jax.lax.rsqrt(var + 1e-5) * g + b


def reference_layer(x, p, num_heads):
    # x: (N, S, E, D)
    N, S, E, D = x.shape
    hd = D // num_heads
    q = jnp.einsum('nsed,od->nseo', x * p['rq'], p['wq']) * p['sq'] + p['bq'][0]
    k = jnp.einsum('nsed,od->nseo', x, p['wk']) + p['bk'][0]
    v = jnp.einsum('nsed,od->nseo', x, p['wv']) + p['bv'][0]
    qh = q.reshape(N, S, E, num_heads, hd)
    kh = k.reshape(N, S, E, num_heads, hd)
    vh = v.reshape(N, S, E, num_heads, hd)
    scores = jnp.einsum('nqehd,nkehd->nehqk', qh, kh) / math.sqrt(hd)
    attn = jax.nn.softmax(scores, axis=-1)
    ctx = jnp.einsum('nehqk,nkehd->nqehd', attn, vh).reshape(N, S, E, D)
    attn_out = jnp.einsum('nsed,od->nseo', ctx, p['wo']) + p['bo'][0]
    x = _layer_norm(x + attn_out, p['g1'][0], p['be1'][0])
    h = jax.nn.relu(jnp.einsum('nsed,fd->nsef', x, p['w1']) + p['b1'][0])
    y = jnp.einsum('nsef,of->nseo', h, p['w2']) + p['b2'][0]
    return _layer_norm(x + y, p['g2'][0], p['be2'][0])


# ------------------------------------ main -----------------------------------------

if __name__ == "__main__":
    # small config: d_model=32, n_heads=4, dim_feedforward=64, ensemble_size=4,
    # n_layers=2, batch=2, seq=8
    B, S, D, H, E, F, L = 2, 8, 32, 4, 4, 64, 2

    key = jax.random.PRNGKey(0)
    kx, kp = jax.random.split(key)
    x = jax.random.normal(kx, (B, S, D), jnp.float32)     # 3-D path -> ensemble expand

    layer_keys = jax.random.split(kp, L)
    layer_params = [
        init_layer_params(layer_keys[i], D, F, E, 'normal' if i == 0 else 'ones')
        for i in range(L)
    ]

    # pure-JAX reference of the same math
    ref = jnp.broadcast_to(x[:, :, None, :], (B, S, E, D))
    for p in layer_params:
        ref = reference_layer(ref, p, H)
    ref = np.asarray(jax.block_until_ready(ref))

    # f32 MXU path (exact softmax reciprocal) -- structural correctness check
    out_f32 = batch_ensemble_transformer_encoder(x, layer_params, E, H,
                                                 matmul_dtype=jnp.float32)
    out_f32 = jax.block_until_ready(out_f32)
    assert out_f32.shape == (B, S, E, D), out_f32.shape
    np.testing.assert_allclose(np.asarray(out_f32), ref, rtol=2e-2, atol=2e-2)

    # default bf16 MXU fast path (production config) -- loose numerical check
    out = batch_ensemble_transformer_encoder(x, layer_params, E, H)
    out = jax.block_until_ready(out)
    assert out.shape == (B, S, E, D), out.shape
    assert np.all(np.isfinite(np.asarray(out)))
    np.testing.assert_allclose(np.asarray(out), ref, rtol=1e-1, atol=1e-1)

    print("KERNEL_OK")
</pallas_src>

<mosaic_0001>
module attributes {stable_mosaic.version = 11 : i64} {
  func.func @fused_encoder_kernel(%arg0: i32, %arg1: i32, %arg2: memref<8x8x32xf32, #tpu.memory_space<vmem>>, %arg3: memref<1x32x32xf32, #tpu.memory_space<vmem>>, %arg4: memref<1x32x64xf32, #tpu.memory_space<vmem>>, %arg5: memref<1x32x32xf32, #tpu.memory_space<vmem>>, %arg6: memref<1x32x64xf32, #tpu.memory_space<vmem>>, %arg7: memref<1x64x32xf32, #tpu.memory_space<vmem>>, %arg8: memref<1x17x32xf32, #tpu.memory_space<vmem>>, %arg9: memref<1x1x64xf32, #tpu.memory_space<vmem>>, %arg10: memref<8x8x32xf32, #tpu.memory_space<vmem>>) attributes {dimension_semantics = [#tpu.dimension_semantics<parallel>, #tpu.dimension_semantics<arbitrary>], iteration_bounds = array<i64: 1, 2>, scalar_prefetch = 0 : i64, scratch_operands = 0 : i64, tpu.core_type = #tpu.core_type<tc>, window_params = [{transform_indices = @transform_0, window_bounds = array<i64: 8, 8, 32>}, {transform_indices = @transform_1, window_bounds = array<i64: 1, 32, 32>}, {transform_indices = @transform_2, window_bounds = array<i64: 1, 32, 64>}, {transform_indices = @transform_3, window_bounds = array<i64: 1, 32, 32>}, {transform_indices = @transform_4, window_bounds = array<i64: 1, 32, 64>}, {transform_indices = @transform_5, window_bounds = array<i64: 1, 64, 32>}, {transform_indices = @transform_6, window_bounds = array<i64: 1, 17, 32>}, {transform_indices = @transform_7, window_bounds = array<i64: 1, 1, 64>}, {transform_indices = @transform_8, window_bounds = array<i64: 8, 8, 32>}]} {
    %c0_i32 = arith.constant 0 : i32
    %0 = arith.cmpi eq, %arg1, %c0_i32 : i32
    %1 = arith.extui %0 : i1 to i32
    %c0_i32_0 = arith.constant 0 : i32
    %2 = arith.cmpi ne, %1, %c0_i32_0 : i32
    scf.if %2 {
      %c0_47 = arith.constant 0 : index
      %c0_48 = arith.constant 0 : index
      %c0_49 = arith.constant 0 : index
      %183 = vector.load %arg2[%c0_47, %c0_48, %c0_49] : memref<8x8x32xf32, #tpu.memory_space<vmem>>, vector<8x8x32xf32>
      %c0_50 = arith.constant 0 : index
      %c0_51 = arith.constant 0 : index
      %c0_52 = arith.constant 0 : index
      %184 = vector.load %arg10[%c0_50, %c0_51, %c0_52] : memref<8x8x32xf32, #tpu.memory_space<vmem>>, vector<8x8x32xf32>
      tpu.vector_store %arg10[%c0_50, %c0_51, %c0_52], %183 {strides = array<i32>} : memref<8x8x32xf32, #tpu.memory_space<vmem>>, vector<8x8x32xf32>,
    } else {
    }
    %c0 = arith.constant 0 : index
    %c0_1 = arith.constant 0 : index
    %c0_2 = arith.constant 0 : index
    %3 = vector.load %arg10[%c0, %c0_1, %c0_2] : memref<8x8x32xf32, #tpu.memory_space<vmem>>, vector<8x8x32xf32>
    %4 = vector.shape_cast %3 : vector<8x8x32xf32> to vector<64x32xf32>
    %c0_3 = arith.constant 0 : index
    %c0_4 = arith.constant 0 : index
    %c0_5 = arith.constant 0 : index
    %5 = vector.load %arg3[%c0_3, %c0_4, %c0_5] : memref<1x32x32xf32, #tpu.memory_space<vmem>>, vector<1x32x32xf32>
    %6 = vector.shape_cast %5 : vector<1x32x32xf32> to vector<32x32xf32>
    %c0_6 = arith.constant 0 : index
    %c0_7 = arith.constant 0 : index
    %c0_8 = arith.constant 0 : index
    %7 = vector.load %arg4[%c0_6, %c0_7, %c0_8] : memref<1x32x64xf32, #tpu.memory_space<vmem>>, vector<1x32x64xf32>
    %8 = vector.shape_cast %7 : vector<1x32x64xf32> to vector<32x64xf32>
    %c0_9 = arith.constant 0 : index
    %c0_10 = arith.constant 0 : index
    %c0_11 = arith.constant 0 : index
    %9 = vector.load %arg5[%c0_9, %c0_10, %c0_11] : memref<1x32x32xf32, #tpu.memory_space<vmem>>, vector<1x32x32xf32>
    %10 = vector.shape_cast %9 : vector<1x32x32xf32> to vector<32x32xf32>
    %c0_12 = arith.constant 0 : index
    %c0_13 = arith.constant 0 : index
    %c0_14 = arith.constant 0 : index
    %11 = vector.load %arg6[%c0_12, %c0_13, %c0_14] : memref<1x32x64xf32, #tpu.memory_space<vmem>>, vector<1x32x64xf32>
    %12 = vector.shape_cast %11 : vector<1x32x64xf32> to vector<32x64xf32>
    %c0_15 = arith.constant 0 : index
    %c0_16 = arith.constant 0 : index
    %c0_17 = arith.constant 0 : index
    %13 = vector.load %arg7[%c0_15, %c0_16, %c0_17] : memref<1x64x32xf32, #tpu.memory_space<vmem>>, vector<1x64x32xf32>
    %14 = vector.shape_cast %13 : vector<1x64x32xf32> to vector<64x32xf32>
    %c0_18 = arith.constant 0 : index
    %c0_19 = arith.constant 0 : index
    %c0_20 = arith.constant 0 : index
    %15 = vector.load %arg8[%c0_18, %c0_19, %c0_20] : memref<1x17x32xf32, #tpu.memory_space<vmem>>, vector<1x17x32xf32>
    %16 = vector.shape_cast %15 : vector<1x17x32xf32> to vector<17x32xf32>
    %17 = vector.extract_strided_slice %16 {offsets = [0, 0], sizes = [4, 32], strides = [1, 1]} : vector<17x32xf32> to vector<4x32xf32>
    %18 = vector.extract_strided_slice %16 {offsets = [4, 0], sizes = [4, 32], strides = [1, 1]} : vector<17x32xf32> to vector<4x32xf32>
    %19 = vector.extract_strided_slice %16 {offsets = [8, 0], sizes = [1, 32], strides = [1, 1]} : vector<17x32xf32> to vector<1x32xf32>
    %20 = vector.shape_cast %19 : vector<1x32xf32> to vector<32xf32>
    %21 = vector.extract_strided_slice %16 {offsets = [9, 0], sizes = [1, 32], strides = [1, 1]} : vector<17x32xf32> to vector<1x32xf32>
    %22 = vector.shape_cast %21 : vector<1x32xf32> to vector<32xf32>
    %23 = vector.extract_strided_slice %16 {offsets = [10, 0], sizes = [1, 32], strides = [1, 1]} : vector<17x32xf32> to vector<1x32xf32>
    %24 = vector.shape_cast %23 : vector<1x32xf32> to vector<32xf32>
    %25 = vector.extract_strided_slice %16 {offsets = [11, 0], sizes = [1, 32], strides = [1, 1]} : vector<17x32xf32> to vector<1x32xf32>
    %26 = vector.shape_cast %25 : vector<1x32xf32> to vector<32xf32>
    %27 = vector.extract_strided_slice %16 {offsets = [12, 0], sizes = [1, 32], strides = [1, 1]} : vector<17x32xf32> to vector<1x32xf32>
    %28 = vector.shape_cast %27 : vector<1x32xf32> to vector<32xf32>
    %29 = vector.extract_strided_slice %16 {offsets = [13, 0], sizes = [1, 32], strides = [1, 1]} : vector<17x32xf32> to vector<1x32xf32>
    %30 = vector.shape_cast %29 : vector<1x32xf32> to vector<32xf32>
    %31 = vector.extract_strided_slice %16 {offsets = [14, 0], sizes = [1, 32], strides = [1, 1]} : vector<17x32xf32> to vector<1x32xf32>
    %32 = vector.shape_cast %31 : vector<1x32xf32> to vector<32xf32>
    %33 = vector.extract_strided_slice %16 {offsets = [15, 0], sizes = [1, 32], strides = [1, 1]} : vector<17x32xf32> to vector<1x32xf32>
    %34 = vector.shape_cast %33 : vector<1x32xf32> to vector<32xf32>
    %35 = vector.extract_strided_slice %16 {offsets = [16, 0], sizes = [1, 32], strides = [1, 1]} : vector<17x32xf32> to vector<1x32xf32>
    %36 = vector.shape_cast %35 : vector<1x32xf32> to vector<32xf32>
    %c0_21 = arith.constant 0 : index
    %c0_22 = arith.constant 0 : index
    %c0_23 = arith.constant 0 : index
    %37 = vector.load %arg9[%c0_21, %c0_22, %c0_23] : memref<1x1x64xf32, #tpu.memory_space<vmem>>, vector<1x1x64xf32>
    %38 = vector.shape_cast %37 : vector<1x1x64xf32> to vector<64xf32>
    %39 = vector.shape_cast %3 : vector<8x8x32xf32> to vector<2x4x8x32xf32>
    %40 = vector.shape_cast %17 : vector<4x32xf32> to vector<1x4x1x32xf32>
    %41 = vector.broadcast %40 : vector<1x4x1x32xf32> to vector<2x4x8x32xf32>
    %42 = arith.mulf %39, %41 : vector<2x4x8x32xf32>
    %43 = vector.shape_cast %42 : vector<2x4x8x32xf32> to vector<64x32xf32>
    %cst = arith.constant dense<0.000000e+00> : vector<64x32xf32>
    %44 = tpu.matmul %43, %6, %cst {dimension_numbers = #tpu.dot_dimension_numbers<[1], [0], [0], [1], [0, 0, 1, 1], [], []>} : vector<64x32xf32>, vector<32x32xf32>, vector<64x32xf32> -> vector<64x32xf32>
    %45 = vector.shape_cast %44 : vector<64x32xf32> to vector<2x4x8x32xf32>
    %46 = vector.shape_cast %18 : vector<4x32xf32> to vector<1x4x1x32xf32>
    %47 = vector.broadcast %46 : vector<1x4x1x32xf32> to vector<2x4x8x32xf32>
    %48 = arith.mulf %45, %47 : vector<2x4x8x32xf32>
    %49 = vector.shape_cast %20 : vector<32xf32> to vector<1x1x1x32xf32>
    %50 = vector.broadcast %49 : vector<1x1x1x32xf32> to vector<2x4x8x32xf32>
    %51 = arith.addf %48, %50 : vector<2x4x8x32xf32>
    %52 = vector.shape_cast %51 : vector<2x4x8x32xf32> to vector<64x32xf32>
    %cst_24 = arith.constant dense<0.000000e+00> : vector<64x64xf32>
    %53 = tpu.matmul %4, %8, %cst_24 {dimension_numbers = #tpu.dot_dimension_numbers<[1], [0], [0], [1], [0, 0, 1, 1], [], []>} : vector<64x32xf32>, vector<32x64xf32>, vector<64x64xf32> -> vector<64x64xf32>
    %54 = vector.extract_strided_slice %53 {offsets = [0, 0], sizes = [64, 32], strides = [1, 1]} : vector<64x64xf32> to vector<64x32xf32>
    %55 = vector.shape_cast %22 : vector<32xf32> to vector<1x32xf32>
    %56 = vector.broadcast %55 : vector<1x32xf32> to vector<64x32xf32>
    %57 = arith.addf %54, %56 : vector<64x32xf32>
    %58 = vector.extract_strided_slice %53 {offsets = [0, 32], sizes = [64, 32], strides = [1, 1]} : vector<64x64xf32> to vector<64x32xf32>
    %59 = vector.shape_cast %24 : vector<32xf32> to vector<1x32xf32>
    %60 = vector.broadcast %59 : vector<1x32xf32> to vector<64x32xf32>
    %61 = arith.addf %58, %60 : vector<64x32xf32>
    %62 = vector.extract_strided_slice %52 {offsets = [0, 0], sizes = [64, 8], strides = [1, 1]} : vector<64x32xf32> to vector<64x8xf32>
    %63 = vector.shape_cast %62 : vector<64x8xf32> to vector<8x8x8xf32>
    %64 = vector.extract_strided_slice %52 {offsets = [0, 8], sizes = [64, 8], strides = [1, 1]} : vector<64x32xf32> to vector<64x8xf32>
    %65 = vector.shape_cast %64 : vector<64x8xf32> to vector<8x8x8xf32>
    %66 = vector.extract_strided_slice %52 {offsets = [0, 16], sizes = [64, 8], strides = [1, 1]} : vector<64x32xf32> to vector<64x8xf32>
    %67 = vector.shape_cast %66 : vector<64x8xf32> to vector<8x8x8xf32>
    %68 = vector.extract_strided_slice %52 {offsets = [0, 24], sizes = [64, 8], strides = [1, 1]} : vector<64x32xf32> to vector<64x8xf32>
    %69 = vector.shape_cast %68 : vector<64x8xf32> to vector<8x8x8xf32>
    %70 = tpu.concatenate %63, %65, %67, %69 in 0 : vector<8x8x8xf32>, vector<8x8x8xf32>, vector<8x8x8xf32>, vector<8x8x8xf32> -> vector<32x8x8xf32>
    %71 = vector.extract_strided_slice %57 {offsets = [0, 0], sizes = [64, 8], strides = [1, 1]} : vector<64x32xf32> to vector<64x8xf32>
    %72 = vector.shape_cast %71 : vector<64x8xf32> to vector<8x8x8xf32>
    %73 = vector.extract_strided_slice %57 {offsets = [0, 8], sizes = [64, 8], strides = [1, 1]} : vector<64x32xf32> to vector<64x8xf32>
    %74 = vector.shape_cast %73 : vector<64x8xf32> to vector<8x8x8xf32>
    %75 = vector.extract_strided_slice %57 {offsets = [0, 16], sizes = [64, 8], strides = [1, 1]} : vector<64x32xf32> to vector<64x8xf32>
    %76 = vector.shape_cast %75 : vector<64x8xf32> to vector<8x8x8xf32>
    %77 = vector.extract_strided_slice %57 {offsets = [0, 24], sizes = [64, 8], strides = [1, 1]} : vector<64x32xf32> to vector<64x8xf32>
    %78 = vector.shape_cast %77 : vector<64x8xf32> to vector<8x8x8xf32>
    %79 = tpu.concatenate %72, %74, %76, %78 in 0 : vector<8x8x8xf32>, vector<8x8x8xf32>, vector<8x8x8xf32>, vector<8x8x8xf32> -> vector<32x8x8xf32>
    %80 = vector.extract_strided_slice %61 {offsets = [0, 0], sizes = [64, 8], strides = [1, 1]} : vector<64x32xf32> to vector<64x8xf32>
    %81 = vector.shape_cast %80 : vector<64x8xf32> to vector<8x8x8xf32>
    %82 = vector.extract_strided_slice %61 {offsets = [0, 8], sizes = [64, 8], strides = [1, 1]} : vector<64x32xf32> to vector<64x8xf32>
    %83 = vector.shape_cast %82 : vector<64x8xf32> to vector<8x8x8xf32>
    %84 = vector.extract_strided_slice %61 {offsets = [0, 16], sizes = [64, 8], strides = [1, 1]} : vector<64x32xf32> to vector<64x8xf32>
    %85 = vector.shape_cast %84 : vector<64x8xf32> to vector<8x8x8xf32>
    %86 = vector.extract_strided_slice %61 {offsets = [0, 24], sizes = [64, 8], strides = [1, 1]} : vector<64x32xf32> to vector<64x8xf32>
    %87 = vector.shape_cast %86 : vector<64x8xf32> to vector<8x8x8xf32>
    %88 = tpu.concatenate %81, %83, %85, %87 in 0 : vector<8x8x8xf32>, vector<8x8x8xf32>, vector<8x8x8xf32>, vector<8x8x8xf32> -> vector<32x8x8xf32>
    %cst_25 = arith.constant dense<0.000000e+00> : vector<32x8x8xf32>
    %89 = tpu.matmul %70, %79, %cst_25 {dimension_numbers = #tpu.dot_dimension_numbers<[2], [2], [1], [1], [0, 0, 0, 1, 1, 1], [0], [0]>} : vector<32x8x8xf32>, vector<32x8x8xf32>, vector<32x8x8xf32> -> vector<32x8x8xf32>
    %cst_26 = arith.constant 0.353553385 : f32
    %90 = vector.broadcast %cst_26 : f32 to vector<32x8x8xf32>
    %91 = arith.mulf %89, %90 : vector<32x8x8xf32>
    %cst_27 = arith.constant dense<0xFF800000> : vector<32x8xf32>
    %92 = vector.multi_reduction <maximumf>, %91, %cst_27 [2] : vector<32x8x8xf32> to vector<32x8xf32>
    %93 = vector.shape_cast %92 : vector<32x8xf32> to vector<32x8x1xf32>
    %94 = vector.broadcast %93 : vector<32x8x1xf32> to vector<32x8x8xf32>
    %95 = arith.subf %91, %94 : vector<32x8x8xf32>
    %96 = math.exp %95 : vector<32x8x8xf32>
    %cst_28 = arith.constant dense<0.000000e+00> : vector<32x8xf32>
    %97 = vector.multi_reduction <add>, %96, %cst_28 [2] : vector<32x8x8xf32> to vector<32x8xf32>
    %98 = vector.shape_cast %97 : vector<32x8xf32> to vector<32x8x1xf32>
    %99 = tpu.reciprocal %98 : vector<32x8x1xf32> -> vector<32x8x1xf32>
    %100 = vector.broadcast %99 : vector<32x8x1xf32> to vector<32x8x8xf32>
    %101 = arith.mulf %96, %100 : vector<32x8x8xf32>
    %cst_29 = arith.constant dense<0.000000e+00> : vector<32x8x8xf32>
    %102 = tpu.matmul %101, %88, %cst_29 {dimension_numbers = #tpu.dot_dimension_numbers<[2], [1], [1], [2], [0, 0, 0, 1, 1, 2], [0], [0]>} : vector<32x8x8xf32>, vector<32x8x8xf32>, vector<32x8x8xf32> -> vector<32x8x8xf32>
    %103 = vector.shape_cast %102 : vector<32x8x8xf32> to vector<4x8x8x8xf32>
    %104 = vector.extract_strided_slice %103 {offsets = [0, 0, 0, 0], sizes = [1, 8, 8, 8], strides = [1, 1, 1, 1]} : vector<4x8x8x8xf32> to vector<1x8x8x8xf32>
    %105 = vector.shape_cast %104 : vector<1x8x8x8xf32> to vector<8x8x8xf32>
    %106 = vector.shape_cast %105 : vector<8x8x8xf32> to vector<64x8xf32>
    %107 = vector.extract_strided_slice %103 {offsets = [1, 0, 0, 0], sizes = [1, 8, 8, 8], strides = [1, 1, 1, 1]} : vector<4x8x8x8xf32> to vector<1x8x8x8xf32>
    %108 = vector.shape_cast %107 : vector<1x8x8x8xf32> to vector<8x8x8xf32>
    %109 = vector.shape_cast %108 : vector<8x8x8xf32> to vector<64x8xf32>
    %110 = vector.extract_strided_slice %103 {offsets = [2, 0, 0, 0], sizes = [1, 8, 8, 8], strides = [1, 1, 1, 1]} : vector<4x8x8x8xf32> to vector<1x8x8x8xf32>
    %111 = vector.shape_cast %110 : vector<1x8x8x8xf32> to vector<8x8x8xf32>
    %112 = vector.shape_cast %111 : vector<8x8x8xf32> to vector<64x8xf32>
    %113 = vector.extract_strided_slice %103 {offsets = [3, 0, 0, 0], sizes = [1, 8, 8, 8], strides = [1, 1, 1, 1]} : vector<4x8x8x8xf32> to vector<1x8x8x8xf32>
    %114 = vector.shape_cast %113 : vector<1x8x8x8xf32> to vector<8x8x8xf32>
    %115 = vector.shape_cast %114 : vector<8x8x8xf32> to vector<64x8xf32>
    %116 = tpu.concatenate %106, %109, %112, %115 in 1 : vector<64x8xf32>, vector<64x8xf32>, vector<64x8xf32>, vector<64x8xf32> -> vector<64x32xf32>
    %cst_30 = arith.constant dense<0.000000e+00> : vector<64x32xf32>
    %117 = tpu.matmul %116, %10, %cst_30 {dimension_numbers = #tpu.dot_dimension_numbers<[1], [0], [0], [1], [0, 0, 1, 1], [], []>} : vector<64x32xf32>, vector<32x32xf32>, vector<64x32xf32> -> vector<64x32xf32>
    %118 = vector.shape_cast %26 : vector<32xf32> to vector<1x32xf32>
    %119 = vector.broadcast %118 : vector<1x32xf32> to vector<64x32xf32>
    %120 = arith.addf %117, %119 : vector<64x32xf32>
    %121 = arith.addf %4, %120 : vector<64x32xf32>
    %cst_31 = arith.constant dense<0.000000e+00> : vector<64xf32>
    %122 = vector.multi_reduction <add>, %121, %cst_31 [1] : vector<64x32xf32> to vector<64xf32>
    %123 = vector.shape_cast %122 : vector<64xf32> to vector<64x1xf32>
    %cst_32 = arith.constant 3.200000e+01 : f32
    %124 = vector.broadcast %cst_32 : f32 to vector<64x1xf32>
    %125 = arith.divf %123, %124 : vector<64x1xf32>
    %126 = vector.broadcast %125 : vector<64x1xf32> to vector<64x32xf32>
    %127 = arith.subf %121, %126 : vector<64x32xf32>
    %128 = arith.mulf %127, %127 : vector<64x32xf32>
    %cst_33 = arith.constant dense<0.000000e+00> : vector<64xf32>
    %129 = vector.multi_reduction <add>, %128, %cst_33 [1] : vector<64x32xf32> to vector<64xf32>
    %130 = vector.shape_cast %129 : vector<64xf32> to vector<64x1xf32>
    %cst_34 = arith.constant 3.200000e+01 : f32
    %131 = vector.broadcast %cst_34 : f32 to vector<64x1xf32>
    %132 = arith.divf %130, %131 : vector<64x1xf32>
    %133 = vector.broadcast %125 : vector<64x1xf32> to vector<64x32xf32>
    %134 = arith.subf %121, %133 : vector<64x32xf32>
    %cst_35 = arith.constant 9.99999974E-6 : f32
    %135 = vector.broadcast %cst_35 : f32 to vector<64x1xf32>
    %136 = arith.addf %132, %135 : vector<64x1xf32>
    %137 = math.rsqrt %136 : vector<64x1xf32>
    %138 = vector.broadcast %137 : vector<64x1xf32> to vector<64x32xf32>
    %139 = arith.mulf %134, %138 : vector<64x32xf32>
    %140 = vector.shape_cast %28 : vector<32xf32> to vector<1x32xf32>
    %141 = vector.broadcast %140 : vector<1x32xf32> to vector<64x32xf32>
    %142 = arith.mulf %139, %141 : vector<64x32xf32>
    %143 = vector.shape_cast %30 : vector<32xf32> to vector<1x32xf32>
    %144 = vector.broadcast %143 : vector<1x32xf32> to vector<64x32xf32>
    %145 = arith.addf %142, %144 : vector<64x32xf32>
    %cst_36 = arith.constant dense<0.000000e+00> : vector<64x64xf32>
    %146 = tpu.matmul %145, %12, %cst_36 {dimension_numbers = #tpu.dot_dimension_numbers<[1], [0], [0], [1], [0, 0, 1, 1], [], []>} : vector<64x32xf32>, vector<32x64xf32>, vector<64x64xf32> -> vector<64x64xf32>
    %147 = vector.shape_cast %38 : vector<64xf32> to vector<1x64xf32>
    %148 = vector.broadcast %147 : vector<1x64xf32> to vector<64x64xf32>
    %149 = arith.addf %146, %148 : vector<64x64xf32>
    %cst_37 = arith.constant 0.000000e+00 : f32
    %150 = vector.broadcast %cst_37 : f32 to vector<64x64xf32>
    %151 = arith.maximumf %149, %150 : vector<64x64xf32>
    %cst_38 = arith.constant dense<0.000000e+00> : vector<64x32xf32>
    %152 = tpu.matmul %151, %14, %cst_38 {dimension_numbers = #tpu.dot_dimension_numbers<[1], [0], [0], [1], [0, 0, 1, 1], [], []>} : vector<64x64xf32>, vector<64x32xf32>, vector<64x32xf32> -> vector<64x32xf32>
    %153 = vector.shape_cast %32 : vector<32xf32> to vector<1x32xf32>
    %154 = vector.broadcast %153 : vector<1x32xf32> to vector<64x32xf32>
    %155 = arith.addf %152, %154 : vector<64x32xf32>
    %156 = arith.addf %145, %155 : vector<64x32xf32>
    %cst_39 = arith.constant dense<0.000000e+00> : vector<64xf32>
    %157 = vector.multi_reduction <add>, %156, %cst_39 [1] : vector<64x32xf32> to vector<64xf32>
    %158 = vector.shape_cast %157 : vector<64xf32> to vector<64x1xf32>
    %cst_40 = arith.constant 3.200000e+01 : f32
    %159 = vector.broadcast %cst_40 : f32 to vector<64x1xf32>
    %160 = arith.divf %158, %159 : vector<64x1xf32>
    %161 = vector.broadcast %160 : vector<64x1xf32> to vector<64x32xf32>
    %162 = arith.subf %156, %161 : vector<64x32xf32>
    %163 = arith.mulf %162, %162 : vector<64x32xf32>
    %cst_41 = arith.constant dense<0.000000e+00> : vector<64xf32>
    %164 = vector.multi_reduction <add>, %163, %cst_41 [1] : vector<64x32xf32> to vector<64xf32>
    %165 = vector.shape_cast %164 : vector<64xf32> to vector<64x1xf32>
    %cst_42 = arith.constant 3.200000e+01 : f32
    %166 = vector.broadcast %cst_42 : f32 to vector<64x1xf32>
    %167 = arith.divf %165, %166 : vector<64x1xf32>
    %168 = vector.broadcast %160 : vector<64x1xf32> to vector<64x32xf32>
    %169 = arith.subf %156, %168 : vector<64x32xf32>
    %cst_43 = arith.constant 9.99999974E-6 : f32
    %170 = vector.broadcast %cst_43 : f32 to vector<64x1xf32>
    %171 = arith.addf %167, %170 : vector<64x1xf32>
    %172 = math.rsqrt %171 : vector<64x1xf32>
    %173 = vector.broadcast %172 : vector<64x1xf32> to vector<64x32xf32>
    %174 = arith.mulf %169, %173 : vector<64x32xf32>
    %175 = vector.shape_cast %34 : vector<32xf32> to vector<1x32xf32>
    %176 = vector.broadcast %175 : vector<1x32xf32> to vector<64x32xf32>
    %177 = arith.mulf %174, %176 : vector<64x32xf32>
    %178 = vector.shape_cast %36 : vector<32xf32> to vector<1x32xf32>
    %179 = vector.broadcast %178 : vector<1x32xf32> to vector<64x32xf32>
    %180 = arith.addf %177, %179 : vector<64x32xf32>
    %181 = vector.shape_cast %180 : vector<64x32xf32> to vector<8x8x32xf32>
    %c0_44 = arith.constant 0 : index
    %c0_45 = arith.constant 0 : index
    %c0_46 = arith.constant 0 : index
    %182 = vector.load %arg10[%c0_44, %c0_45, %c0_46] : memref<8x8x32xf32, #tpu.memory_space<vmem>>, vector<8x8x32xf32>
    tpu.vector_store %arg10[%c0_44, %c0_45, %c0_46], %181 {strides = array<i32>} : memref<8x8x32xf32, #tpu.memory_space<vmem>>, vector<8x8x32xf32>,
    return
  }
  func.func @transform_0(%arg0: i32, %arg1: i32) -> (i32, i32, i32) {
    %c0_i32 = arith.constant 0 : i32
    %c0_i32_0 = arith.constant 0 : i32
    %c0_i32_1 = arith.constant 0 : i32
    return %arg0, %c0_i32, %c0_i32_0 : i32, i32, i32
  }
  func.func @transform_1(%arg0: i32, %arg1: i32) -> (i32, i32, i32) {
    %c0_i32 = arith.constant 0 : i32
    %c0_i32_0 = arith.constant 0 : i32
    %c0_i32_1 = arith.constant 0 : i32
    return %arg1, %c0_i32, %c0_i32_0 : i32, i32, i32
  }
  func.func @transform_2(%arg0: i32, %arg1: i32) -> (i32, i32, i32) {
    %c0_i32 = arith.constant 0 : i32
    %c0_i32_0 = arith.constant 0 : i32
    %c0_i32_1 = arith.constant 0 : i32
    return %arg1, %c0_i32, %c0_i32_0 : i32, i32, i32
  }
  func.func @transform_3(%arg0: i32, %arg1: i32) -> (i32, i32, i32) {
    %c0_i32 = arith.constant 0 : i32
    %c0_i32_0 = arith.constant 0 : i32
    %c0_i32_1 = arith.constant 0 : i32
    return %arg1, %c0_i32, %c0_i32_0 : i32, i32, i32
  }
  func.func @transform_4(%arg0: i32, %arg1: i32) -> (i32, i32, i32) {
    %c0_i32 = arith.constant 0 : i32
    %c0_i32_0 = arith.constant 0 : i32
    %c0_i32_1 = arith.constant 0 : i32
    return %arg1, %c0_i32, %c0_i32_0 : i32, i32, i32
  }
  func.func @transform_5(%arg0: i32, %arg1: i32) -> (i32, i32, i32) {
    %c0_i32 = arith.constant 0 : i32
    %c0_i32_0 = arith.constant 0 : i32
    %c0_i32_1 = arith.constant 0 : i32
    return %arg1, %c0_i32, %c0_i32_0 : i32, i32, i32
  }
  func.func @transform_6(%arg0: i32, %arg1: i32) -> (i32, i32, i32) {
    %c0_i32 = arith.constant 0 : i32
    %c0_i32_0 = arith.constant 0 : i32
    %c0_i32_1 = arith.constant 0 : i32
    return %arg1, %c0_i32, %c0_i32_0 : i32, i32, i32
  }
  func.func @transform_7(%arg0: i32, %arg1: i32) -> (i32, i32, i32) {
    %c0_i32 = arith.constant 0 : i32
    %c0_i32_0 = arith.constant 0 : i32
    %c0_i32_1 = arith.constant 0 : i32
    return %arg1, %c0_i32, %c0_i32_0 : i32, i32, i32
  }
  func.func @transform_8(%arg0: i32, %arg1: i32) -> (i32, i32, i32) {
    %c0_i32 = arith.constant 0 : i32
    %c0_i32_0 = arith.constant 0 : i32
    %c0_i32_1 = arith.constant 0 : i32
    return %arg0, %c0_i32, %c0_i32_0 : i32, i32, i32
  }
}

</mosaic_0001>

<bundles_post_ra>
// kernel: tpu_custom_call.1
= control target key start
LH: loop header
LB: loop body
LE: loop exit
PB: predicated region body
PF: predicated region fallthrough
CT: control target
= control target key end

     0   :  { %s6537_s0 = inlined_call_operand.vmem [shape: f32[8,8,32], index: 0, kind: input, shape index: {}]   ;;  %s6538_s1 = inlined_call_operand.vmem [shape: f32[2,32,32], index: 1, kind: input, shape index: {}]   ;;  %s6539_s2 = inlined_call_operand.vmem [shape: f32[2,32,64], index: 2, kind: input, shape index: {}]   ;;  %s6540_s3 = inlined_call_operand.hbm [shape: f32[2,32,32], index: 3, kind: input, shape index: {}]   ;;  %s6541_s4 = inlined_call_operand.hbm [shape: f32[2,32,64], index: 4, kind: input, shape index: {}]   ;;  %s6542_s5 = inlined_call_operand.vmem [shape: f32[2,64,32], index: 5, kind: input, shape index: {}]   ;;  %s6543_s6 = inlined_call_operand.vmem [shape: f32[2,17,32], index: 6, kind: input, shape index: {}]   ;;  %s6544_s7 = inlined_call_operand.vmem [shape: f32[2,1,64], index: 7, kind: input, shape index: {}]   ;;  %s6545_s8 = inlined_call_operand.hbm [shape: f32[8,8,32], index: 8, kind: output, shape index: {}]  }
   0x1   :  { %6552 = sst [smem:[#allocation17_spill]] %s6540_s3 }
   0x2   :  { %13 = vsyncpa [#allocation3], 0 }
   0x3   :  { %15 = vsyncpa [#allocation3 + $0x1], 0 }
   0x4   :  { %16 = vsyncpa [#allocation6], 0 }
   0x5   :  { %18 = vsyncpa [#allocation6 + $0x1], 0 }
   0x6   :  { %19 = vsyncpa [#allocation4], 0  ;;  %s5007_s27 = smov 0   ;;  %s5009_s28 = smov 0  }
   0x7   :  { %s5011_s29 = smov 0   ;;  %s5013_s30 = smov 0  }
   0x8   :  { %s5015_s9 = smov 0   ;;  %s5017_s10 = smov 0  }
   0x9 LB: > { %6553 = sst [smem:[#allocation11_spill]] %s4935_s29  ;;  %s6546_s11 = sadd.s32 4294967295, %s4947_s10   ;;  %s4947_s10 = sphi %s5017_s10, %s25_s10   ;;  %s4943_s9 = sphi %s5015_s9, %s6587_s9   ;;  %s4939_s30 = sphi %s5013_s30, %s6586_s30   ;;  %s4935_s29 = sphi %s5011_s29, %s6585_s29   ;;  %s4931_s28 = sphi %s5009_s28, %s6589_s28   ;;  %s4927_s27 = sphi %s5007_s27, %s6588_s27  }
   0xa   : > { %6554 = sst [smem:[#allocation12_spill]] %s4943_s9  ;;  %s34_s12 = sadd.s32 1, %s4943_s9 }
   0xb   : > { %p35_p0 = scmp.ge.s32.totalorder %s34_s12, 2  ;;  %s122_s13 = sadd.s32 1, %s4935_s29 }
   0xc   : > { %p129_p1 = scmp.ne.s32.totalorder %s4935_s29, %s4931_s28  ;;  %p130_p2 = scmp.eq.s32.totalorder %s4947_s10, 0 }
   0xd   : > { %s6591_s12 = smov (%p35_p0, %s34_s12), 0  ;;  %p135_p4 = scmp.ne.s32.totalorder %s4931_s28, %s4927_s27 }
   0xe   : > { %6555 = sst [smem:[#allocation13_spill]] %s6591_s12  ;;  %p5043_p3 = por %p130_p2, %p129_p1 }
   0xf   : > { %s119_s15 = ssub.s32 %s4943_s9, %s6591_s12  ;;  %p136_p5 = scmp.eq.s32.totalorder %s6546_s11, 0 }
  0x10   : > { %p120_p6 = scmp.eq.s32.totalorder %s119_s15, 0  ;;  %p4429_p8 = scmp.lt.s32.totalorder %s4947_s10, 2 }
  0x11   : > { %p5052_p7 = por %p136_p5, %p135_p4  ;;  %s5061_s18 = sand.u32 1, %s4935_s29  }
  0x12   : > { %s5058_s17 = scalar_select %p120_p6, %s4935_s29, %s122_s13  }
  0x13   : > { %s4404_s19 = sshll.u32 %s4943_s9, 5  ;;  %s4247_s20 = sshll.u32 %s5061_s18, 5 }
  0x14   : > { %6558 = sst [smem:[#allocation14_spill]] %s5058_s17  ;;  %s318_s25 = scalar_lea.vmem [#allocation2], %s4247_s20 }
  0x15   : > { %s6559_s3 = sld [smem:[#allocation17_spill]]  ;;  %s326_s26 = sshll.u32 %s318_s25, 4  ;;  %s327_s26 = int_to_ptr.vmem [resolvable:$true] %s326_s26 }
  0x16   : > { %p5070_p9 = pnand %p4429_p8, %p5043_p3  ;;  %p4253_p10 = scmp.ge.s32.totalorder %s4947_s10, 1 }
  0x17   : > { %p378_p11 = scmp.lt.s32.totalorder %s4947_s10, 3  ;;  %s315_s13 = scalar_lea.sflag [#allocation3], %s5061_s18 }
  0x18   : > { %s4949_s15 = smov 128   ;;  %s4950_s11 = smov 8  }
  0x19   : > { %p379_p12 = pnand %p4253_p10, %p378_p11  ;;  %s340_s14 = scalar_lea.vmem [#allocation5], %s4247_s20 }
  0x1a   : > { %s337_s12 = scalar_lea.sflag [#allocation6], %s5061_s18 }
  0x1b   : > { %s323_s23 = scalar_lea.hbm %s6559_s3, %s4404_s19  ;;  %s348_s3 = sshll.u32 %s340_s14, 4  ;;  %s349_s3 = int_to_ptr.vmem [resolvable:$true] %s348_s3 }
  0x1c   : > { %s324_s24 = sshll.u32 %s323_s23, 4  ;;  %s345_s23 = scalar_lea.hbm %s6541_s4, %s4404_s19  ;;  %s325_s24 = int_to_ptr.hbm [resolvable:$true] %s324_s24 }
  0x1d   : > { %4425 = dma.hbm_to_vmem [thread:$0]  (!%p5070_p9), %s325_s24, 512, %s327_s26, %s315_s13, %s4949_s15, %s4949_s15, %s4950_s11  }
  0x1e   : > { %s346_s25 = sshll.u32 %s345_s23, 4  ;;  %382 = sbr.rel (%p379_p12) target bundleno = 2311 (0x907), region = 52  ;;  %s347_s25 = int_to_ptr.hbm [resolvable:$true] %s346_s25 }
  0x1f   : > { %4428 = dma.hbm_to_vmem [thread:$0]  (!%p5070_p9), %s347_s25, 512, %s349_s3, %s337_s12, %s4949_s15, %s4949_s15, %s4950_s11  }
  0x23   : > { %s384_s9 = sand.u32 1, %s4931_s28  }
  0x24   : > { %s4254_s17 = sshll.u32 %s384_s9, 5  ;;  %s385_s29 = scalar_lea.sflag [#allocation3], %s384_s9 }
  0x25   : > { %s5086_s24 = scalar_lea.vmem [#allocation2], %s4254_s17 }
  0x26   : > { %4914 = dma.done.wait (%p5052_p7), %s385_s29, 512  }
  0x27   : > { %4916 = vsyncadd (%p5052_p7), %s385_s29, 4294966784  ;;  %s395_s19 = scalar_lea.sflag [#allocation6], %s384_s9  ;;  %s5092_s20 = scalar_lea.vmem [#allocation5], %s4254_s17 }
  0x28   : > { %4918 = dma.done.wait (%p5052_p7), %s395_s19, 512  }
  0x29   : > { %4920 = vsyncadd (%p5052_p7), %s395_s19, 4294966784  ;;  %p466_p13 = scmp.lt.s32.totalorder %s4939_s30, 1  ;;  %p4263_p0 = scmp.ne.s32.totalorder %s4939_s30, 0 }
  0x2b   : > { %s5100_s3 = scalar_select %p466_p13, %s4939_s30, 1 }
  0x2d   : > { %s4406_s11 = sshll.u32 %s5100_s3, 5  ;;  %s4408_s29 = sshll.u32 %s5100_s3, 6 }
  0x2e   : > { %s5107_s17 = scalar_lea.vmem %s6538_s1, %s4406_s11  ;;  %s5112_s16 = scalar_lea.vmem %s6539_s2, %s4406_s11 }
  0x2f   : > { %s5117_s15 = scalar_lea.vmem %s6542_s5, %s4408_s29  ;;  %s4413_s21 = smul.u32 24, %s5100_s3 }
  0x30   : > { %s488_s25 = scalar_lea.vmem %s6544_s7, %s5100_s3  ;;  %493 = sbr.rel (%p4263_p0) target bundleno = 62 (0x3e), region = 64 }
  0x31   : > { %s5127_s12 = scalar_lea.vmem %s6543_s6, %s4413_s21 }
  0x35   : > { %v494_v0 = vld [vmem:[%s6537_s0] sm:$0xff]  ;;  %vm502_vm0 = vcmask 261120   ;;  %v495_v1 = vld [vmem:[%s6537_s0 + $0x8] sm:$0xff]  ;;  %v496_v2 = vld [vmem:[%s6537_s0 + $0x10] sm:$0xff] }
  0x36   : > { %503 = vst.msk [vmem:[#allocation7] sm:$0xff] %vm502_vm0, %v494_v0  ;;  %v497_v3 = vld [vmem:[%s6537_s0 + $0x18] sm:$0xff]  ;;  %v498_v4 = vld [vmem:[%s6537_s0 + $0x20] sm:$0xff]  ;;  %v499_v5 = vld [vmem:[%s6537_s0 + $0x28] sm:$0xff] }
  0x37   : > { %504 = vst.msk [vmem:[#allocation7 + $0x8] sm:$0xff] %vm502_vm0, %v495_v1  ;;  %v500_v6 = vld [vmem:[%s6537_s0 + $0x30] sm:$0xff]  ;;  %v501_v7 = vld [vmem:[%s6537_s0 + $0x38] sm:$0xff] }
  0x38   : > { %505 = vst.msk [vmem:[#allocation7 + $0x10] sm:$0xff] %vm502_vm0, %v496_v2 }
  0x39   : > { %506 = vst.msk [vmem:[#allocation7 + $0x18] sm:$0xff] %vm502_vm0, %v497_v3 }
  0x3a   : > { %507 = vst.msk [vmem:[#allocation7 + $0x20] sm:$0xff] %vm502_vm0, %v498_v4 }
  0x3b   : > { %508 = vst.msk [vmem:[#allocation7 + $0x28] sm:$0xff] %vm502_vm0, %v499_v5 }
  0x3c   : > { %509 = vst.msk [vmem:[#allocation7 + $0x30] sm:$0xff] %vm502_vm0, %v500_v6 }
  0x3d   : > { %510 = vst.msk [vmem:[#allocation7 + $0x38] sm:$0xff] %vm502_vm0, %v501_v7 }
  0x3e PF: > { %v522_v8 = vld [vmem:[%s5107_s17 + $0x18] sm:$0xff]  ;;  %v521_v9 = vld [vmem:[%s5107_s17 + $0x10] sm:$0xff]  ;;  %v511_v10 = vld [vmem:[#allocation7] sm:$0xff]  ;;  %vm567_vm1 = vcmask 261120   ;;  %s4953_s18 = smov 112   ;;  %s4954_s26 = smov 120  }
  0x3f   : > { %604 = vmatpush.msra.mxu0 %v522_v8  ;;  %4409 = vmatpush.msra.mxu1 %v522_v8  ;;  %v543_v11 = vld [vmem:[%s5127_s12] sm:$0xff]  ;;  %v520_v12 = vld [vmem:[%s5107_s17 + $0x8] sm:$0xff]  ;;  %v526_v21 = vld [vmem:[%s5112_s16 + $0x18] sm:$0xff]  ;;  %vm922_vm2 = vcmask 64512   ;;  %s4955_s27 = smov 96   ;;  %s4956_s13 = smov 8  }
  0x40   : > { %v551_v13 = vperm.slane %v543_v11, 0  ;;  %633 = vst [vmem:[#allocation1] sm:$0xff] %v543_v11  ;;  %v548_v14 = vrot.slane %v543_v11, 1  ;;  %v519_v16 = vld [vmem:[%s5107_s17] sm:$0xff]  ;;  %v549_v19 = vrot.slane %v543_v11, 2  ;;  %v525_v23 = vld [vmem:[%s5112_s16 + $0x10] sm:$0xff] }
  0x41   : > { %605 = vmatpush.msra.mxu0 %v521_v9  ;;  %4410 = vmatpush.msra.mxu1 %v521_v9  ;;  %v512_v24 = vld [vmem:[#allocation7 + $0x8] sm:$0xff]  ;;  %v524_v26 = vld [vmem:[%s5112_s16 + $0x8] sm:$0xff]  ;;  %v550_v29 = vrot.slane %v543_v11, 3  ;;  %v523_v30 = vld [vmem:[%s5112_s16] sm:$0xff]  ;;  %s4951_s17 = smov 32   ;;  %s4952_s16 = smov 104  }
  0x42   : > { %v516_v15 = vld [vmem:[#allocation7 + $0x28] sm:$0xff]  ;;  %v559_v17 = vmul.f32 %v551_v13, %v511_v10  ;;  %v552_v18 = vperm.slane %v548_v14, 0  ;;  %v553_v22 = vperm.slane %v549_v19, 0  ;;  %v544_v32 = vld [vmem:[%s5127_s12 + $0x8] sm:$0xff]  ;;  %v513_v34 = vld [vmem:[#allocation7 + $0x10] sm:$0xff]  ;;  %s4957_s21 = smov 16  }
  0x43   : > { %606 = vmatpush.msra.mxu0 %v520_v12  ;;  %4411 = vmatpush.msra.mxu1 %v520_v12  ;;  %v517_v25 = vld [vmem:[#allocation7 + $0x30] sm:$0xff]  ;;  %v554_v31 = vperm.slane %v550_v29, 0  ;;  %v741_v35 = vperm.slane %v544_v32, 2  ;;  %v514_v38 = vld [vmem:[#allocation7 + $0x18] sm:$0xff]  ;;  %v515_v40 = vld [vmem:[#allocation7 + $0x20] sm:$0xff]  ;;  %v5183_v45 = vperm.slane %v544_v32, 0 }
  0x44   : > { %v564_v20 = vmul.f32 %v552_v18, %v516_v15  ;;  %v560_v27 = vmul.f32 %v552_v18, %v512_v24  ;;  %v565_v28 = vmul.f32 %v553_v22, %v517_v25  ;;  %v518_v33 = vld [vmem:[#allocation7 + $0x38] sm:$0xff]  ;;  %v561_v37 = vmul.f32 %v553_v22, %v513_v34  ;;  %s4958_s30 = smov 24   ;;  %s4960_s3 = smov [#allocation7]  }
  0x45   : > { %607 = vmatpush.msra.mxu0 %v519_v16  ;;  %4412 = vmatpush.msra.mxu1 %v519_v16  ;;  %v566_v36 = vmul.f32 %v554_v31, %v518_v33  ;;  %v562_v39 = vmul.f32 %v554_v31, %v514_v38  ;;  %v563_v41 = vmul.f32 %v551_v13, %v515_v40  ;;  %v5203_v1 = vperm.slane %v544_v32, 1  ;;  %s4083_s22 = sshll.u32 %s6545_s8, 4  ;;  %s6583_s23 = sadd.s32 4294967295, %s4947_s10   ;;  %s4084_s22 = int_to_ptr.hbm [resolvable:$true] %s4083_s22 }
  0x46   : > { %4264 = vmatmul.msk.f32.vlgmr.msra.gmra.mxu0 %vm567_vm1, %v559_v17  ;;  %4269 = vmatmul.msk.f32.vlgmr.msra.gmra.mxu1 %vm567_vm1, %v564_v20  ;;  %p4430_p1 = scmp.eq.s32.totalorder %s6583_s23, 1  ;;  %s4961_s14 = smov 128  }
  0x47   : > { %703 = vmatpush.msrb.mxu1 %v526_v21  ;;  %743 = vrot.lane.b32.xlu1 %v741_v35, %s4951_s17  ;;  %v5180_v42 = vld [vmem:[#allocation1 + $0x4] ss:$9 sm:$0xff]  ;;  %v639_v52 = vld [vmem:[#allocation1 + $0x6] ss:$9 sm:$0xff] }
  0x48   : > { %v642_v43 = vperm.slane %v5180_v42, 0  ;;  %v637_v44 = vld [vmem:[#allocation1 + $0x5] ss:$9 sm:$0xff]  ;;  %v644_v57 = vperm.slane %v639_v52, 0  ;;  %v641_v60 = vld [vmem:[#allocation1 + $0x7] ss:$9 sm:$0xff] }
  0x49   : > { %704 = vmatpush.msrb.mxu1 %v525_v23  ;;  %v643_v49 = vperm.slane %v637_v44, 0  ;;  %v645_v63 = vperm.slane %v641_v60, 0 }
  0x4b   : > { %705 = vmatpush.msrb.mxu1 %v524_v26 }
  0x4d   : > { %706 = vmatpush.msrb.mxu1 %v523_v30 }
  0x4e   : > { %4265 = vmatmul.msk.f32.gmra.mxu0 %vm567_vm1, %v560_v27  ;;  %4270 = vmatmul.msk.f32.gmra.mxu1 %vm567_vm1, %v565_v28 }
  0x56   : > { %4271 = vmatmul.msk.f32.gmra.mxu1 %vm567_vm1, %v566_v36  ;;  %4266 = vmatmul.msk.f32.gmra.mxu0 %vm567_vm1, %v561_v37 }
  0x5e   : > { %4272 = vmatmul.msk.f32.vlgmr.msrb.gmra.mxu1 %vm567_vm1, %v511_v10  ;;  %4267 = vmatmul.msk.f32.gmra.mxu0 %vm567_vm1, %v562_v39 }
  0x66   : > { %4273 = vmatmul.msk.f32.gmra.mxu1 %vm567_vm1, %v512_v24  ;;  %4268 = vmatmul.msk.f32.gmra.mxu0 %vm567_vm1, %v563_v41 }
  0x6e   : > { %4274 = vmatmul.msk.f32.gmra.mxu1 %vm567_vm1, %v513_v34 }
  0x76   : > { %4275 = vmatmul.msk.f32.gmra.mxu1 %vm567_vm1, %v514_v38 }
  0x7e   : > { %4276 = vmatmul.msk.f32.gmra.mxu1 %vm567_vm1, %v515_v40 }
  0x86   : > { %4277 = vmatmul.msk.f32.gmra.mxu1 %vm567_vm1, %v516_v15 }
  0x8e   : > { %4278 = vmatmul.msk.f32.gmra.mxu1 %vm567_vm1, %v517_v25 }
  0x96   : > { %4279 = vmatmul.msk.f32.gmra.mxu1 %vm567_vm1, %v518_v33 }
  0xb9   : > { %v5230_v13 = vpop.permute.xlu1 %743 }
  0xc3   : > { %v609_v46 = vpop.f32.mrf.mxu0  ;;  %v624_v47 = vpop.f32.mrf.mxu1 }
  0xc4   : > { %v650_v48 = vmul.f32 %v642_v43, %v609_v46  ;;  %v655_v51 = vmul.f32 %v643_v49, %v624_v47 }
  0xc6   : > { %v659_v50 = vadd.f32 %v5183_v45, %v650_v48  ;;  %v5192_v55 = vadd.f32 %v5183_v45, %v655_v51 }
  0xc8   : > { %794 = vrot.lane.b32.xlu1 %v659_v50, %s4952_s16  ;;  %778 = vrot.lane.b32.xlu2 %v659_v50, %s4953_s18 }
  0xc9   : > { %762 = vrot.lane.b32.xlu0 %v659_v50, %s4954_s26 }
  0xcb   : > { %v612_v53 = vpop.f32.mrf.mxu0  ;;  %v627_v54 = vpop.f32.mrf.mxu1 }
  0xcc   : > { %v651_v56 = vmul.f32 %v643_v49, %v612_v53  ;;  %v656_v59 = vmul.f32 %v644_v57, %v627_v54 }
  0xce   : > { %v660_v58 = vadd.f32 %v5183_v45, %v651_v56  ;;  %v5201_v62 = vadd.f32 %v5183_v45, %v656_v59 }
  0xd0   : > { %804 = vrot.lane.b32.xlu1 %v5192_v55, %s4952_s16  ;;  %764 = vrot.lane.b32.xlu2 %v660_v58, %s4954_s26 }
  0xd1   : > { %772 = vrot.lane.b32.xlu0 %v5192_v55, %s4954_s26 }
  0xd3   : > { %v630_v61 = vpop.f32.mrf.mxu1  ;;  %v615_v0 = vpop.f32.mrf.mxu0 }
  0xd4   : > { %v657_v2 = vmul.f32 %v645_v63, %v630_v61  ;;  %v652_v3 = vmul.f32 %v644_v57, %v615_v0 }
  0xd6   : > { %v5211_v5 = vadd.f32 %v5183_v45, %v657_v2  ;;  %v661_v6 = vadd.f32 %v5183_v45, %v652_v3 }
  0xd8   : > { %774 = vrot.lane.b32.xlu1 %v5201_v62, %s4954_s26  ;;  %780 = vrot.lane.b32.xlu2 %v660_v58, %s4953_s18 }
  0xd9   : > { %788 = vrot.lane.b32.xlu0 %v5192_v55, %s4953_s18 }
  0xdb   : > { %v708_v4 = vpop.f32.mrf.mxu1  ;;  %v618_v12 = vpop.f32.mrf.mxu0 }
  0xdc   : > { %v733_v7 = vadd.f32 %v5203_v1, %v708_v4  ;;  %v653_v14 = vmul.f32 %v645_v63, %v618_v12  ;;  %v746_v15 = vadd.f32 %v5230_v13, %v708_v4 }
  0xde   : > { %4280 = vmatpush.xpose.msk.msra.mxu1 %vm922_vm2, %v733_v7  ;;  %v662_v19 = vadd.f32 %v5183_v45, %v653_v14 }
  0xe0   : > { %776 = vrot.lane.b32.xlu1 %v5211_v5, %s4954_s26  ;;  %766 = vrot.lane.b32.xlu2 %v661_v6, %s4954_s26 }
  0xe1   : > { %796 = vrot.lane.b32.xlu0 %v660_v58, %s4952_s16  ;;  %4281 = vmatmul.msk.f32.vlgmr.msra.gmra.mxu1 %vm922_vm2, %v659_v50 }
  0xe3   : > { %v711_v8 = vpop.f32.mrf.mxu1  ;;  %v621_v21 = vpop.f32.mrf.mxu0 }
  0xe4   : > { %v734_v9 = vadd.f32 %v5203_v1, %v711_v8  ;;  %v747_v16 = vadd.f32 %v5230_v13, %v711_v8  ;;  %v654_v22 = vmul.f32 %v642_v43, %v621_v21 }
  0xe6   : > { %4282 = vmatpush.xpose.msk.msrb.mxu1 %vm922_vm2, %v734_v9  ;;  %v4508_v20 = vpack.i.bf16 %v747_v16, %v746_v15  ;;  %v663_v25 = vadd.f32 %v5183_v45, %v654_v22 }
  0xe8   : > { %798 = vrot.lane.b32.xlu1 %v661_v6, %s4952_s16  ;;  %782 = vrot.lane.b32.xlu2 %v661_v6, %s4953_s18 }
  0xe9   : > { %790 = vrot.lane.b32.xlu0 %v5201_v62, %s4953_s18  ;;  %4283 = vmatmul.msk.f32.vlgmr.msrb.gmra.mxu1 %vm922_vm2, %v660_v58 }
  0xeb   : > { %v714_v10 = vpop.f32.mrf.mxu1 }
  0xec   : > { %v735_v11 = vadd.f32 %v5203_v1, %v714_v10  ;;  %v5287_v33 = vadd.f32 %v5230_v13, %v714_v10 }
  0xee   : > { %4284 = vmatpush.xpose.msk.msra.mxu1 %vm922_vm2, %v735_v11 }
  0xf0   : > { %820 = vrot.lane.b32.xlu1 %v734_v9, %s4954_s26  ;;  %808 = vrot.lane.b32.xlu2 %v5211_v5, %s4952_s16 }
  0xf1   : > { %806 = vrot.lane.b32.xlu0 %v5201_v62, %s4952_s16  ;;  %4285 = vmatmul.msk.f32.vlgmr.msra.gmra.mxu1 %vm922_vm2, %v661_v6 }
  0xf3   : > { %v717_v17 = vpop.f32.mrf.mxu1 }
  0xf4   : > { %v5241_v18 = vadd.f32 %v5203_v1, %v717_v17  ;;  %v5271_v29 = vadd.f32 %v5230_v13, %v717_v17 }
  0xf6   : > { %4286 = vmatpush.xpose.msk.msra.mxu3 %vm922_vm2, %v5241_v18  ;;  %v4513_v36 = vpack.i.bf16 %v5271_v29, %v5287_v33 }
  0xf8   : > { %4509 = vrot.lane.b32.xlu1 %v4508_v20, %s4952_s16  ;;  %850 = vrot.lane.b32.xlu2 %v733_v7, %s4952_s16 }
  0xf9   : > { %792 = vrot.lane.b32.xlu0 %v5211_v5, %s4953_s18  ;;  %4287 = vmatmul.msk.f32.vlgmr.msra.gmra.mxu3 %vm922_vm2, %v662_v19 }
  0xfb   : > { %v720_v23 = vpop.f32.mrf.mxu1 }
  0xfc   : > { %v737_v24 = vadd.f32 %v5203_v1, %v720_v23  ;;  %v750_v41 = vadd.f32 %v5230_v13, %v720_v23 }
  0xfe   : > { %4288 = vmatpush.xpose.msk.msra.mxu2 %vm922_vm2, %v737_v24 }
 0x100   : > { %822 = vrot.lane.b32.xlu1 %v735_v11, %s4954_s26  ;;  %768 = vrot.lane.b32.xlu2 %v662_v19, %s4954_s26 }
 0x101   : > { %818 = vrot.lane.b32.xlu0 %v733_v7, %s4954_s26  ;;  %4289 = vmatmul.msk.f32.vlgmr.msra.gmra.mxu2 %vm922_vm2, %v663_v25 }
 0x103   : > { %v723_v26 = vpop.f32.mrf.mxu1 }
 0x104   : > { %v5261_v27 = vadd.f32 %v5203_v1, %v723_v26  ;;  %v751_v39 = vadd.f32 %v5230_v13, %v723_v26 }
 0x106   : > { %4290 = vmatpush.xpose.msk.msrb.mxu3 %vm922_vm2, %v5261_v27  ;;  %v4538_v42 = vpack.i.bf16 %v751_v39, %v750_v41 }
 0x108   : > { %838 = vrot.lane.b32.xlu1 %v735_v11, %s4953_s18  ;;  %784 = vrot.lane.b32.xlu2 %v662_v19, %s4953_s18 }
 0x109   : > { %834 = vrot.lane.b32.xlu0 %v733_v7, %s4953_s18  ;;  %4291 = vmatmul.msk.f32.vlgmr.msrb.gmra.mxu3 %vm922_vm2, %v5192_v55 }
 0x10b   : > { %v726_v28 = vpop.f32.mrf.mxu1 }
 0x10c   : > { %v739_v30 = vadd.f32 %v5203_v1, %v726_v28  ;;  %v5275_v31 = vadd.f32 %v5230_v13, %v726_v28 }
 0x10e   : > { %4292 = vmatpush.xpose.msk.msrb.mxu2 %vm922_vm2, %v739_v30  ;;  %v4548_v32 = vpack.i.bf16 %v5275_v31, %v5271_v29 }
 0x110   : > { %856 = vrot.lane.b32.xlu1 %v5241_v18, %s4952_s16  ;;  %800 = vrot.lane.b32.xlu2 %v662_v19, %s4952_s16 }
 0x111   : > { %836 = vrot.lane.b32.xlu0 %v734_v9, %s4953_s18  ;;  %4293 = vmatmul.msk.f32.vlgmr.msrb.gmra.mxu2 %vm922_vm2, %v5201_v62 }
 0x113   : > { %v729_v34 = vpop.f32.mrf.mxu1 }
 0x114   : > { %v5290_v35 = vadd.f32 %v5203_v1, %v729_v34  ;;  %v753_v52 = vadd.f32 %v5230_v13, %v729_v34 }
 0x116   : > { %4294 = vmatpush.xpose.msk.msra.mxu3 %vm922_vm2, %v5290_v35  ;;  %v5353_v56 = vpack.i.bf16 %v753_v52, %v5275_v31 }
 0x118   : > { %4514 = vrot.lane.b32.xlu1 %v4513_v36, %s4954_s26  ;;  %852 = vrot.lane.b32.xlu2 %v734_v9, %s4952_s16 }
 0x119   : > { %4494 = vrot.lane.b32.xlu0 %v4508_v20, %s4954_s26  ;;  %4295 = vmatmul.msk.f32.vlgmr.msra.gmra.mxu3 %vm922_vm2, %v5211_v5 }
 0x120   : > { %4519 = vrot.lane.b32.xlu1 %v4513_v36, %s4953_s18  ;;  %4499 = vrot.lane.b32.xlu2 %v4508_v20, %s4953_s18 }
 0x121   : > { %4504 = vrot.lane.b32.xlu0 %v4508_v20, %s4955_s27 }
 0x122   : > { %v5304_v37 = vpop.permute.xlu2 %778 }
 0x128   : > { %826 = vrot.lane.b32.xlu1 %v737_v24, %s4954_s26  ;;  %854 = vrot.lane.b32.xlu2 %v735_v11, %s4952_s16 }
 0x129   : > { %770 = vrot.lane.b32.xlu0 %v663_v25, %s4954_s26 }
 0x12a   : > { %v765_v38 = vpop.permute.xlu2 %764 }
 0x130   : > { %842 = vrot.lane.b32.xlu1 %v737_v24, %s4953_s18  ;;  %858 = vrot.lane.b32.xlu2 %v737_v24, %s4952_s16 }
 0x131   : > { %786 = vrot.lane.b32.xlu0 %v663_v25, %s4953_s18 }
 0x132   : > { %v5313_v40 = vpop.permute.xlu2 %780 }
 0x138   : > { %828 = vrot.lane.b32.xlu1 %v5261_v27, %s4954_s26  ;;  %4539 = vrot.lane.b32.xlu2 %v4538_v42, %s4955_s27 }
 0x139   : > { %802 = vrot.lane.b32.xlu0 %v663_v25, %s4952_s16 }
 0x13a   : > { %v5320_v43 = vpop.permute.xlu1 %794  ;;  %v767_v44 = vpop.permute.xlu2 %766 }
 0x13b   : > { %v763_v45 = vpop.permute.xlu0 %762 }
 0x140   : > { %844 = vrot.lane.b32.xlu1 %v5261_v27, %s4953_s18  ;;  %830 = vrot.lane.b32.xlu2 %v739_v30, %s4954_s26 }
 0x141   : > { %824 = vrot.lane.b32.xlu0 %v5241_v18, %s4954_s26 }
 0x142   : > { %v5327_v46 = vpop.permute.xlu1 %804  ;;  %v783_v47 = vpop.permute.xlu2 %782 }
 0x143   : > { %v5329_v48 = vpop.permute.xlu0 %772 }
 0x148   : > { %4534 = vrot.lane.b32.xlu1 %v4538_v42, %s4953_s18  ;;  %862 = vrot.lane.b32.xlu2 %v739_v30, %s4952_s16 }
 0x149   : > { %840 = vrot.lane.b32.xlu0 %v5241_v18, %s4953_s18 }
 0x14a   : > { %v5335_v49 = vpop.permute.xlu1 %774  ;;  %v5337_v50 = vpop.permute.xlu2 %808 }
 0x14b   : > { %v5339_v51 = vpop.permute.xlu0 %788 }
 0x150   : > { %4544 = vrot.lane.b32.xlu1 %v4538_v42, %s4952_s16  ;;  %832 = vrot.lane.b32.xlu2 %v5290_v35, %s4954_s26 }
 0x151   : > { %4524 = vrot.lane.b32.xlu0 %v4513_v36, %s4952_s16 }
 0x152   : > { %v5346_v53 = vpop.permute.xlu1 %776  ;;  %v5348_v54 = vpop.permute.xlu2 %850 }
 0x153   : > { %v5350_v55 = vpop.permute.xlu0 %796 }
 0x158   : > { %846 = vrot.lane.b32.xlu1 %v739_v30, %s4953_s18  ;;  %4554 = vrot.lane.b32.xlu2 %v5353_v56, %s4954_s26 }
 0x159   : > { %860 = vrot.lane.b32.xlu0 %v5261_v27, %s4952_s16 }
 0x15a   : > { %v5360_v57 = vpop.permute.xlu1 %798  ;;  %v5362_v58 = vpop.permute.xlu2 %768 }
 0x15b   : > { %v5364_v59 = vpop.permute.xlu0 %790 }
 0x160   : > { %848 = vrot.lane.b32.xlu1 %v5290_v35, %s4953_s18  ;;  %4559 = vrot.lane.b32.xlu2 %v5353_v56, %s4953_s18 }
 0x161   : > { %4529 = vrot.lane.b32.xlu0 %v4538_v42, %s4954_s26 }
 0x162   : > { %v821_v60 = vpop.permute.xlu1 %820  ;;  %v5371_v61 = vpop.permute.xlu2 %784 }
 0x163   : > { %v5373_v62 = vpop.permute.xlu0 %806  ;;  %4298 = vmatpush.xpose.msk.msrb.mxu3 %vm922_vm2, %v821_v60 }
 0x166   : > { %4299 = vmatmul.msk.f32.vlgmr.msrb.gmra.mxu3 %vm922_vm2, %v765_v38 }
 0x168   : > { %864 = vrot.lane.b32.xlu1 %v5290_v35, %s4952_s16 }
 0x169   : > { %4549 = vrot.lane.b32.xlu0 %v4548_v32, %s4955_s27  ;;  %v944_v32 = vpop.f32.mrf.mxu1 }
 0x16a   : > { %v5383_v63 = vpop.permute.xlu1 %4509  ;;  %v5385_v0 = vpop.permute.xlu2 %800  ;;  %v5433_v35 = vmul.f32 0.35355338, %v944_v32 }
 0x16b   : > { %v5387_v1 = vpop.permute.xlu0 %792  ;;  %v4512_v20 = vunpack.i.h.bf16 %v5383_v63 }
 0x16c   : > { %v1723_v38 = vsel %vm922_vm2, %v5433_v35, -inf }
 0x172   : > { %v823_v2 = vpop.permute.xlu1 %822  ;;  %v5389_v3 = vpop.permute.xlu2 %852 }
 0x173   : > { %v819_v4 = vpop.permute.xlu0 %818 }
 0x174   : > { %4296 = vmatpush.xpose.msk.msra.mxu2 %vm922_vm2, %v819_v4 }
 0x177   : > { %4297 = vmatmul.msk.f32.vlgmr.msra.gmra.mxu2 %vm922_vm2, %v763_v45 }
 0x178   : > { %4300 = vmatpush.xpose.msk.msrb.mxu2 %vm922_vm2, %v823_v2 }
 0x17a   : > { %v839_v5 = vpop.permute.xlu1 %838  ;;  %v5394_v6 = vpop.permute.xlu2 %4499 }
 0x17b   : > { %v835_v7 = vpop.permute.xlu0 %834  ;;  %4316 = vmatpush.xpose.msk.msrb.mxu0 %vm922_vm2, %v839_v5  ;;  %v4501_v60 = vunpack.i.l.bf16 %v5394_v6 }
 0x17e   : > { %4317 = vmatmul.msk.f32.vlgmr.msrb.gmra.mxu0 %vm922_vm2, %v783_v47 }
 0x17f   : > { %4301 = vmatmul.msk.f32.vlgmr.msrb.gmra.mxu2 %vm922_vm2, %v767_v44 }
 0x182   : > { %v5399_v8 = vpop.permute.xlu1 %856  ;;  %v5401_v9 = vpop.permute.xlu2 %854 }
 0x183   : > { %v837_v10 = vpop.permute.xlu0 %836 }
 0x18a   : > { %v5403_v11 = vpop.permute.xlu1 %4514  ;;  %v859_v12 = vpop.permute.xlu2 %858 }
 0x18b   : > { %v5405_v13 = vpop.permute.xlu0 %4494  ;;  %v4516_v14 = vunpack.i.l.bf16 %v5403_v11 }
 0x18c   : > { %v4496_v15 = vunpack.i.l.bf16 %v5405_v13 }
 0x18d   : > { %v4568_v16 = vpack.i.bf16 %v4516_v14, %v753_v52 }
 0x18e   : > { %v4563_v17 = vpack.i.bf16 %v5287_v33, %v4496_v15 }
 0x18f   : > { %4569 = vrot.lane.b32.xlu1 %v4568_v16, %s4955_s27  ;;  %v1016_v16 = vpop.f32.mrf.mxu3 }
 0x190   : > { %4564 = vrot.lane.b32.xlu0 %v4563_v17, %s4955_s27 }
 0x192   : > { %v5412_v18 = vpop.permute.xlu1 %4519  ;;  %v5414_v19 = vpop.permute.xlu2 %4539 }
 0x193   : > { %v5417_v21 = vpop.permute.xlu0 %4504  ;;  %v4522_v22 = vunpack.i.h.bf16 %v5412_v18  ;;  %v4541_v52 = vunpack.i.l.bf16 %v5414_v19 }
 0x194   : > { %v4506_v44 = vunpack.i.l.bf16 %v5417_v21 }
 0x195   : > { %v4573_v23 = vpack.i.bf16 %v4522_v22, %v4512_v20  ;;  %v5522_v22 = vmul.f32 0.35355338, %v1016_v16 }
 0x197   : > { %4574 = vrot.lane.b32.xlu2 %v4573_v23, %s4955_s27  ;;  %v1732_v23 = vsel %vm922_vm2, %v5522_v22, -inf }
 0x19a   : > { %v827_v24 = vpop.permute.xlu1 %826  ;;  %v831_v25 = vpop.permute.xlu2 %830 }
 0x19b   : > { %v771_v26 = vpop.permute.xlu0 %770  ;;  %4304 = vmatpush.xpose.msk.msra.mxu2 %vm922_vm2, %v827_v24  ;;  %v1064_v24 = vpop.f32.mrf.mxu3 }
 0x19e   : > { %4305 = vmatmul.msk.f32.vlgmr.msra.gmra.mxu2 %vm922_vm2, %v771_v26  ;;  %v5526_v26 = vmul.f32 0.35355338, %v1064_v24 }
 0x19f   : > { %4308 = vmatpush.xpose.msk.msrb.mxu2 %vm922_vm2, %v831_v25 }
 0x1a2   : > { %v843_v27 = vpop.permute.xlu1 %842  ;;  %v863_v31 = vpop.permute.xlu2 %862 }
 0x1a3   : > { %4312 = vmatpush.xpose.msk.msra.mxu2 %vm922_vm2, %v835_v7  ;;  %v787_v28 = vpop.permute.xlu0 %786 }
 0x1a6   : > { %4309 = vmatmul.msk.f32.vlgmr.msrb.gmra.mxu2 %vm922_vm2, %v5335_v49 }
 0x1a7   : > { %4320 = vmatpush.xpose.msk.msrb.mxu2 %vm922_vm2, %v843_v27 }
 0x1aa   : > { %v829_v29 = vpop.permute.xlu1 %828  ;;  %v833_v36 = vpop.permute.xlu2 %832 }
 0x1ab   : > { %v803_v30 = vpop.permute.xlu0 %802 }
 0x1ae   : > { %4313 = vmatmul.msk.f32.vlgmr.msra.gmra.mxu2 %vm922_vm2, %v5304_v37  ;;  %v968_v37 = vpop.f32.mrf.mxu1 }
 0x1af   : > { %4328 = vmatpush.xpose.msk.msra.mxu2 %vm922_vm2, %v5348_v54  ;;  %v5443_v42 = vmul.f32 0.35355338, %v968_v37 }
 0x1b1   : > { %v1726_v45 = vsel %vm922_vm2, %v5443_v42, -inf }
 0x1b2   : > { %v845_v33 = vpop.permute.xlu1 %844 }
 0x1b3   : > { %v825_v34 = vpop.permute.xlu0 %824 }
 0x1b4   : > { %4302 = vmatpush.xpose.msk.msra.mxu3 %vm922_vm2, %v825_v34 }
 0x1b6   : > { %4321 = vmatmul.msk.f32.vlgmr.msrb.gmra.mxu2 %vm922_vm2, %v787_v28  ;;  %v1738_v28 = vsel %vm922_vm2, %v5526_v26, -inf }
 0x1b7   : > { %4303 = vmatmul.msk.f32.vlgmr.msra.gmra.mxu3 %vm922_vm2, %v5362_v58  ;;  %4336 = vmatpush.xpose.msk.msrb.mxu2 %vm922_vm2, %v859_v12 }
 0x1b8   : > { %4306 = vmatpush.xpose.msk.msrb.mxu3 %vm922_vm2, %v829_v29 }
 0x1ba   : > { %1724 = vmax.xlane.f32.xlu0 %v1723_v38  ;;  %v4535_v39 = vpop.permute.xlu1 %4534 }
 0x1bb   : > { %v841_v41 = vpop.permute.xlu0 %840  ;;  %v4536_v54 = vunpack.i.l.bf16 %v4535_v39 }
 0x1bc   : > { %4310 = vmatpush.xpose.msk.msra.mxu3 %vm922_vm2, %v833_v36  ;;  %4318 = vmatpush.xpose.msk.msrb.mxu1 %vm922_vm2, %v841_v41 }
 0x1be   : > { %4329 = vmatmul.msk.f32.vlgmr.msra.gmra.mxu2 %vm922_vm2, %v5320_v43 }
 0x1bf   : > { %4307 = vmatmul.msk.f32.vlgmr.msrb.gmra.mxu3 %vm922_vm2, %v5329_v48  ;;  %4319 = vmatmul.msk.f32.vlgmr.msrb.gmra.mxu1 %vm922_vm2, %v5371_v61  ;;  %v4497_v61 = vunpack.i.h.bf16 %v5405_v13  ;;  %v4542_v13 = vunpack.i.h.bf16 %v5414_v19 }
 0x1c0   : > { %4314 = vmatpush.xpose.msk.msrb.mxu3 %vm922_vm2, %v837_v10  ;;  %2512 = vmatpush.msra.mxu2 %v4506_v44 }
 0x1c1   : > { %1727 = vmax.xlane.f32.xlu2 %v1726_v45 }
 0x1c2   : > { %v5456_v47 = vpop.permute.xlu1 %4544 }
 0x1c3   : > { %v5458_v49 = vpop.permute.xlu0 %4524 }
 0x1c6   : > { %4337 = vmatmul.msk.f32.vlgmr.msrb.gmra.mxu2 %vm922_vm2, %v803_v30  ;;  %v1112_v30 = vpop.f32.mrf.mxu3 }
 0x1c7   : > { %4311 = vmatmul.msk.f32.vlgmr.msra.gmra.mxu3 %vm922_vm2, %v5346_v53  ;;  %2616 = vmatpush.msrb.mxu2 %v4541_v52 }
 0x1c8   : > { %4322 = vmatpush.xpose.msk.msra.mxu3 %vm922_vm2, %v845_v33  ;;  %v4521_v33 = vunpack.i.l.bf16 %v5412_v18 }
 0x1ca   : > { %v847_v43 = vpop.permute.xlu1 %846 }
 0x1cb   : > { %v861_v48 = vpop.permute.xlu0 %860  ;;  %4324 = vmatpush.xpose.msk.msra.mxu0 %vm922_vm2, %v847_v43 }
 0x1ce   : > { %4325 = vmatmul.msk.f32.vlgmr.msra.gmra.mxu0 %vm922_vm2, %v5364_v59 }
 0x1cf   : > { %4332 = vmatpush.xpose.msk.msrb.mxu0 %vm922_vm2, %v5401_v9  ;;  %4315 = vmatmul.msk.f32.vlgmr.msrb.gmra.mxu3 %vm922_vm2, %v5313_v40  ;;  %v4502_v40 = vunpack.i.h.bf16 %v5394_v6  ;;  %v4537_v6 = vunpack.i.h.bf16 %v4535_v39  ;;  %v4507_v9 = vunpack.i.h.bf16 %v5417_v21 }
 0x1d0   : > { %4330 = vmatpush.xpose.msk.msrb.mxu3 %vm922_vm2, %v5389_v3 }
 0x1d1   : > { %v4583_v3 = vpack.i.bf16 %v4536_v54, %v4502_v40 }
 0x1d2   : > { %v849_v53 = vpop.permute.xlu1 %848 }
 0x1d3   : > { %4340 = vmatpush.xpose.msk.msra.mxu0 %vm922_vm2, %v863_v31  ;;  %v4530_v58 = vpop.permute.xlu0 %4529  ;;  %4326 = vmatpush.xpose.msk.msra.mxu1 %vm922_vm2, %v849_v53  ;;  %v5534_v31 = vmul.f32 0.35355338, %v1112_v30 }
 0x1d4   : > { %v4532_v2 = vunpack.i.h.bf16 %v4530_v58  ;;  %v4531_v4 = vunpack.i.l.bf16 %v4530_v58 }
 0x1d5   : > { %v1744_v34 = vsel %vm922_vm2, %v5534_v31, -inf }
 0x1d6   : > { %v4588_v59 = vpack.i.bf16 %v4501_v60, %v4532_v2  ;;  %v4578_v5 = vpack.i.bf16 %v4531_v4, %v4497_v61  ;;  %4327 = vmatmul.msk.f32.vlgmr.msra.gmra.mxu1 %vm922_vm2, %v5387_v1  ;;  %4333 = vmatmul.msk.f32.vlgmr.msrb.gmra.mxu0 %vm922_vm2, %v5360_v57  ;;  %v4511_v1 = vunpack.i.l.bf16 %v5383_v63  ;;  %v4517_v63 = vunpack.i.h.bf16 %v5403_v11 }
 0x1d7   : > { %4334 = vmatpush.xpose.msk.msrb.mxu1 %vm922_vm2, %v5399_v8  ;;  %4323 = vmatmul.msk.f32.vlgmr.msra.gmra.mxu3 %vm922_vm2, %v5339_v51  ;;  %v4555_v51 = vpop.permute.xlu2 %4554 }
 0x1d8   : > { %4338 = vmatpush.xpose.msk.msra.mxu3 %vm922_vm2, %v861_v48  ;;  %4589 = vrot.lane.b32.xlu0 %v4588_v59, %s4955_s27  ;;  %v4593_v10 = vpack.i.bf16 %v4511_v1, %v4537_v6  ;;  %v4556_v12 = vunpack.i.l.bf16 %v4555_v51  ;;  %v4557_v32 = vunpack.i.h.bf16 %v4555_v51 }
 0x1d9   : > { %4579 = vrot.lane.b32.xlu1 %v4578_v5, %s4955_s27  ;;  %4584 = vrot.lane.b32.xlu2 %v4583_v3, %s4955_s27 }
 0x1da   : > { %v865_v7 = vpop.permute.xlu1 %864  ;;  %v4598_v14 = vpack.i.bf16 %v4556_v12, %v4517_v63  ;;  %v4603_v36 = vpack.i.bf16 %v4521_v33, %v4557_v32 }
 0x1db   : > { %v4550_v8 = vpop.permute.xlu0 %4549  ;;  %4342 = vmatpush.xpose.msk.msra.mxu1 %vm922_vm2, %v865_v7 }
 0x1dc   : > { %v4551_v57 = vunpack.i.l.bf16 %v4550_v8  ;;  %v4552_v21 = vunpack.i.h.bf16 %v4550_v8 }
 0x1de   : > { %4335 = vmatmul.msk.f32.vlgmr.msrb.gmra.mxu1 %vm922_vm2, %v5385_v0  ;;  %4341 = vmatmul.msk.f32.vlgmr.msra.gmra.mxu0 %vm922_vm2, %v5373_v62  ;;  %v1040_v0 = vpop.f32.mrf.mxu2 }
 0x1df   : > { %4331 = vmatmul.msk.f32.vlgmr.msrb.gmra.mxu3 %vm922_vm2, %v5350_v55  ;;  %2590 = vmatpush.msrb.mxu1 %v4551_v57  ;;  %v992_v55 = vpop.f32.mrf.mxu1  ;;  %v5510_v15 = vmul.f32 0.35355338, %v1040_v0  ;;  %v5548_v45 = vpop.permute.xlu2 %4559 }
 0x1e0   : > { %2538 = vmatpush.msrb.mxu3 %v4507_v9  ;;  %4594 = vrot.lane.b32.xlu0 %v4593_v10, %s4955_s27  ;;  %v5508_v62 = vmul.f32 0.35355338, %v992_v55 }
 0x1e2   : > { %v1729_v17 = vsel %vm922_vm2, %v5508_v62, -inf }
 0x1e6   : > { %4343 = vmatmul.msk.f32.vlgmr.msra.gmra.mxu1 %vm922_vm2, %v5337_v50  ;;  %v1088_v25 = vpop.f32.mrf.mxu2 }
 0x1e7   : > { %4339 = vmatmul.msk.f32.vlgmr.msra.gmra.mxu3 %vm922_vm2, %v5327_v46  ;;  %v1735_v46 = vsel %vm922_vm2, %v5510_v15, -inf  ;;  %v5528_v27 = vmul.f32 0.35355338, %v1088_v25 }
 0x1e8   : > { %2642 = vmatpush.msra.mxu3 %v4542_v13  ;;  %4599 = vrot.lane.b32.xlu0 %v4598_v14, %s4955_s27 }
 0x1e9   : > { %v1741_v29 = vsel %vm922_vm2, %v5528_v27, -inf  ;;  %v1160_v41 = vpop.f32.mrf.mxu3 }
 0x1ea   : > { %v5544_v44 = vmul.f32 0.35355338, %v1160_v41 }
 0x1ec   : > { %v1750_v18 = vsel %vm922_vm2, %v5544_v44, -inf }
 0x1f1   : > { %v5551_v53 = vpop.permute.xlu2 %4574 }
 0x1fa   : > { %v1136_v37 = vpop.f32.mrf.mxu2 }
 0x1fb   : > { %v5540_v38 = vmul.f32 0.35355338, %v1136_v37 }
 0x1fd   : > { %v1747_v39 = vsel %vm922_vm2, %v5540_v38, -inf }
 0x201   : > { %v5512_v11 = vpop.permute.xlu1 %4569 }
 0x202   : > { %v4571_v50 = vunpack.i.l.bf16 %v5512_v11  ;;  %1730 = vmax.xlane.f32.xlu2 %v1729_v17  ;;  %v5517_v19 = vpop.permute.xlu0 %4564  ;;  %v1184_v8 = vpop.f32.mrf.mxu2 }
 0x203   : > { %v4567_v20 = vunpack.i.h.bf16 %v5517_v19  ;;  %1736 = vmax.xlane.f32.xlu1 %v1735_v46 }
 0x204   : > { %2694 = vmatpush.msra.mxu1 %v4571_v50 }
 0x205   : > { %2564 = vmatpush.msrb.mxu0 %v4567_v20 }
 0x207   : > { %2668 = vmatpush.msra.mxu0 %v4552_v21 }
 0x20a   : > { %1733 = vmax.xlane.f32.xlu2 %v1732_v23 }
 0x212   : > { %1739 = vmax.xlane.f32.xlu2 %v1738_v28  ;;  %1742 = vmax.xlane.f32.xlu0 %v1741_v29 }
 0x21a   : > { %1745 = vmax.xlane.f32.xlu0 %v1744_v34 }
 0x21c   : > { %4604 = vrot.lane.b32.xlu1 %v4603_v36, %s4955_s27 }
 0x221   : > { %v1232_v9 = vpop.f32.mrf.mxu2 }
 0x222   : > { %1748 = vmax.xlane.f32.xlu0 %v1747_v39 }
 0x229   : > { %v1280_v63 = vpop.f32.mrf.mxu2 }
 0x22a   : > { %1751 = vmax.xlane.f32.xlu0 %v1750_v18 }
 0x22d   : > { %v1725_v52 = vpop.xlane.xlu0 %1724 }
 0x22e   : > { %v1819_v43 = vsub.f32 %v5433_v35, %v1725_v52  ;;  %v1376_v35 = vpop.f32.mrf.mxu0 }
 0x22f   : > { %v5562_v5 = vmul.f32 0.35355338, %v1376_v35 }
 0x230   : > { %v1851_v48 = vmul.f32 1.442695, %v1819_v43 }
 0x231   : > { %v1777_v3 = vsel %vm922_vm2, %v5562_v5, -inf  ;;  %v1328_v24 = vpop.f32.mrf.mxu2 }
 0x232   : > { %4630 = vpow2.f32 %v1851_v48  ;;  %v5608_v48 = vmul.f32 0.35355338, %v1232_v9 }
 0x234   : > { %v1728_v61 = vpop.xlane.xlu2 %1727 }
 0x235   : > { %v1820_v4 = vsub.f32 %v5443_v42, %v1728_v61  ;;  %v5570_v42 = vmul.f32 0.35355338, %v1184_v8  ;;  %v1759_v61 = vsel %vm922_vm2, %v5608_v48, -inf }
 0x237   : > { %v1853_v59 = vmul.f32 1.442695, %v1820_v4  ;;  %v1753_v1 = vsel %vm922_vm2, %v5570_v42, -inf }
 0x238   : > { %v5557_v2 = vpop.eup %4630 }
 0x239   : > { %v1915_v40 = vsel %vm922_vm2, %v5557_v2, 0.0  ;;  %4632 = vpow2.f32 %v1853_v59  ;;  %v1424_v41 = vpop.f32.mrf.mxu2 }
 0x23a   : > { %v1208_v21 = vpop.f32.mrf.mxu3 }
 0x23b   : > { %v5595_v32 = vmul.f32 0.35355338, %v1208_v21  ;;  %v5637_v21 = vmul.f32 0.35355338, %v1328_v24 }
 0x23c   : > { %v1400_v54 = vpop.f32.mrf.mxu1  ;;  %v5576_v10 = vpop.permute.xlu2 %4584 }
 0x23d   : > { %v5553_v58 = vmul.f32 0.35355338, %v1400_v54  ;;  %v1756_v52 = vsel %vm922_vm2, %v5595_v32, -inf }
 0x23f   : > { %v1780_v60 = vsel %vm922_vm2, %v5553_v58, -inf  ;;  %v5566_v6 = vpop.eup %4632 }
 0x240   : > { %1781 = vmax.xlane.f32.xlu2 %v1780_v60  ;;  %v1918_v7 = vsel %vm922_vm2, %v5566_v6, 0.0 }
 0x242   : > { %v1256_v37 = vpop.f32.mrf.mxu3 }
 0x246   : > { %1916 = vadd.xlane.f32.xlu1 %v1915_v40 }
 0x24a   : > { %v5574_v57 = vpop.permute.xlu0 %4589  ;;  %v1304_v40 = vpop.f32.mrf.mxu3 }
 0x24b   : > { %v5578_v51 = vpop.permute.xlu1 %4579  ;;  %v1472_v17 = vpop.f32.mrf.mxu0  ;;  %v5650_v24 = vmul.f32 0.35355338, %v1304_v40 }
 0x24e   : > { %1778 = vmax.xlane.f32.xlu1 %v1777_v3  ;;  %v5622_v3 = vpop.f32.mrf.mxu2 }
 0x252   : > { %v5580_v12 = vpop.permute.xlu0 %4594 }
 0x253   : > { %v1568_v30 = vpop.f32.mrf.mxu0  ;;  %v1496_v35 = vpop.f32.mrf.mxu1 }
 0x254   : > { %v5626_v8 = vmul.f32 0.35355338, %v1496_v35 }
 0x256   : > { %1919 = vadd.xlane.f32.xlu1 %v1918_v7  ;;  %v5624_v7 = vmul.f32 0.35355338, %v1256_v37 }
 0x25a   : > { %v5584_v46 = vpop.permute.xlu0 %4599 }
 0x25e   : > { %1754 = vmax.xlane.f32.xlu1 %v1753_v1 }
 0x275   : > { %v1731_v13 = vpop.xlane.xlu2 %1730 }
 0x276   : > { %v1821_v14 = vsub.f32 %v5508_v62, %v1731_v13  ;;  %v1737_v55 = vpop.xlane.xlu1 %1736 }
 0x277   : > { %v1823_v0 = vsub.f32 %v5510_v15, %v1737_v55  ;;  %v1792_v55 = vsel %vm922_vm2, %v5626_v8, -inf }
 0x278   : > { %v1855_v16 = vmul.f32 1.442695, %v1821_v14  ;;  %v1762_v14 = vsel %vm922_vm2, %v5624_v7, -inf }
 0x279   : > { %v1859_v50 = vmul.f32 1.442695, %v1823_v0 }
 0x27a   : > { %4634 = vpow2.f32 %v1855_v16  ;;  %v1616_v16 = vpop.f32.mrf.mxu2 }
 0x27b   : > { %4636 = vpow2.f32 %v1859_v50  ;;  %v1352_v50 = vpop.f32.mrf.mxu3 }
 0x27d   : > { %v1734_v20 = vpop.xlane.xlu2 %1733 }
 0x27e   : > { %v1822_v23 = vsub.f32 %v5522_v22, %v1734_v20  ;;  %v5597_v22 = vmul.f32 0.35355338, %v1568_v30 }
 0x280   : > { %v5587_v25 = vpop.eup %4634  ;;  %v1857_v28 = vmul.f32 1.442695, %v1822_v23  ;;  %v1801_v43 = vsel %vm922_vm2, %v5597_v22, -inf  ;;  %v5639_v23 = vmul.f32 0.35355338, %v1472_v17 }
 0x281   : > { %v5589_v29 = vpop.eup %4636  ;;  %v1921_v62 = vsel %vm922_vm2, %v5587_v25, 0.0 }
 0x282   : > { %4638 = vpow2.f32 %v1857_v28  ;;  %v1927_v15 = vsel %vm922_vm2, %v5589_v29, 0.0  ;;  %1922 = vadd.xlane.f32.xlu1 %v1921_v62  ;;  %v5641_v28 = vmul.f32 0.35355338, %v1616_v16  ;;  %v1789_v30 = vsel %vm922_vm2, %v5639_v23, -inf }
 0x283   : > { %1928 = vadd.xlane.f32.xlu0 %v1927_v15 }
 0x284   : > { %v1807_v17 = vsel %vm922_vm2, %v5641_v28, -inf }
 0x285   : > { %v1743_v33 = vpop.xlane.xlu0 %1742  ;;  %v1740_v1 = vpop.xlane.xlu2 %1739 }
 0x286   : > { %v1825_v34 = vsub.f32 %v5528_v27, %v1743_v33  ;;  %v5610_v27 = vmul.f32 0.35355338, %v1280_v63  ;;  %v5628_v63 = vmul.f32 0.35355338, %v1424_v41  ;;  %v1824_v13 = vsub.f32 %v5526_v26, %v1740_v1 }
 0x287   : > { %v1771_v33 = vsel %vm922_vm2, %v5637_v21, -inf  ;;  %v1768_v41 = vsel %vm922_vm2, %v5650_v24, -inf }
 0x288   : > { %v5600_v36 = vpop.eup %4638  ;;  %v1863_v39 = vmul.f32 1.442695, %v1825_v34  ;;  %v1765_v4 = vsel %vm922_vm2, %v5610_v27, -inf  ;;  %v1783_v0 = vsel %vm922_vm2, %v5628_v63, -inf  ;;  %v1861_v20 = vmul.f32 1.442695, %v1824_v13 }
 0x289   : > { %v1924_v18 = vsel %vm922_vm2, %v5600_v36, 0.0  ;;  %v5674_v13 = vmul.f32 0.35355338, %v1352_v50 }
 0x28a   : > { %1925 = vadd.xlane.f32.xlu2 %v1924_v18  ;;  %1757 = vmax.xlane.f32.xlu1 %v1756_v52  ;;  %4640 = vpow2.f32 %v1863_v39  ;;  %v1592_v52 = vpop.f32.mrf.mxu1 }
 0x28b   : > { %1802 = vmax.xlane.f32.xlu0 %v1801_v43  ;;  %4642 = vpow2.f32 %v1861_v20  ;;  %v1664_v43 = vpop.f32.mrf.mxu0 }
 0x28d   : > { %v5612_v54 = vpop.xlane.xlu0 %1745 }
 0x28e   : > { %v5668_v35 = vpop.permute.xlu1 %4604 }
 0x290   : > { %v5614_v60 = vpop.eup %4640 }
 0x291   : > { %v1933_v59 = vsel %vm922_vm2, %v5614_v60, 0.0  ;;  %v5652_v34 = vpop.eup %4642 }
 0x292   : > { %1760 = vmax.xlane.f32.xlu1 %v1759_v61  ;;  %1766 = vmax.xlane.f32.xlu2 %v1765_v4  ;;  %v1930_v39 = vsel %vm922_vm2, %v5652_v34, 0.0  ;;  %v5662_v61 = vmul.f32 0.35355338, %v1592_v52  ;;  %v5664_v4 = vmul.f32 0.35355338, %v1664_v43 }
 0x293   : > { %1934 = vadd.xlane.f32.xlu0 %v1933_v59 }
 0x294   : > { %v1804_v59 = vsel %vm922_vm2, %v5662_v61, -inf  ;;  %v1813_v1 = vsel %vm922_vm2, %v5664_v4, -inf }
 0x295   : > { %v1749_v9 = vpop.xlane.xlu0 %1748 }
 0x29a   : > { %1763 = vmax.xlane.f32.xlu1 %v1762_v14  ;;  %1793 = vmax.xlane.f32.xlu2 %v1792_v55  ;;  %v1826_v55 = vsub.f32 %v5534_v31, %v5612_v54 }
 0x29b   : > { %1784 = vmax.xlane.f32.xlu0 %v1783_v0  ;;  %v1827_v0 = vsub.f32 %v5540_v38, %v1749_v9 }
 0x29c   : > { %v1865_v50 = vmul.f32 1.442695, %v1826_v55 }
 0x29d   : > { %v1752_v26 = vpop.xlane.xlu0 %1751 }
 0x29e   : > { %v1828_v62 = vsub.f32 %v5544_v44, %v1752_v26  ;;  %v1448_v44 = vpop.f32.mrf.mxu3  ;;  %v1774_v26 = vsel %vm922_vm2, %v5674_v13, -inf }
 0x29f   : > { %v5676_v14 = vmul.f32 0.35355338, %v1448_v44 }
 0x2a0   : > { %v1869_v15 = vmul.f32 1.442695, %v1828_v62  ;;  %v1688_v62 = vpop.f32.mrf.mxu1 }
 0x2a1   : > { %v1786_v20 = vsel %vm922_vm2, %v5676_v14, -inf }
 0x2a2   : > { %4644 = vpow2.f32 %v1869_v15  ;;  %1790 = vmax.xlane.f32.xlu1 %v1789_v30  ;;  %1772 = vmax.xlane.f32.xlu2 %v1771_v33  ;;  %v1867_v30 = vmul.f32 1.442695, %v1827_v0  ;;  %v5685_v33 = vmul.f32 0.35355338, %v1688_v62 }
 0x2a3   : > { %1808 = vmax.xlane.f32.xlu0 %v1807_v17 }
 0x2a6   : > { %v5666_v40 = vpop.f32.mrf.mxu3 }
 0x2a8   : > { %v5654_v37 = vpop.eup %4644 }
 0x2a9   : > { %v1942_v18 = vsel %vm922_vm2, %v5654_v37, 0.0 }
 0x2aa   : > { %1931 = vadd.xlane.f32.xlu1 %v1930_v39  ;;  %1769 = vmax.xlane.f32.xlu2 %v1768_v41  ;;  %v1816_v41 = vsel %vm922_vm2, %v5685_v33, -inf }
 0x2ab   : > { %1943 = vadd.xlane.f32.xlu0 %v1942_v18 }
 0x2ae   : > { %v1640_v15 = vpop.f32.mrf.mxu3 }
 0x2af   : > { %v5687_v17 = vmul.f32 0.35355338, %v1640_v15 }
 0x2b1   : > { %v1810_v39 = vsel %vm922_vm2, %v5687_v17, -inf }
 0x2b2   : > { %1805 = vmax.xlane.f32.xlu1 %v1804_v59  ;;  %1814 = vmax.xlane.f32.xlu2 %v1813_v1 }
 0x2b3   : > { %v1782_v31 = vpop.xlane.xlu2 %1781 }
 0x2b4   : > { %v1838_v54 = vsub.f32 %v5553_v58, %v1782_v31 }
 0x2b6   : > { %v1889_v52 = vmul.f32 1.442695, %v1838_v54  ;;  %v5705_v54 = vmul.f32 0.35355338, %v5622_v3 }
 0x2b9   : > { %v1917_v16 = vpop.xlane.xlu1 %1916 }
 0x2ba   : > { %4646 = vrcp.f32 %v1917_v16  ;;  %1787 = vmax.xlane.f32.xlu1 %v1786_v20  ;;  %1775 = vmax.xlane.f32.xlu2 %v1774_v26  ;;  %v2022_v43 = vand.u32 2147483648, %v1917_v16  ;;  %v2020_v55 = vand.u32 2147483647, %v1917_v16  ;;  %vm2016_vm4 = vweird.f32 %v1917_v16 }
 0x2bb   : > { %4648 = vpow2.f32 %v1865_v50 }
 0x2bc   : > { %4650 = vpow2.f32 %v1867_v30  ;;  %v2023_v20 = vor.u32 1.1754944e-38, %v2022_v43  ;;  %vm2021_vm6 = vcmp.eq.f32.partialorder %v2020_v55, 8.507059e+37 }
 0x2bd   : > { %4652 = vpow2.f32 %v1889_v52 }
 0x2c0   : > { %v4647_v38 = vpop.eup %4646 }
 0x2c1   : > { %v2012_v9 = vmul.f32 %v4647_v38, %v1917_v16  ;;  %v1779_v44 = vpop.xlane.xlu1 %1778  ;;  %v5694_v59 = vpop.eup %4648  ;;  %vm2017_vm3 = vweird.f32 %v4647_v38  ;;  %v4566_v16 = vunpack.i.l.bf16 %v5517_v19 }
 0x2c2   : > { %1811 = vmax.xlane.f32.xlu1 %v1810_v39  ;;  %1817 = vmax.xlane.f32.xlu2 %v1816_v41  ;;  %v5696_v0 = vpop.eup %4650  ;;  %vm2018_vm5 = vmor %vm2016_vm4, %vm2017_vm3  ;;  %v1936_v50 = vsel %vm922_vm2, %v5694_v59, 0.0  ;;  %v1837_v39 = vsub.f32 %v5562_v5, %v1779_v44 }
 0x2c3   : > { %v2013_v18 = vsub.f32 1.0, %v2012_v9  ;;  %v1939_v15 = vsel %vm922_vm2, %v5696_v0, 0.0 }
 0x2c4   : > { %v1887_v43 = vmul.f32 1.442695, %v1837_v39 }
 0x2c5   : > { %v2014_v1 = vmul.f32 %v4647_v38, %v2013_v18 }
 0x2c7   : > { %v2015_v58 = vadd.f32 %v4647_v38, %v2014_v1 }
 0x2c9   : > { %v2019_v26 = vsel %vm2018_vm5, %v4647_v38, %v2015_v58  ;;  %v1920_v62 = vpop.xlane.xlu1 %1919  ;;  %v5708_v38 = vpop.eup %4652  ;;  %v5717_v58 = vmul.f32 0.35355338, %v5666_v40 }
 0x2ca   : > { %v2024_v30 = vsel %vm2021_vm6, %v2023_v20, %v2019_v26  ;;  %4654 = vrcp.f32 %v1920_v62  ;;  %1940 = vadd.xlane.f32.xlu1 %v1939_v15  ;;  %1937 = vadd.xlane.f32.xlu2 %v1936_v50  ;;  %6561 = vst [vmem:[#allocation15_spill] sm:$0xff] %v5708_v38  ;;  %v1972_v52 = vsel %vm922_vm2, %v5708_v38, 0.0  ;;  %v2036_v1 = vand.u32 2147483648, %v1920_v62 }
 0x2cb   : > { %v2459_v31 = vmul.f32 %v5557_v2, %v2024_v30  ;;  %v1795_v2 = vsel %vm922_vm2, %v5705_v54, -inf  ;;  %v2034_v44 = vand.u32 2147483647, %v1920_v62  ;;  %vm2030_vm8 = vweird.f32 %v1920_v62 }
 0x2cc   : > { %v2037_v26 = vor.u32 1.1754944e-38, %v2036_v1 }
 0x2cd   : > { %4344 = vmatmul.msk.f32.vlgmr.msra.gmra.mxu2 %vm922_vm2, %v2459_v31  ;;  %vm2035_vm10 = vcmp.eq.f32.partialorder %v2034_v44, 8.507059e+37  ;;  %v4581_v31 = vunpack.i.l.bf16 %v5578_v51 }
 0x2ce   : > { %2720 = vmatpush.msra.mxu2 %v4566_v16 }
 0x2d0   : > { %v4655_v9 = vpop.eup %4654 }
 0x2d1   : > { %v2026_v41 = vmul.f32 %v4655_v9, %v1920_v62  ;;  %v1755_v18 = vpop.xlane.xlu1 %1754  ;;  %vm2031_vm7 = vweird.f32 %v4655_v9 }
 0x2d2   : > { %v1829_v19 = vsub.f32 %v5570_v42, %v1755_v18  ;;  %1973 = vadd.xlane.f32.xlu1 %v1972_v52  ;;  %1796 = vmax.xlane.f32.xlu2 %v1795_v2  ;;  %vm2032_vm9 = vmor %vm2030_vm8, %vm2031_vm7  ;;  %v1798_v42 = vsel %vm922_vm2, %v5717_v58, -inf }
 0x2d3   : > { %v2027_v3 = vsub.f32 1.0, %v2026_v41 }
 0x2d4   : > { %v1871_v55 = vmul.f32 1.442695, %v1829_v19 }
 0x2d5   : > { %v2028_v5 = vmul.f32 %v4655_v9, %v2027_v3 }
 0x2d6   : > { %4656 = vpow2.f32 %v1871_v55 }
 0x2d7   : > { %v2029_v20 = vadd.f32 %v4655_v9, %v2028_v5  ;;  %4658 = vpow2.f32 %v1887_v43 }
 0x2d9   : > { %v2033_v15 = vsel %vm2032_vm9, %v4655_v9, %v2029_v20 }
 0x2da   : > { %v2038_v50 = vsel %vm2035_vm10, %v2037_v26, %v2033_v15  ;;  %1799 = vmax.xlane.f32.xlu2 %v1798_v42 }
 0x2db   : > { %v2460_v30 = vmul.f32 %v5566_v6, %v2038_v50 }
 0x2dc   : > { %v5722_v40 = vpop.eup %4656 }
 0x2dd   : > { %4345 = vmatmul.msk.f32.vlgmr.msrb.gmra.mxu3 %vm922_vm2, %v2460_v30  ;;  %v1945_v62 = vsel %vm922_vm2, %v5722_v40, 0.0  ;;  %v5728_v16 = vpop.eup %4658 }
 0x2de   : > { %6562 = vst [vmem:[#allocation16_spill] sm:$0xff] %v5728_v16  ;;  %2746 = vmatpush.msrb.mxu3 %v4581_v31  ;;  %1946 = vadd.xlane.f32.xlu0 %v1945_v62  ;;  %v1969_v9 = vsel %vm922_vm2, %v5728_v16, 0.0 }
 0x2e2   : > { %1970 = vadd.xlane.f32.xlu2 %v1969_v9 }
 0x2f5   : > { %v1923_v39 = vpop.xlane.xlu1 %1922 }
 0x2f6   : > { %v1929_v41 = vpop.xlane.xlu0 %1928  ;;  %4660 = vrcp.f32 %v1923_v39  ;;  %v2050_v5 = vand.u32 2147483648, %v1923_v39  ;;  %v2048_v15 = vand.u32 2147483647, %v1923_v39  ;;  %vm2044_vm13 = vweird.f32 %v1923_v39 }
 0x2f7   : > { %4662 = vrcp.f32 %v1929_v41  ;;  %v2078_v20 = vand.u32 2147483648, %v1929_v41  ;;  %v2076_v50 = vand.u32 2147483647, %v1929_v41  ;;  %vm2072_vm14 = vweird.f32 %v1929_v41 }
 0x2f8   : > { %v2051_v38 = vor.u32 1.1754944e-38, %v2050_v5  ;;  %vm2049_vm3 = vcmp.eq.f32.partialorder %v2048_v15, 8.507059e+37 }
 0x2f9   : > { %vm2077_vm4 = vcmp.eq.f32.partialorder %v2076_v50, 8.507059e+37 }
 0x2fc   : > { %v4661_v6 = vpop.eup %4660 }
 0x2fd   : > { %v4663_v18 = vpop.eup %4662  ;;  %v2040_v52 = vmul.f32 %v4661_v6, %v1923_v39  ;;  %v5732_v2 = vpop.xlane.xlu2 %1925  ;;  %vm2045_vm11 = vweird.f32 %v4661_v6 }
 0x2fe   : > { %v1758_v19 = vpop.xlane.xlu1 %1757  ;;  %v2068_v3 = vmul.f32 %v4663_v18, %v1929_v41  ;;  %4664 = vrcp.f32 %v5732_v2  ;;  %v5735_v43 = vpop.xlane.xlu0 %1802  ;;  %vm2073_vm12 = vweird.f32 %v4663_v18  ;;  %vm2046_vm15 = vmor %vm2044_vm13, %vm2045_vm11  ;;  %v4572_v41 = vunpack.i.h.bf16 %v5512_v11 }
 0x2ff   : > { %v2041_v1 = vsub.f32 1.0, %v2040_v52  ;;  %v1830_v44 = vsub.f32 %v5595_v32, %v1758_v19  ;;  %vm2074_vm0 = vmor %vm2072_vm14, %vm2073_vm12  ;;  %v2079_v52 = vor.u32 1.1754944e-38, %v2078_v20  ;;  %v2064_v5 = vand.u32 2147483648, %v5732_v2 }
 0x300   : > { %v2069_v55 = vsub.f32 1.0, %v2068_v3  ;;  %vm2058_vm6 = vweird.f32 %v5732_v2 }
 0x301   : > { %v2042_v26 = vmul.f32 %v4661_v6, %v2041_v1  ;;  %v1873_v30 = vmul.f32 1.442695, %v1830_v44 }
 0x302   : > { %v2070_v42 = vmul.f32 %v4663_v18, %v2069_v55 }
 0x303   : > { %v2043_v31 = vadd.f32 %v4661_v6, %v2042_v26  ;;  %4666 = vpow2.f32 %v1873_v30  ;;  %v2062_v30 = vand.u32 2147483647, %v5732_v2 }
 0x304   : > { %v4665_v62 = vpop.eup %4664  ;;  %v2071_v9 = vadd.f32 %v4663_v18, %v2070_v42 }
 0x305   : > { %v2047_v3 = vsel %vm2046_vm15, %v4661_v6, %v2043_v31  ;;  %v2054_v32 = vmul.f32 %v4665_v62, %v5732_v2  ;;  %v1767_v1 = vpop.xlane.xlu2 %1766  ;;  %vm2059_vm5 = vweird.f32 %v4665_v62  ;;  %vm2063_vm8 = vcmp.eq.f32.partialorder %v2062_v30, 8.507059e+37 }
 0x306   : > { %v1761_v19 = vpop.xlane.xlu1 %1760  ;;  %v2075_v55 = vsel %vm2074_vm0, %v4663_v18, %v2071_v9  ;;  %v2052_v16 = vsel %vm2049_vm3, %v2051_v38, %v2047_v3  ;;  %v1935_v44 = vpop.xlane.xlu0 %1934  ;;  %vm2060_vm7 = vmor %vm2058_vm6, %vm2059_vm5 }
 0x307   : > { %v1831_v39 = vsub.f32 %v5608_v48, %v1761_v19  ;;  %v2080_v26 = vsel %vm2077_vm4, %v2079_v52, %v2075_v55  ;;  %v2055_v42 = vsub.f32 1.0, %v2054_v32  ;;  %4668 = vrcp.f32 %v1935_v44 }
 0x308   : > { %v2461_v6 = vmul.f32 %v5587_v25, %v2052_v16  ;;  %v2463_v18 = vmul.f32 %v5589_v29, %v2080_v26  ;;  %v4582_v48 = vunpack.i.h.bf16 %v5578_v51  ;;  %v2065_v25 = vor.u32 1.1754944e-38, %v2064_v5 }
 0x309   : > { %v1875_v20 = vmul.f32 1.442695, %v1831_v39  ;;  %v2056_v15 = vmul.f32 %v4665_v62, %v2055_v42  ;;  %v5745_v38 = vpop.eup %4666  ;;  %v4601_v55 = vunpack.i.l.bf16 %v5584_v46  ;;  %v1833_v26 = vsub.f32 %v5610_v27, %v1767_v1 }
 0x30a   : > { %4346 = vmatmul.msk.f32.vlgmr.msrb.gmra.mxu0 %vm922_vm2, %v2461_v6  ;;  %4348 = vmatmul.msk.f32.vlgmr.msrb.gmra.mxu2 %vm922_vm2, %v2463_v18  ;;  %v1948_v11 = vsel %vm922_vm2, %v5745_v38, 0.0  ;;  %vm2100_vm10 = vweird.f32 %v1935_v44  ;;  %v1845_v6 = vsub.f32 %v5597_v22, %v5735_v43  ;;  %v4602_v22 = vunpack.i.h.bf16 %v5584_v46 }
 0x30b   : > { %4670 = vpow2.f32 %v1875_v20  ;;  %v2057_v50 = vadd.f32 %v4665_v62, %v2056_v15  ;;  %2772 = vmatpush.msrb.mxu0 %v4572_v41  ;;  %2824 = vmatpush.msrb.mxu2 %v4582_v48  ;;  %v1879_v20 = vmul.f32 1.442695, %v1833_v26 }
 0x30c   : > { %1949 = vadd.xlane.f32.xlu2 %v1948_v11  ;;  %v1903_v43 = vmul.f32 1.442695, %v1845_v6 }
 0x30d   : > { %v4669_v29 = vpop.eup %4668  ;;  %v2061_v16 = vsel %vm2060_vm7, %v4665_v62, %v2057_v50  ;;  %v1794_v31 = vpop.xlane.xlu2 %1793  ;;  %v2106_v62 = vand.u32 2147483648, %v1935_v44 }
 0x30e   : > { %v1764_v51 = vpop.xlane.xlu1 %1763  ;;  %v2066_v9 = vsel %vm2063_vm8, %v2065_v25, %v2061_v16  ;;  %v2096_v52 = vmul.f32 %v4669_v29, %v1935_v44  ;;  %v5754_v2 = vpop.xlane.xlu0 %1784  ;;  %vm2101_vm9 = vweird.f32 %v4669_v29 }
 0x30f   : > { %v1832_v3 = vsub.f32 %v5624_v7, %v1764_v51  ;;  %v2462_v32 = vmul.f32 %v5600_v36, %v2066_v9  ;;  %v2104_v7 = vand.u32 2147483647, %v1935_v44  ;;  %vm2102_vm11 = vmor %vm2100_vm10, %vm2101_vm9  ;;  %v2107_v27 = vor.u32 1.1754944e-38, %v2106_v62 }
 0x310   : > { %v2097_v39 = vsub.f32 1.0, %v2096_v52  ;;  %v1842_v44 = vsub.f32 %v5626_v8, %v1794_v31 }
 0x311   : > { %v5757_v19 = vpop.eup %4670  ;;  %v1877_v42 = vmul.f32 1.442695, %v1832_v3  ;;  %4347 = vmatmul.msk.f32.vlgmr.msrb.gmra.mxu1 %vm922_vm2, %v2462_v32  ;;  %vm2105_vm12 = vcmp.eq.f32.partialorder %v2104_v7, 8.507059e+37 }
 0x312   : > { %v1951_v41 = vsel %vm922_vm2, %v5757_v19, 0.0  ;;  %v2098_v5 = vmul.f32 %v4669_v29, %v2097_v39  ;;  %2798 = vmatpush.msrb.mxu1 %v4601_v55 }
 0x313   : > { %4672 = vpow2.f32 %v1877_v42 }
 0x314   : > { %v2099_v36 = vadd.f32 %v4669_v29, %v2098_v5  ;;  %1952 = vadd.xlane.f32.xlu2 %v1951_v41  ;;  %4674 = vpow2.f32 %v1879_v20 }
 0x315   : > { %v1773_v15 = vpop.xlane.xlu2 %1772 }
 0x316   : > { %v1791_v1 = vpop.xlane.xlu1 %1790  ;;  %v2103_v30 = vsel %vm2102_vm11, %v4669_v29, %v2099_v36  ;;  %v5767_v48 = vpop.xlane.xlu0 %1808  ;;  %v1835_v31 = vsub.f32 %v5637_v21, %v1773_v15 }
 0x317   : > { %v1841_v18 = vsub.f32 %v5639_v23, %v1791_v1  ;;  %v2108_v50 = vsel %vm2105_vm12, %v2107_v27, %v2103_v30  ;;  %v1897_v23 = vmul.f32 1.442695, %v1842_v44 }
 0x318   : > { %v2465_v16 = vmul.f32 %v5614_v60, %v2108_v50  ;;  %v1883_v26 = vmul.f32 1.442695, %v1835_v31 }
 0x319   : > { %v5769_v11 = vpop.eup %4672  ;;  %v1895_v25 = vmul.f32 1.442695, %v1841_v18 }
 0x31a   : > { %v1954_v29 = vsel %vm922_vm2, %v5769_v11, 0.0  ;;  %4350 = vmatmul.msk.f32.vlgmr.msra.gmra.mxu0 %vm922_vm2, %v2465_v16  ;;  %v5777_v52 = vpop.eup %4674 }
 0x31b   : > { %4676 = vpow2.f32 %v1895_v25  ;;  %1955 = vadd.xlane.f32.xlu0 %v1954_v29  ;;  %2876 = vmatpush.msra.mxu0 %v4602_v22  ;;  %v1957_v55 = vsel %vm922_vm2, %v5777_v52, 0.0 }
 0x31c   : > { %4678 = vpow2.f32 %v1903_v43 }
 0x31d   : > { %v1770_v9 = vpop.xlane.xlu2 %1769 }
 0x31e   : > { %v1932_v51 = vpop.xlane.xlu1 %1931  ;;  %v5779_v8 = vpop.xlane.xlu0 %1943  ;;  %v1834_v46 = vsub.f32 %v5650_v24, %v1770_v9 }
 0x31f   : > { %4680 = vrcp.f32 %v1932_v51  ;;  %v2092_v20 = vand.u32 2147483648, %v1932_v51  ;;  %v2090_v30 = vand.u32 2147483647, %v1932_v51  ;;  %vm2086_vm14 = vweird.f32 %v1932_v51 }
 0x320   : > { %4682 = vrcp.f32 %v5779_v8  ;;  %v1881_v3 = vmul.f32 1.442695, %v1834_v46  ;;  %v2148_v31 = vand.u32 2147483648, %v5779_v8  ;;  %vm2142_vm4 = vweird.f32 %v5779_v8 }
 0x321   : > { %v5783_v60 = vpop.eup %4676  ;;  %4684 = vpow2.f32 %v1897_v23  ;;  %v2093_v16 = vor.u32 1.1754944e-38, %v2092_v20  ;;  %vm2091_vm0 = vcmp.eq.f32.partialorder %v2090_v30, 8.507059e+37 }
 0x322   : > { %v1981_v32 = vsel %vm922_vm2, %v5783_v60, 0.0  ;;  %v5790_v39 = vpop.eup %4678  ;;  %4686 = vpow2.f32 %v1881_v3 }
 0x323   : > { %1982 = vadd.xlane.f32.xlu2 %v1981_v32  ;;  %1958 = vadd.xlane.f32.xlu0 %v1957_v55  ;;  %4688 = vpow2.f32 %v1883_v26  ;;  %v1993_v27 = vsel %vm922_vm2, %v5790_v39, 0.0 }
 0x325   : > { %v4681_v24 = vpop.eup %4680  ;;  %v5792_v5 = vpop.xlane.xlu2 %1814 }
 0x326   : > { %v4683_v42 = vpop.eup %4682  ;;  %v2082_v62 = vmul.f32 %v4681_v24, %v1932_v51  ;;  %v1806_v41 = vpop.xlane.xlu1 %1805  ;;  %vm2087_vm13 = vweird.f32 %v4681_v24  ;;  %v2146_v51 = vand.u32 2147483647, %v5779_v8 }
 0x327   : > { %v5794_v21 = vpop.eup %4684  ;;  %v2138_v7 = vmul.f32 %v4683_v42, %v5779_v8  ;;  %vm2088_vm15 = vmor %vm2086_vm14, %vm2087_vm13  ;;  %vm2143_vm3 = vweird.f32 %v4683_v42  ;;  %v1846_v26 = vsub.f32 %v5662_v61, %v1806_v41 }
 0x328   : > { %v2083_v36 = vsub.f32 1.0, %v2082_v62  ;;  %v5799_v1 = vpop.eup %4686  ;;  %v1984_v18 = vsel %vm922_vm2, %v5794_v21, 0.0  ;;  %vm2144_vm5 = vmor %vm2142_vm4, %vm2143_vm3  ;;  %vm2147_vm6 = vcmp.eq.f32.partialorder %v2146_v51, 8.507059e+37 }
 0x329   : > { %v2139_v6 = vsub.f32 1.0, %v2138_v7  ;;  %v1960_v44 = vsel %vm922_vm2, %v5799_v1, 0.0  ;;  %v5805_v9 = vpop.eup %4688  ;;  %v1905_v8 = vmul.f32 1.442695, %v1846_v26 }
 0x32a   : > { %v2084_v15 = vmul.f32 %v4681_v24, %v2083_v36  ;;  %1961 = vadd.xlane.f32.xlu1 %v1960_v44  ;;  %v1839_v36 = vsub.f32 %v5628_v63, %v5754_v2 }
 0x32b   : > { %v2140_v50 = vmul.f32 %v4683_v42, %v2139_v6  ;;  %1994 = vadd.xlane.f32.xlu2 %v1993_v27  ;;  %1985 = vadd.xlane.f32.xlu0 %v1984_v18 }
 0x32c   : > { %v2085_v25 = vadd.f32 %v4681_v24, %v2084_v15  ;;  %v1891_v61 = vmul.f32 1.442695, %v1839_v36  ;;  %v1847_v15 = vsub.f32 %v5641_v28, %v5767_v48 }
 0x32d   : > { %v2141_v43 = vadd.f32 %v4683_v42, %v2140_v50  ;;  %v1776_v23 = vpop.xlane.xlu2 %1775 }
 0x32e   : > { %v2089_v22 = vsel %vm2088_vm15, %v4681_v24, %v2085_v25  ;;  %v1788_v29 = vpop.xlane.xlu1 %1787  ;;  %v1836_v32 = vsub.f32 %v5674_v13, %v1776_v23  ;;  %v4591_v24 = vunpack.i.l.bf16 %v5574_v57  ;;  %v1963_v13 = vsel %vm922_vm2, %v5805_v9, 0.0 }
 0x32f   : > { %v2094_v46 = vsel %vm2091_vm0, %v2093_v16, %v2089_v22  ;;  %v1840_v3 = vsub.f32 %v5676_v14, %v1788_v29  ;;  %v2145_v20 = vsel %vm2144_vm5, %v4683_v42, %v2141_v43  ;;  %v2149_v14 = vor.u32 1.1754944e-38, %v2148_v31 }
 0x330   : > { %v2464_v55 = vmul.f32 %v5652_v34, %v2094_v46  ;;  %v1885_v7 = vmul.f32 1.442695, %v1836_v32  ;;  %v4586_v42 = vunpack.i.l.bf16 %v5576_v10  ;;  %v1907_v18 = vmul.f32 1.442695, %v1847_v15 }
 0x331   : > { %v1893_v62 = vmul.f32 1.442695, %v1840_v3  ;;  %v2150_v34 = vsel %vm2147_vm6, %v2149_v14, %v2145_v20 }
 0x332   : > { %4349 = vmatmul.msk.f32.vlgmr.msra.gmra.mxu3 %vm922_vm2, %v2464_v55  ;;  %v2468_v63 = vmul.f32 %v5654_v37, %v2150_v34 }
 0x333   : > { %4690 = vpow2.f32 %v1893_v62  ;;  %2850 = vmatpush.msra.mxu3 %v4591_v24  ;;  %1964 = vadd.xlane.f32.xlu0 %v1963_v13 }
 0x334   : > { %4692 = vpow2.f32 %v1885_v7 }
 0x335   : > { %v5822_v6 = vpop.xlane.xlu2 %1817  ;;  %4694 = vpow2.f32 %v1905_v8 }
 0x336   : > { %v5820_v41 = vpop.xlane.xlu1 %1811  ;;  %4696 = vpow2.f32 %v1891_v61 }
 0x339   : > { %v5825_v2 = vpop.eup %4690 }
 0x33a   : > { %v5828_v27 = vpop.eup %4692  ;;  %4353 = vmatmul.msk.f32.vlgmr.msrb.gmra.mxu3 %vm922_vm2, %v2468_v63  ;;  %v1978_v30 = vsel %vm922_vm2, %v5825_v2, 0.0 }
 0x33b   : > { %2954 = vmatpush.msrb.mxu3 %v4586_v42  ;;  %1979 = vadd.xlane.f32.xlu1 %v1978_v30  ;;  %v1966_v37 = vsel %vm922_vm2, %v5828_v27, 0.0  ;;  %v5837_v25 = vpop.eup %4694 }
 0x33c   : > { %1967 = vadd.xlane.f32.xlu2 %v1966_v37  ;;  %v5839_v16 = vpop.eup %4696  ;;  %v1996_v28 = vsel %vm922_vm2, %v5837_v25, 0.0 }
 0x33d   : > { %v1938_v44 = vpop.xlane.xlu2 %1937  ;;  %v1975_v48 = vsel %vm922_vm2, %v5839_v16, 0.0 }
 0x33e   : > { %v1941_v50 = vpop.xlane.xlu1 %1940  ;;  %v2120_v62 = vand.u32 2147483648, %v1938_v44  ;;  %v2118_v20 = vand.u32 2147483647, %v1938_v44  ;;  %vm2114_vm11 = vweird.f32 %v1938_v44 }
 0x33f   : > { %4698 = vrcp.f32 %v1941_v50  ;;  %v2132_v51 = vand.u32 2147483647, %v1941_v50  ;;  %v2134_v55 = vand.u32 2147483648, %v1941_v50  ;;  %vm2128_vm9 = vweird.f32 %v1941_v50 }
 0x340   : > { %4700 = vrcp.f32 %v1938_v44  ;;  %v2121_v61 = vor.u32 1.1754944e-38, %v2120_v62  ;;  %vm2119_vm14 = vcmp.eq.f32.partialorder %v2118_v20, 8.507059e+37 }
 0x341   : > { %4702 = vpow2.f32 %v1907_v18  ;;  %v2135_v34 = vor.u32 1.1754944e-38, %v2134_v55  ;;  %vm2133_vm12 = vcmp.eq.f32.partialorder %v2132_v51, 8.507059e+37 }
 0x343   : > { %1997 = vadd.xlane.f32.xlu1 %v1996_v28 }
 0x344   : > { %1976 = vadd.xlane.f32.xlu2 %v1975_v48 }
 0x345   : > { %v4699_v22 = vpop.eup %4698  ;;  %v1797_v23 = vpop.xlane.xlu2 %1796 }
 0x346   : > { %v4701_v43 = vpop.eup %4700  ;;  %v2124_v29 = vmul.f32 %v4699_v22, %v1941_v50  ;;  %v1843_v32 = vsub.f32 %v5705_v54, %v1797_v23  ;;  %vm2129_vm7 = vweird.f32 %v4699_v22  ;;  %v4592_v50 = vunpack.i.h.bf16 %v5574_v57 }
 0x347   : > { %v2110_v46 = vmul.f32 %v4701_v43, %v1938_v44  ;;  %v5845_v31 = vpop.eup %4702  ;;  %vm2115_vm8 = vweird.f32 %v4701_v43  ;;  %vm2130_vm10 = vmor %vm2128_vm9, %vm2129_vm7  ;;  %v4606_v44 = vunpack.i.l.bf16 %v5668_v35 }
 0x348   : > { %v2125_v3 = vsub.f32 1.0, %v2124_v29  ;;  %v1899_v7 = vmul.f32 1.442695, %v1843_v32  ;;  %v1999_v13 = vsel %vm922_vm2, %v5845_v31, 0.0  ;;  %vm2116_vm13 = vmor %vm2114_vm11, %vm2115_vm8 }
 0x349   : > { %v2111_v24 = vsub.f32 1.0, %v2110_v46 }
 0x34a   : > { %v2126_v26 = vmul.f32 %v4699_v22, %v2125_v3  ;;  %4704 = vpow2.f32 %v1899_v7  ;;  %v1849_v7 = vsub.f32 %v5664_v4, %v5792_v5 }
 0x34b   : > { %v2112_v36 = vmul.f32 %v4701_v43, %v2111_v24 }
 0x34c   : > { %v2127_v14 = vadd.f32 %v4699_v22, %v2126_v26  ;;  %2000 = vadd.xlane.f32.xlu2 %v1999_v13 }
 0x34d   : > { %v2113_v54 = vadd.f32 %v4701_v43, %v2112_v36  ;;  %v1800_v63 = vpop.xlane.xlu2 %1799  ;;  %v1911_v36 = vmul.f32 1.442695, %v1849_v7 }
 0x34e   : > { %v2131_v8 = vsel %vm2130_vm10, %v4699_v22, %v2127_v14  ;;  %v1844_v30 = vsub.f32 %v5717_v58, %v1800_v63 }
 0x34f   : > { %v2136_v42 = vsel %vm2133_vm12, %v2135_v34, %v2131_v8  ;;  %v2117_v15 = vsel %vm2116_vm13, %v4701_v43, %v2113_v54 }
 0x350   : > { %v2122_v37 = vsel %vm2119_vm14, %v2121_v61, %v2117_v15  ;;  %v2467_v18 = vmul.f32 %v5696_v0, %v2136_v42  ;;  %v1901_v28 = vmul.f32 1.442695, %v1844_v30  ;;  %v5854_v29 = vpop.eup %4704 }
 0x351   : > { %v2466_v48 = vmul.f32 %v5694_v59, %v2122_v37  ;;  %v1947_v22 = vpop.xlane.xlu0 %1946  ;;  %v1987_v0 = vsel %vm922_vm2, %v5854_v29, 0.0 }
 0x352   : > { %4352 = vmatmul.msk.f32.vlgmr.msra.gmra.mxu2 %vm922_vm2, %v2467_v18  ;;  %4706 = vpow2.f32 %v1901_v28  ;;  %1988 = vadd.xlane.f32.xlu0 %v1987_v0  ;;  %v2162_v46 = vand.u32 2147483648, %v1947_v22  ;;  %v2160_v32 = vand.u32 2147483647, %v1947_v22  ;;  %vm2156_vm0 = vweird.f32 %v1947_v22 }
 0x353   : > { %4351 = vmatmul.msk.f32.vlgmr.msra.gmra.mxu1 %vm922_vm2, %v2466_v48  ;;  %2928 = vmatpush.msra.mxu2 %v4592_v50  ;;  %4708 = vrcp.f32 %v1947_v22  ;;  %v1848_v18 = vsub.f32 %v5687_v17, %v5820_v41 }
 0x354   : > { %2902 = vmatpush.msra.mxu1 %v4606_v44  ;;  %v2163_v55 = vor.u32 1.1754944e-38, %v2162_v46  ;;  %vm2161_vm4 = vcmp.eq.f32.partialorder %v2160_v32, 8.507059e+37  ;;  %4710 = vpow2.f32 %v1911_v36  ;;  %v4577_v44 = vunpack.i.h.bf16 %v5551_v53  ;;  %v5896_v46 = vpop.xlane.xlu1 %1973 }
 0x355   : > { %v5876_v20 = vpop.xlane.xlu2 %1970 }
 0x358   : > { %v5861_v57 = vpop.eup %4706 }
 0x359   : > { %v4709_v59 = vpop.eup %4708  ;;  %v1990_v58 = vsel %vm922_vm2, %v5861_v57, 0.0 }
 0x35a   : > { %v2152_v43 = vmul.f32 %v4709_v59, %v1947_v22  ;;  %1991 = vadd.xlane.f32.xlu0 %v1990_v58  ;;  %vm2157_vm15 = vweird.f32 %v4709_v59  ;;  %v5882_v13 = vpop.eup %4710 }
 0x35b   : > { %vm2158_vm3 = vmor %vm2156_vm0, %vm2157_vm15 }
 0x35c   : > { %4619 = vrot.lane.b32.xlu1 %v5458_v49, %s4955_s27  ;;  %v2153_v23 = vsub.f32 1.0, %v2152_v43  ;;  %v4607_v49 = vunpack.i.h.bf16 %v5668_v35  ;;  %v1909_v43 = vmul.f32 1.442695, %v1848_v18 }
 0x35e   : > { %v2154_v3 = vmul.f32 %v4709_v59, %v2153_v23 }
 0x360   : > { %v2155_v51 = vadd.f32 %v4709_v59, %v2154_v3 }
 0x362   : > { %v2159_v24 = vsel %vm2158_vm3, %v4709_v59, %v2155_v51 }
 0x363   : > { %v2164_v26 = vsel %vm2161_vm4, %v2163_v55, %v2159_v24 }
 0x364   : > { %4624 = vrot.lane.b32.xlu2 %v5456_v47, %s4955_s27  ;;  %v2469_v62 = vmul.f32 %v5722_v40, %v2164_v26  ;;  %v1850_v47 = vsub.f32 %v5685_v33, %v5822_v6 }
 0x366   : > { %4354 = vmatmul.msk.f32.vlgmr.msrb.gmra.mxu0 %vm922_vm2, %v2469_v62  ;;  %v1913_v35 = vmul.f32 1.442695, %v1850_v47  ;;  %v4587_v62 = vunpack.i.h.bf16 %v5576_v10 }
 0x367   : > { %2980 = vmatpush.msrb.mxu0 %v4607_v49 }
 0x36e   : > { %4609 = vrot.lane.b32.xlu0 %v5548_v45, %s4955_s27  ;;  %v2005_v45 = vsel %vm922_vm2, %v5882_v13, 0.0 }
 0x376   : > { %4614 = vrot.lane.b32.xlu0 %v5353_v56, %s4952_s16 }
 0x37f   : > { %v1950_v40 = vpop.xlane.xlu2 %1949 }
 0x380   : > { %4712 = vrcp.f32 %v1950_v40  ;;  %v2176_v54 = vand.u32 2147483648, %v1950_v40  ;;  %v2174_v6 = vand.u32 2147483647, %v1950_v40  ;;  %vm2170_vm6 = vweird.f32 %v1950_v40 }
 0x381   : > { %4714 = vpow2.f32 %v1913_v35 }
 0x382   : > { %v2177_v15 = vor.u32 1.1754944e-38, %v2176_v54  ;;  %vm2175_vm8 = vcmp.eq.f32.partialorder %v2174_v6, 8.507059e+37 }
 0x386   : > { %2006 = vadd.xlane.f32.xlu1 %v2005_v45  ;;  %v4713_v4 = vpop.eup %4712 }
 0x387   : > { %v2166_v5 = vmul.f32 %v4713_v4, %v1950_v40  ;;  %v1953_v14 = vpop.xlane.xlu2 %1952  ;;  %v5886_v34 = vpop.eup %4714  ;;  %vm2171_vm5 = vweird.f32 %v4713_v4 }
 0x388   : > { %4716 = vrcp.f32 %v1953_v14  ;;  %v2008_v8 = vsel %vm922_vm2, %v5886_v34, 0.0  ;;  %vm2172_vm7 = vmor %vm2170_vm6, %vm2171_vm5  ;;  %v2190_v22 = vand.u32 2147483648, %v1953_v14  ;;  %v2188_v59 = vand.u32 2147483647, %v1953_v14 }
 0x389   : > { %v2167_v56 = vsub.f32 1.0, %v2166_v5  ;;  %vm2184_vm10 = vweird.f32 %v1953_v14 }
 0x38a   : > { %vm2189_vm12 = vcmp.eq.f32.partialorder %v2188_v59, 8.507059e+37 }
 0x38b   : > { %v2168_v33 = vmul.f32 %v4713_v4, %v2167_v56 }
 0x38d   : > { %2009 = vadd.xlane.f32.xlu2 %v2008_v8  ;;  %v2169_v61 = vadd.f32 %v4713_v4, %v2168_v33 }
 0x38e   : > { %v1956_v63 = vpop.xlane.xlu0 %1955  ;;  %v4717_v42 = vpop.eup %4716 }
 0x38f   : > { %4718 = vrcp.f32 %v1956_v63  ;;  %v2173_v30 = vsel %vm2172_vm7, %v4713_v4, %v2169_v61  ;;  %v2180_v37 = vmul.f32 %v4717_v42, %v1953_v14  ;;  %vm2185_vm9 = vweird.f32 %v4717_v42 }
 0x390   : > { %v2178_v50 = vsel %vm2175_vm8, %v2177_v15, %v2173_v30  ;;  %4720 = vrcp.f32 %v5876_v20  ;;  %vm2186_vm11 = vmor %vm2184_vm10, %vm2185_vm9  ;;  %v2204_v36 = vand.u32 2147483648, %v1956_v63  ;;  %vm2198_vm14 = vweird.f32 %v1956_v63 }
 0x391   : > { %v2181_v28 = vsub.f32 1.0, %v2180_v37  ;;  %v2470_v48 = vmul.f32 %v5745_v38, %v2178_v50  ;;  %v2191_v38 = vor.u32 1.1754944e-38, %v2190_v22  ;;  %v2202_v47 = vand.u32 2147483647, %v1956_v63 }
 0x392   : > { %v2205_v56 = vor.u32 1.1754944e-38, %v2204_v36  ;;  %v4596_v50 = vunpack.i.l.bf16 %v5580_v12  ;;  %vm2268_vm8 = vweird.f32 %v5876_v20 }
 0x393   : > { %v2182_v0 = vmul.f32 %v4717_v42, %v2181_v28  ;;  %4355 = vmatmul.msk.f32.vlgmr.msrb.gmra.mxu1 %vm922_vm2, %v2470_v48  ;;  %vm2203_vm0 = vcmp.eq.f32.partialorder %v2202_v47, 8.507059e+37 }
 0x394   : > { %3006 = vmatpush.msrb.mxu1 %v4577_v44 }
 0x395   : > { %v4719_v58 = vpop.eup %4718  ;;  %v2183_v23 = vadd.f32 %v4717_v42, %v2182_v0 }
 0x396   : > { %v2194_v17 = vmul.f32 %v4719_v58, %v1956_v63  ;;  %v1959_v41 = vpop.xlane.xlu0 %1958  ;;  %v5898_v51 = vpop.eup %4720  ;;  %vm2199_vm13 = vweird.f32 %v4719_v58 }
 0x397   : > { %v2187_v3 = vsel %vm2186_vm11, %v4717_v42, %v2183_v23  ;;  %4722 = vrcp.f32 %v1959_v41  ;;  %v2264_v49 = vmul.f32 %v5898_v51, %v5876_v20  ;;  %v5906_v35 = vpop.xlane.xlu2 %1982  ;;  %vm2200_vm15 = vmor %vm2198_vm14, %vm2199_vm13  ;;  %v2218_v6 = vand.u32 2147483648, %v1959_v41 }
 0x398   : > { %v2195_v32 = vsub.f32 1.0, %v2194_v17  ;;  %4724 = vpow2.f32 %v1909_v43  ;;  %v2192_v55 = vsel %vm2189_vm12, %v2191_v38, %v2187_v3  ;;  %v2216_v42 = vand.u32 2147483647, %v1959_v41 }
 0x399   : > { %v2471_v26 = vmul.f32 %v5757_v19, %v2192_v55  ;;  %4726 = vrcp.f32 %v5896_v46  ;;  %v2265_v14 = vsub.f32 1.0, %v2264_v49  ;;  %vm2212_vm4 = vweird.f32 %v1959_v41 }
 0x39a   : > { %v2196_v24 = vmul.f32 %v4719_v58, %v2195_v32  ;;  %v2219_v48 = vor.u32 1.1754944e-38, %v2218_v6  ;;  %vm2217_vm6 = vcmp.eq.f32.partialorder %v2216_v42, 8.507059e+37  ;;  %vm2269_vm7 = vweird.f32 %v5898_v51 }
 0x39b   : > { %4356 = vmatmul.msk.f32.vlgmr.msrb.gmra.mxu2 %vm922_vm2, %v2471_v26  ;;  %v2266_v15 = vmul.f32 %v5898_v51, %v2265_v14  ;;  %v2274_v43 = vand.u32 2147483648, %v5876_v20  ;;  %vm5933_vm9 = vmor %vm2268_vm8, %vm2269_vm7  ;;  %v2288_v6 = vand.u32 2147483648, %v5896_v46  ;;  %v2286_v42 = vand.u32 2147483647, %v5896_v46 }
 0x39c   : > { %v2197_v7 = vadd.f32 %v4719_v58, %v2196_v24  ;;  %3032 = vmatpush.msrb.mxu2 %v4587_v62 }
 0x39d   : > { %v4723_v40 = vpop.eup %4722  ;;  %v1962_v5 = vpop.xlane.xlu1 %1961  ;;  %v2275_v62 = vor.u32 1.1754944e-38, %v2274_v43  ;;  %vm2287_vm8 = vcmp.eq.f32.partialorder %v2286_v42, 8.507059e+37 }
 0x39e   : > { %v5908_v19 = vpop.xlane.xlu0 %1985  ;;  %v5910_v10 = vpop.eup %4724  ;;  %v2201_v45 = vsel %vm2200_vm15, %v4719_v58, %v2197_v7  ;;  %v2208_v4 = vmul.f32 %v4723_v40, %v1959_v41  ;;  %4728 = vrcp.f32 %v1962_v5  ;;  %vm2213_vm3 = vweird.f32 %v4723_v40 }
 0x39f   : > { %v2206_v33 = vsel %vm2203_vm0, %v2205_v56, %v2201_v45  ;;  %v2002_v8 = vsel %vm922_vm2, %v5910_v10, 0.0  ;;  %v5914_v61 = vpop.eup %4726  ;;  %vm2214_vm5 = vmor %vm2212_vm4, %vm2213_vm3  ;;  %v5923_v59 = vpop.xlane.xlu2 %1994  ;;  %v2267_v58 = vadd.f32 %v5898_v51, %v2266_v15  ;;  %v2272_v41 = vand.u32 2147483647, %v5876_v20 }
 0x3a0   : > { %v2209_v54 = vsub.f32 1.0, %v2208_v4  ;;  %2003 = vadd.xlane.f32.xlu0 %v2002_v8  ;;  %v2472_v37 = vmul.f32 %v5769_v11, %v2206_v33  ;;  %v2278_v28 = vmul.f32 %v5914_v61, %v5896_v46  ;;  %v2232_v55 = vand.u32 2147483648, %v1962_v5 }
 0x3a1   : > { %v2271_v24 = vsel %vm5933_vm9, %v5898_v51, %v2267_v58  ;;  %v2230_v26 = vand.u32 2147483647, %v1962_v5  ;;  %vm2226_vm11 = vweird.f32 %v1962_v5  ;;  %vm2273_vm12 = vcmp.eq.f32.partialorder %v2272_v41, 8.507059e+37 }
 0x3a2   : > { %v2210_v63 = vmul.f32 %v4723_v40, %v2209_v54  ;;  %4357 = vmatmul.msk.f32.vlgmr.msra.gmra.mxu3 %vm922_vm2, %v2472_v37  ;;  %v2279_v17 = vsub.f32 1.0, %v2278_v28  ;;  %v2276_v36 = vsel %vm2273_vm12, %v2275_v62, %v2271_v24  ;;  %vm2283_vm15 = vweird.f32 %v5914_v61  ;;  %v6565_v54 = vld [vmem:[#allocation16_spill] sm:$0xff] }
 0x3a3   : > { %3058 = vmatpush.msra.mxu3 %v4596_v50  ;;  %vm2231_vm14 = vcmp.eq.f32.partialorder %v2230_v26, 8.507059e+37  ;;  %v2477_v33 = vmul.f32 %v6565_v54, %v2276_v36  ;;  %vm2282_vm3 = vweird.f32 %v5896_v46 }
 0x3a4   : > { %v2211_v30 = vadd.f32 %v4723_v40, %v2210_v63  ;;  %v4729_v18 = vpop.eup %4728  ;;  %vm5958_vm4 = vmor %vm2282_vm3, %vm2283_vm15 }
 0x3a5   : > { %v2222_v0 = vmul.f32 %v4729_v18, %v1962_v5  ;;  %vm2227_vm10 = vweird.f32 %v4729_v18 }
 0x3a6   : > { %v5921_v44 = vpop.xlane.xlu0 %1964  ;;  %v2215_v22 = vsel %vm2214_vm5, %v4723_v40, %v2211_v30  ;;  %vm2228_vm13 = vmor %vm2226_vm11, %vm2227_vm10  ;;  %v2233_v40 = vor.u32 1.1754944e-38, %v2232_v55 }
 0x3a7   : > { %v2220_v11 = vsel %vm2217_vm6, %v2219_v48, %v2215_v22  ;;  %4730 = vrcp.f32 %v5921_v44  ;;  %v2223_v23 = vsub.f32 1.0, %v2222_v0  ;;  %v2246_v56 = vand.u32 2147483648, %v5921_v44 }
 0x3a8   : > { %v2473_v38 = vmul.f32 %v5777_v52, %v2220_v11  ;;  %v2280_v52 = vmul.f32 %v5914_v61, %v2279_v17  ;;  %v2244_v63 = vand.u32 2147483647, %v5921_v44  ;;  %vm2240_vm5 = vweird.f32 %v5921_v44 }
 0x3a9   : > { %v2224_v32 = vmul.f32 %v4729_v18, %v2223_v23  ;;  %v2247_v46 = vor.u32 1.1754944e-38, %v2246_v56  ;;  %v4597_v17 = vunpack.i.h.bf16 %v5580_v12 }
 0x3aa   : > { %4358 = vmatmul.msk.f32.vlgmr.msra.gmra.mxu0 %vm922_vm2, %v2473_v38  ;;  %v2281_v14 = vadd.f32 %v5914_v61, %v2280_v52  ;;  %vm2245_vm7 = vcmp.eq.f32.partialorder %v2244_v63, 8.507059e+37  ;;  %v6568_v38 = vld [vmem:[#allocation15_spill] sm:$0xff] }
 0x3ab   : > { %v2225_v49 = vadd.f32 %v4729_v18, %v2224_v32 }
 0x3ac   : > { %v2285_v50 = vsel %vm5958_vm4, %v5914_v61, %v2281_v14 }
 0x3ad   : > { %v4731_v20 = vpop.eup %4730  ;;  %v2229_v47 = vsel %vm2228_vm13, %v4729_v18, %v2225_v49 }
 0x3ae   : > { %v5942_v7 = vpop.xlane.xlu1 %1979  ;;  %v2236_v45 = vmul.f32 %v4731_v20, %v5921_v44  ;;  %v2234_v51 = vsel %vm2231_vm14, %v2233_v40, %v2229_v47  ;;  %vm2241_vm0 = vweird.f32 %v4731_v20 }
 0x3af   : > { %v1968_v4 = vpop.xlane.xlu2 %1967  ;;  %4732 = vrcp.f32 %v5942_v7  ;;  %v2474_v15 = vmul.f32 %v5799_v1, %v2234_v51  ;;  %vm2242_vm6 = vmor %vm2240_vm5, %vm2241_vm0  ;;  %v2289_v1 = vor.u32 1.1754944e-38, %v2288_v6  ;;  %vm2310_vm14 = vweird.f32 %v5942_v7 }
 0x3b0   : > { %v2237_v5 = vsub.f32 1.0, %v2236_v45  ;;  %4734 = vrcp.f32 %v1968_v4  ;;  %v2260_v41 = vand.u32 2147483648, %v1968_v4  ;;  %v2258_v24 = vand.u32 2147483647, %v1968_v4 }
 0x3b1   : > { %4359 = vmatmul.msk.f32.vlgmr.msra.gmra.mxu1 %vm922_vm2, %v2474_v15  ;;  %v2290_v58 = vsel %vm2287_vm8, %v2289_v1, %v2285_v50  ;;  %vm2254_vm10 = vweird.f32 %v1968_v4  ;;  %v2316_v36 = vand.u32 2147483648, %v5942_v7  ;;  %v2314_v45 = vand.u32 2147483647, %v5942_v7 }
 0x3b2   : > { %v2238_v8 = vmul.f32 %v4731_v20, %v2237_v5  ;;  %4362 = vmatmul.msk.f32.vlgmr.msrb.gmra.mxu0 %vm922_vm2, %v2477_v33  ;;  %v2478_v3 = vmul.f32 %v6568_v38, %v2290_v58  ;;  %v2261_v12 = vor.u32 1.1754944e-38, %v2260_v41  ;;  %vm2259_vm13 = vcmp.eq.f32.partialorder %v2258_v24, 8.507059e+37 }
 0x3b3   : > { %v4576_v5 = vunpack.i.l.bf16 %v5551_v53  ;;  %vm2315_vm4 = vcmp.eq.f32.partialorder %v2314_v45, 8.507059e+37  ;;  %vm2324_vm8 = vweird.f32 %v5906_v35 }
 0x3b4   : > { %v2239_v37 = vadd.f32 %v4731_v20, %v2238_v8 }
 0x3b5   : > { %v5963_v18 = vpop.eup %4732 }
 0x3b6   : > { %v2243_v28 = vsel %vm2242_vm6, %v4731_v20, %v2239_v37  ;;  %v2306_v48 = vmul.f32 %v5963_v18, %v5942_v7  ;;  %v4735_v0 = vpop.eup %4734  ;;  %vm2311_vm12 = vweird.f32 %v5963_v18  ;;  %v6003_v1 = vpop.xlane.xlu1 %1997 }
 0x3b7   : > { %v1977_v22 = vpop.xlane.xlu2 %1976  ;;  %v2248_v44 = vsel %vm2245_vm7, %v2247_v46, %v2243_v28  ;;  %v2250_v43 = vmul.f32 %v4735_v0, %v1968_v4  ;;  %vm2255_vm9 = vweird.f32 %v4735_v0  ;;  %vm5988_vm15 = vmor %vm2310_vm14, %vm2311_vm12 }
 0x3b8   : > { %v2307_v11 = vsub.f32 1.0, %v2306_v48  ;;  %4736 = vrcp.f32 %v1977_v22  ;;  %v2475_v61 = vmul.f32 %v5805_v9, %v2248_v44  ;;  %vm2256_vm11 = vmor %vm2254_vm10, %vm2255_vm9  ;;  %v2302_v4 = vand.u32 2147483648, %v1977_v22 }
 0x3b9   : > { %v2251_v23 = vsub.f32 1.0, %v2250_v43  ;;  %4363 = vmatmul.msk.f32.vlgmr.msrb.gmra.mxu1 %vm922_vm2, %v2478_v3  ;;  %4738 = vrcp.f32 %v5906_v35  ;;  %v2300_v54 = vand.u32 2147483647, %v1977_v22  ;;  %vm2296_vm3 = vweird.f32 %v1977_v22 }
 0x3ba   : > { %v2308_v32 = vmul.f32 %v5963_v18, %v2307_v11  ;;  %4360 = vmatmul.msk.f32.vlgmr.msra.gmra.mxu2 %vm922_vm2, %v2475_v61  ;;  %v2303_v53 = vor.u32 1.1754944e-38, %v2302_v4 }
 0x3bb   : > { %v2252_v55 = vmul.f32 %v4735_v0, %v2251_v23  ;;  %3136 = vmatpush.msra.mxu2 %v4597_v17  ;;  %vm2301_vm6 = vcmp.eq.f32.partialorder %v2300_v54, 8.507059e+37 }
 0x3bc   : > { %v2309_v20 = vadd.f32 %v5963_v18, %v2308_v32 }
 0x3bd   : > { %v2253_v62 = vadd.f32 %v4735_v0, %v2252_v55 }
 0x3be   : > { %v4737_v26 = vpop.eup %4736  ;;  %v2313_v33 = vsel %vm5988_vm15, %v5963_v18, %v2309_v20 }
 0x3bf   : > { %v5977_v49 = vpop.xlane.xlu2 %2000  ;;  %v2292_v9 = vmul.f32 %v4737_v26, %v1977_v22  ;;  %v2257_v52 = vsel %vm2256_vm11, %v4735_v0, %v2253_v62  ;;  %vm2297_vm0 = vweird.f32 %v4737_v26  ;;  %v5996_v7 = vpop.eup %4738  ;;  %v2330_v62 = vand.u32 2147483648, %v5906_v35 }
 0x3c0   : > { %v2262_v47 = vsel %vm2259_vm13, %v2261_v12, %v2257_v52  ;;  %4740 = vrcp.f32 %v5977_v49  ;;  %vm2298_vm5 = vmor %vm2296_vm3, %vm2297_vm0  ;;  %v2320_v18 = vmul.f32 %v5996_v7, %v5906_v35  ;;  %vm2325_vm9 = vweird.f32 %v5996_v7 }
 0x3c1   : > { %v2293_v40 = vsub.f32 1.0, %v2292_v9  ;;  %v2476_v51 = vmul.f32 %v5828_v27, %v2262_v47  ;;  %4742 = vrcp.f32 %v5908_v19  ;;  %v2317_v27 = vor.u32 1.1754944e-38, %v2316_v36 }
 0x3c2   : > { %v2321_v44 = vsub.f32 1.0, %v2320_v18  ;;  %v2414_v54 = vand.u32 2147483648, %v5977_v49  ;;  %vm2408_vm15 = vweird.f32 %v5977_v49 }
 0x3c3   : > { %v2294_v56 = vmul.f32 %v4737_v26, %v2293_v40  ;;  %4361 = vmatmul.msk.f32.vlgmr.msrb.gmra.mxu3 %vm922_vm2, %v2476_v51  ;;  %v2318_v63 = vsel %vm2315_vm4, %v2317_v27, %v2313_v33  ;;  %v2412_v27 = vand.u32 2147483647, %v5977_v49  ;;  %vm6061_vm4 = vmor %vm2324_vm8, %vm2325_vm9 }
 0x3c4   : > { %3162 = vmatpush.msrb.mxu3 %v4576_v5  ;;  %v2480_v48 = vmul.f32 %v5825_v2, %v2318_v63  ;;  %v2322_v61 = vmul.f32 %v5996_v7, %v2321_v44 }
 0x3c5   : > { %v2295_v6 = vadd.f32 %v4737_v26, %v2294_v56  ;;  %v1989_v15 = vpop.xlane.xlu0 %1988  ;;  %v2344_v56 = vand.u32 2147483648, %v5908_v19  ;;  %vm2413_vm8 = vcmp.eq.f32.partialorder %v2412_v27, 8.507059e+37 }
 0x3c6   : > { %v5999_v30 = vpop.eup %4740  ;;  %4744 = vrcp.f32 %v1989_v15  ;;  %v2358_v38 = vand.u32 2147483648, %v1989_v15  ;;  %v2356_v24 = vand.u32 2147483647, %v1989_v15  ;;  %v2323_v9 = vadd.f32 %v5996_v7, %v2322_v61 }
 0x3c7   : > { %v4625_v8 = vpop.permute.xlu2 %4624  ;;  %v2299_v42 = vsel %vm2298_vm5, %v4737_v26, %v2295_v6  ;;  %v6007_v22 = vpop.eup %4742  ;;  %4746 = vrcp.f32 %v5923_v59  ;;  %v2404_v0 = vmul.f32 %v5999_v30, %v5977_v49  ;;  %v2328_v26 = vand.u32 2147483647, %v5906_v35 }
 0x3c8   : > { %v2304_v37 = vsel %vm2301_vm6, %v2303_v53, %v2299_v42  ;;  %v4627_v50 = vunpack.i.h.bf16 %v4625_v8  ;;  %v4626_v46 = vunpack.i.l.bf16 %v4625_v8  ;;  %4748 = vrcp.f32 %v6003_v1 }
 0x3c9   : > { %v2479_v28 = vmul.f32 %v5839_v16, %v2304_v37  ;;  %v2334_v2 = vmul.f32 %v6007_v22, %v5908_v19  ;;  %v2405_v16 = vsub.f32 1.0, %v2404_v0  ;;  %vm2352_vm10 = vweird.f32 %v1989_v15 }
 0x3ca   : > { %vm2409_vm11 = vweird.f32 %v5999_v30  ;;  %v2359_v40 = vor.u32 1.1754944e-38, %v2358_v38  ;;  %vm2357_vm13 = vcmp.eq.f32.partialorder %v2356_v24, 8.507059e+37  ;;  %vm6039_vm14 = vcmp.eq.f32.partialorder %v2328_v26, 8.507059e+37 }
 0x3cb   : > { %4364 = vmatmul.msk.f32.vlgmr.msrb.gmra.mxu2 %vm922_vm2, %v2479_v28  ;;  %4365 = vmatmul.msk.f32.vlgmr.msra.gmra.mxu3 %vm922_vm2, %v2480_v48  ;;  %v2335_v41 = vsub.f32 1.0, %v2334_v2  ;;  %v2406_v32 = vmul.f32 %v5999_v30, %v2405_v16  ;;  %vm2339_vm0 = vweird.f32 %v6007_v22  ;;  %vm6052_vm3 = vmor %vm2408_vm15, %vm2409_vm11  ;;  %vm2338_vm6 = vweird.f32 %v5908_v19 }
 0x3cc   : > { %3240 = vmatpush.msrb.mxu2 %v4626_v46  ;;  %3266 = vmatpush.msra.mxu3 %v4627_v50  ;;  %v4745_v58 = vpop.eup %4744  ;;  %v2327_v50 = vsel %vm6061_vm4, %v5996_v7, %v2323_v9  ;;  %v2342_v35 = vand.u32 2147483647, %v5908_v19  ;;  %v2415_v46 = vor.u32 1.1754944e-38, %v2414_v54  ;;  %v2345_v2 = vor.u32 1.1754944e-38, %v2344_v56  ;;  %v6133_v56 = vpop.f32.mrf.mxu3 }
 0x3cd   : > { %v2348_v11 = vmul.f32 %v4745_v58, %v1989_v15  ;;  %v6017_v43 = vpop.xlane.xlu0 %1991  ;;  %v6020_v23 = vpop.eup %4746  ;;  %vm2353_vm7 = vweird.f32 %v4745_v58  ;;  %v2336_v36 = vmul.f32 %v6007_v22, %v2335_v41  ;;  %v2407_v45 = vadd.f32 %v5999_v30, %v2406_v32 }
 0x3ce   : > { %4750 = vrcp.f32 %v6017_v43  ;;  %v6023_v3 = vpop.eup %4748  ;;  %v2376_v12 = vmul.f32 %v6020_v23, %v5923_v59  ;;  %vm2354_vm12 = vmor %vm2352_vm10, %vm2353_vm7  ;;  %v2372_v15 = vand.u32 2147483648, %v6017_v43  ;;  %v2370_v18 = vand.u32 2147483647, %v6017_v43 }
 0x3cf   : > { %v2349_v17 = vsub.f32 1.0, %v2348_v11  ;;  %v2390_v47 = vmul.f32 %v6023_v3, %v6003_v1  ;;  %v2337_v8 = vadd.f32 %v6007_v22, %v2336_v36  ;;  %vm6078_vm7 = vmor %vm2338_vm6, %vm2339_vm0  ;;  %vm2366_vm9 = vweird.f32 %v6017_v43 }
 0x3d0   : > { %v2377_v14 = vsub.f32 1.0, %v2376_v12  ;;  %v2373_v44 = vor.u32 1.1754944e-38, %v2372_v15  ;;  %vm2371_vm11 = vcmp.eq.f32.partialorder %v2370_v18, 8.507059e+37  ;;  %vm2343_vm15 = vcmp.eq.f32.partialorder %v2342_v35, 8.507059e+37 }
 0x3d1   : > { %v2350_v55 = vmul.f32 %v4745_v58, %v2349_v17  ;;  %v2391_v63 = vsub.f32 1.0, %v2390_v47  ;;  %v2341_v7 = vsel %vm6078_vm7, %v6007_v22, %v2337_v8  ;;  %v2384_v38 = vand.u32 2147483647, %v5923_v59 }
 0x3d2   : > { %v2378_v28 = vmul.f32 %v6020_v23, %v2377_v14  ;;  %v2346_v22 = vsel %vm2343_vm15, %v2345_v2, %v2341_v7  ;;  %vm2395_vm0 = vweird.f32 %v6023_v3  ;;  %v2386_v26 = vand.u32 2147483648, %v5923_v59  ;;  %v6126_v14 = vpop.f32.mrf.mxu2 }
 0x3d3   : > { %v2351_v20 = vadd.f32 %v4745_v58, %v2350_v55  ;;  %v2392_v0 = vmul.f32 %v6023_v3, %v2391_v63  ;;  %v4620_v55 = vpop.permute.xlu1 %4619 }
 0x3d4   : > { %v4751_v52 = vpop.eup %4750  ;;  %v2379_v41 = vadd.f32 %v6020_v23, %v2378_v28  ;;  %v4622_v47 = vunpack.i.h.bf16 %v4620_v55  ;;  %v6138_v27 = vpop.f32.mrf.mxu3 }
 0x3d5   : > { %v2355_v4 = vsel %vm2354_vm12, %v4745_v58, %v2351_v20  ;;  %v2362_v51 = vmul.f32 %v4751_v52, %v6017_v43  ;;  %vm2367_vm5 = vweird.f32 %v4751_v52  ;;  %v2331_v58 = vor.u32 1.1754944e-38, %v2330_v62 }
 0x3d6   : > { %v2360_v33 = vsel %vm2357_vm13, %v2359_v40, %v2355_v4  ;;  %vm2368_vm10 = vmor %vm2366_vm9, %vm2367_vm5  ;;  %vm2380_vm12 = vweird.f32 %v5923_v59  ;;  %vm2381_vm13 = vweird.f32 %v6020_v23  ;;  %v2393_v32 = vadd.f32 %v6023_v3, %v2392_v0 }
 0x3d7   : > { %v2363_v6 = vsub.f32 1.0, %v2362_v51  ;;  %v2483_v53 = vmul.f32 %v5854_v29, %v2360_v33  ;;  %v2411_v29 = vsel %vm6052_vm3, %v5999_v30, %v2407_v45  ;;  %v2332_v43 = vsel %vm6039_vm14, %v2331_v58, %v2327_v50  ;;  %vm6106_vm14 = vmor %vm2380_vm12, %vm2381_vm13 }
 0x3d8   : > { %v2416_v19 = vsel %vm2413_vm8, %v2415_v46, %v2411_v29  ;;  %v2400_v62 = vand.u32 2147483648, %v6003_v1  ;;  %vm2394_vm3 = vweird.f32 %v6003_v1  ;;  %v2481_v20 = vmul.f32 %v5783_v60, %v2332_v43  ;;  %v6144_v46 = vpop.f32.mrf.mxu0 }
 0x3d9   : > { %v2364_v37 = vmul.f32 %v4751_v52, %v2363_v6  ;;  %4368 = vmatmul.msk.f32.vlgmr.msra.gmra.mxu2 %vm922_vm2, %v2483_v53  ;;  %v2487_v17 = vmul.f32 %v5845_v31, %v2416_v19  ;;  %vm6114_vm4 = vmor %vm2394_vm3, %vm2395_vm0  ;;  %v4621_v40 = vunpack.i.l.bf16 %v4620_v55  ;;  %v2383_v59 = vsel %vm6106_vm14, %v6020_v23, %v2379_v41 }
 0x3da   : > { %v2387_v60 = vor.u32 1.1754944e-38, %v2386_v26  ;;  %vm2385_vm5 = vcmp.eq.f32.partialorder %v2384_v38, 8.507059e+37  ;;  %v6135_v33 = vpop.f32.mrf.mxu2 }
 0x3db   : > { %v2365_v48 = vadd.f32 %v4751_v52, %v2364_v37 }
 0x3dc   : > { %v2388_v45 = vsel %vm2385_vm5, %v2387_v60, %v2383_v59  ;;  %vm3427_vm5 = vcmask 130048  }
 0x3dd   : > { %v2369_v16 = vsel %vm2368_vm10, %v4751_v52, %v2365_v48  ;;  %v2482_v52 = vmul.f32 %v5794_v21, %v2346_v22  ;;  %v2401_v21 = vor.u32 1.1754944e-38, %v2400_v62  ;;  %v6146_v48 = vpop.f32.mrf.mxu1 }
 0x3de   : > { %v2374_v11 = vsel %vm2371_vm11, %v2373_v44, %v2369_v16 }
 0x3df   : > { %v2484_v61 = vmul.f32 %v5861_v57, %v2374_v11  ;;  %v2398_v57 = vand.u32 2147483647, %v6003_v1  ;;  %v2397_v1 = vsel %vm6114_vm4, %v6023_v3, %v2393_v32  ;;  %v2485_v3 = vmul.f32 %v5790_v39, %v2388_v45  ;;  %v2748_v39 = vpop.f32.mrf.mxu3 }
 0x3e0   : > { %v4610_v24 = vpop.permute.xlu0 %4609  ;;  %v6148_v7 = vpop.f32.mrf.mxu0 }
 0x3e1   : > { %v4612_v12 = vunpack.i.h.bf16 %v4610_v24  ;;  %v4611_v9 = vunpack.i.l.bf16 %v4610_v24  ;;  %4369 = vmatmul.msk.f32.vlgmr.msrb.gmra.mxu3 %vm922_vm2, %v2484_v61  ;;  %4372 = vmatmul.msk.f32.vlgmr.msrb.gmra.mxu2 %vm922_vm2, %v2487_v17  ;;  %vm2399_vm6 = vcmp.eq.f32.partialorder %v2398_v57, 8.507059e+37 }
 0x3e2   : > { %v2402_v4 = vsel %vm2399_vm6, %v2401_v21, %v2397_v1  ;;  %v2722_v6 = vpop.f32.mrf.mxu2  ;;  %vm3436_vm6 = vcmask 195584  }
 0x3e3   : > { %3084 = vmatpush.msra.mxu0 %v4611_v9  ;;  %3110 = vmatpush.msra.mxu1 %v4612_v12  ;;  %v2486_v23 = vmul.f32 %v5837_v25, %v2402_v4 }
 0x3e4   : > { %4366 = vmatmul.msk.f32.vlgmr.msra.gmra.mxu0 %vm922_vm2, %v2481_v20  ;;  %4367 = vmatmul.msk.f32.vlgmr.msra.gmra.mxu1 %vm922_vm2, %v2482_v52 }
 0x3e5   : > { %3188 = vmatpush.msrb.mxu0 %v4621_v40  ;;  %3214 = vmatpush.msrb.mxu1 %v4622_v47  ;;  %v6151_v2 = vpop.f32.mrf.mxu1 }
 0x3e8   : > { %v4615_v51 = vpop.permute.xlu0 %4614 }
 0x3e9   : > { %v4616_v5 = vunpack.i.l.bf16 %v4615_v51  ;;  %v4617_v54 = vunpack.i.h.bf16 %v4615_v51 }
 0x3eb   : > { %3271 = vrot.lane.b32.xlu0 %v4616_v5, %s4955_s27 }
 0x3ec   : > { %4370 = vmatmul.msk.f32.vlgmr.msrb.gmra.mxu0 %vm922_vm2, %v2485_v3  ;;  %4371 = vmatmul.msk.f32.vlgmr.msrb.gmra.mxu1 %vm922_vm2, %v2486_v23 }
 0x3f3   : > { %3297 = vrot.lane.b32.xlu0 %v4617_v54, %s4955_s27 }
 0x3f9   : > { %v2007_v30 = vpop.xlane.xlu1 %2006 }
 0x3fa   : > { %v2442_v24 = vand.u32 2147483648, %v2007_v30  ;;  %vm2436_vm12 = vweird.f32 %v2007_v30  ;;  %v2440_v62 = vand.u32 2147483647, %v2007_v30 }
 0x3fb   : > { %3331 = vrot.lane.b32.xlu0 %v2722_v6, %s4956_s13 }
 0x3fc   : > { %v2443_v31 = vor.u32 1.1754944e-38, %v2442_v24  ;;  %vm2441_vm15 = vcmp.eq.f32.partialorder %v2440_v62, 8.507059e+37 }
 0x400   : > { %v2010_v44 = vpop.xlane.xlu2 %2009 }
 0x401   : > { %v2456_v47 = vand.u32 2147483648, %v2010_v44  ;;  %vm2450_vm14 = vweird.f32 %v2010_v44  ;;  %v2454_v1 = vand.u32 2147483647, %v2010_v44 }
 0x403   : > { %3333 = vrot.lane.b32.xlu0 %v2748_v39, %s4956_s13  ;;  %v2457_v4 = vor.u32 1.1754944e-38, %v2456_v47  ;;  %vm2455_vm4 = vcmp.eq.f32.partialorder %v2454_v1, 8.507059e+37 }
 0x410   : > { %v2800_v61 = vpop.f32.mrf.mxu1 }
 0x413   : > { %v2004_v25 = vpop.xlane.xlu0 %2003 }
 0x414   : > { %4752 = vrcp.f32 %v2004_v25  ;;  %v2428_v42 = vand.u32 2147483648, %v2004_v25  ;;  %v2426_v49 = vand.u32 2147483647, %v2004_v25  ;;  %vm2422_vm8 = vweird.f32 %v2004_v25 }
 0x415   : > { %4754 = vrcp.f32 %v2007_v30 }
 0x416   : > { %v2429_v37 = vor.u32 1.1754944e-38, %v2428_v42  ;;  %vm2427_vm10 = vcmp.eq.f32.partialorder %v2426_v49, 8.507059e+37  ;;  %4756 = vrcp.f32 %v2010_v44  ;;  %v527_v42 = vld [vmem:[%s5086_s24] sm:$0xff] }
 0x41a   : > { %v4753_v53 = vpop.eup %4752 }
 0x41b   : > { %v2418_v8 = vmul.f32 %v4753_v53, %v2004_v25  ;;  %vm2423_vm7 = vweird.f32 %v4753_v53  ;;  %v4755_v58 = vpop.eup %4754 }
 0x41c   : > { %vm2424_vm9 = vmor %vm2422_vm8, %vm2423_vm7  ;;  %v2432_v11 = vmul.f32 %v4755_v58, %v2007_v30  ;;  %v4757_v22 = vpop.eup %4756  ;;  %vm2437_vm11 = vweird.f32 %v4755_v58 }
 0x41d   : > { %v2419_v63 = vsub.f32 1.0, %v2418_v8  ;;  %v2446_v41 = vmul.f32 %v4757_v22, %v2010_v44  ;;  %vm2438_vm13 = vmor %vm2436_vm12, %vm2437_vm11  ;;  %vm2451_vm0 = vweird.f32 %v4757_v22  ;;  %v529_v8 = vld [vmem:[%s5086_s24 + $0x10] sm:$0xff] }
 0x41e   : > { %v2826_v28 = vpop.f32.mrf.mxu2  ;;  %v2433_v43 = vsub.f32 1.0, %v2432_v11  ;;  %vm2452_vm3 = vmor %vm2450_vm14, %vm2451_vm0 }
 0x41f   : > { %v2420_v15 = vmul.f32 %v4753_v53, %v2419_v63  ;;  %v2447_v55 = vsub.f32 1.0, %v2446_v41  ;;  %v528_v63 = vld [vmem:[%s5086_s24 + $0x8] sm:$0xff] }
 0x420   : > { %v2434_v17 = vmul.f32 %v4755_v58, %v2433_v43 }
 0x421   : > { %v2421_v29 = vadd.f32 %v4753_v53, %v2420_v15  ;;  %v2448_v9 = vmul.f32 %v4757_v22, %v2447_v55 }
 0x422   : > { %v2435_v32 = vadd.f32 %v4755_v58, %v2434_v17 }
 0x423   : > { %v2425_v18 = vsel %vm2424_vm9, %v4753_v53, %v2421_v29  ;;  %v2449_v36 = vadd.f32 %v4757_v22, %v2448_v9  ;;  %v530_v53 = vld [vmem:[%s5086_s24 + $0x18] sm:$0xff] }
 0x424   : > { %v2430_v50 = vsel %vm2427_vm10, %v2429_v37, %v2425_v18  ;;  %v2439_v12 = vsel %vm2438_vm13, %v4755_v58, %v2435_v32  ;;  %3482 = vmatpush.msra.mxu2 %v530_v53 }
 0x425   : > { %v2488_v35 = vmul.f32 %v5910_v10, %v2430_v50  ;;  %v2852_v0 = vpop.f32.mrf.mxu3  ;;  %v2774_v10 = vpop.f32.mrf.mxu0  ;;  %v2444_v20 = vsel %vm2441_vm15, %v2443_v31, %v2439_v12  ;;  %v2453_v45 = vsel %vm2452_vm3, %v4757_v22, %v2449_v36 }
 0x426   : > { %v2489_v21 = vmul.f32 %v5882_v13, %v2444_v20  ;;  %v2458_v51 = vsel %vm2455_vm4, %v2457_v4, %v2453_v45  ;;  %3483 = vmatpush.msra.mxu2 %v529_v8  ;;  %v4794_v8 = vld [vmem:[#allocation7 + $0x8] sm:$0xff] }
 0x427   : > { %4373 = vmatmul.msk.f32.vlgmr.msra.gmra.mxu3 %vm922_vm2, %v2488_v35  ;;  %v2490_v54 = vmul.f32 %v5886_v34, %v2458_v51 }
 0x428   : > { %3484 = vmatpush.msra.mxu2 %v528_v63 }
 0x42a   : > { %3485 = vmatpush.msra.mxu2 %v527_v42 }
 0x42d   : > { %v2878_v38 = vpop.f32.mrf.mxu0 }
 0x42e   : > { %v2904_v57 = vpop.f32.mrf.mxu1 }
 0x435   : > { %v2982_v52 = vpop.f32.mrf.mxu0 }
 0x436   : > { %v3008_v5 = vpop.f32.mrf.mxu1 }
 0x43d   : > { %v2930_v19 = vpop.f32.mrf.mxu2 }
 0x43e   : > { %3363 = vrot.lane.b32.xlu1 %v2930_v19, %s4957_s21 }
 0x446   : > { %v2956_v16 = vpop.f32.mrf.mxu3  ;;  %3335 = vrot.lane.b32.xlu1 %v2774_v10, %s4956_s13 }
 0x447   : > { %3365 = vrot.lane.b32.xlu0 %v2956_v16, %s4957_s21 }
 0x44e   : > { %3337 = vrot.lane.b32.xlu1 %v2800_v61, %s4956_s13  ;;  %v3034_v26 = vpop.f32.mrf.mxu2  ;;  %v3060_v40 = vpop.f32.mrf.mxu3 }
 0x456   : > { %3339 = vrot.lane.b32.xlu1 %v2826_v28, %s4956_s13 }
 0x45c   : > { %v3138_v59 = vpop.f32.mrf.mxu2 }
 0x45d   : > { %3395 = vrot.lane.b32.xlu2 %v3138_v59, %s4958_s30  ;;  %v3272_v60 = vpop.permute.xlu0 %3271 }
 0x45e   : > { %3341 = vrot.lane.b32.xlu1 %v2852_v0, %s4956_s13  ;;  %3292 = vmatpush.msra.mxu0 %v3272_v60  ;;  %v4793_v60 = vld [vmem:[#allocation7] sm:$0xff] }
 0x45f   : > { %4374 = vmatmul.msk.f32.vlgmr.msra.gmra.mxu0 %vm922_vm2, %v2489_v21 }
 0x461   : > { %v3086_v23 = vpop.f32.mrf.mxu0  ;;  %v3112_v6 = vpop.f32.mrf.mxu1 }
 0x464   : > { %v3164_v3 = vpop.f32.mrf.mxu3  ;;  %v3242_v25 = vpop.f32.mrf.mxu2 }
 0x465   : > { %3367 = vrot.lane.b32.xlu2 %v2982_v52, %s4957_s21  ;;  %3397 = vrot.lane.b32.xlu0 %v3164_v3, %s4958_s30  ;;  %v3298_v13 = vpop.permute.xlu0 %3297 }
 0x466   : > { %3343 = vrot.lane.b32.xlu1 %v2878_v38, %s4956_s13  ;;  %3318 = vmatpush.msra.mxu1 %v3298_v13 }
 0x467   : > { %4375 = vmatmul.msk.f32.vlgmr.msra.gmra.mxu1 %vm922_vm2, %v2490_v54 }
 0x469   : > { %v3190_v39 = vpop.f32.mrf.mxu0  ;;  %v3216_v34 = vpop.f32.mrf.mxu1 }
 0x46d   : > { %3369 = vrot.lane.b32.xlu2 %v3008_v5, %s4957_s21  ;;  %3399 = vrot.lane.b32.xlu0 %v3190_v39, %s4958_s30  ;;  %v3332_v49 = vpop.permute.xlu0 %3331 }
 0x46e   : > { %3345 = vrot.lane.b32.xlu1 %v2904_v57, %s4956_s13  ;;  %v3419_v37 = vsel %vm922_vm2, %v6126_v14, %v3332_v49 }
 0x475   : > { %3371 = vrot.lane.b32.xlu2 %v3034_v26, %s4957_s21  ;;  %3401 = vrot.lane.b32.xlu0 %v3216_v34, %s4958_s30  ;;  %v3334_v28 = vpop.permute.xlu0 %3333 }
 0x476   : > { %v3420_v0 = vsel %vm922_vm2, %v6133_v56, %v3334_v28 }
 0x47d   : > { %3373 = vrot.lane.b32.xlu2 %v3060_v40, %s4957_s21  ;;  %3403 = vrot.lane.b32.xlu0 %v3242_v25, %s4958_s30 }
 0x485   : > { %3375 = vrot.lane.b32.xlu2 %v3086_v23, %s4957_s21 }
 0x48d   : > { %3377 = vrot.lane.b32.xlu2 %v3112_v6, %s4957_s21 }
 0x4aa   : > { %v3268_v15 = vpop.f32.mrf.mxu3 }
 0x4ab   : > { %3405 = vrot.lane.b32.xlu0 %v3268_v15, %s4958_s30 }
 0x4b0   : > { %v3364_v29 = vpop.permute.xlu1 %3363 }
 0x4b1   : > { %v3428_v18 = vsel %vm3427_vm5, %v3419_v37, %v3364_v29  ;;  %v4795_v29 = vld [vmem:[#allocation7 + $0x10] sm:$0xff] }
 0x4b7   : > { %v3396_v50 = vpop.permute.xlu2 %3395 }
 0x4b8   : > { %v3437_v35 = vsel %vm3436_vm6, %v3428_v18, %v3396_v50  ;;  %v3336_v19 = vpop.permute.xlu1 %3335 }
 0x4b9   : > { %4376 = vmatmul.msk.f32.vlgmr.msra.gmra.mxu2 %vm567_vm1, %v3437_v35  ;;  %v3366_v30 = vpop.permute.xlu0 %3365  ;;  %v3421_v11 = vsel %vm922_vm2, %v6144_v46, %v3336_v19  ;;  %v4796_v35 = vld [vmem:[#allocation7 + $0x18] sm:$0xff] }
 0x4ba   : > { %v3429_v44 = vsel %vm3427_vm5, %v3420_v0, %v3366_v30 }
 0x4bf   : > { %v3368_v10 = vpop.permute.xlu2 %3367 }
 0x4c0   : > { %v3430_v43 = vsel %vm3427_vm5, %v3421_v11, %v3368_v10  ;;  %v3338_v61 = vpop.permute.xlu1 %3337 }
 0x4c1   : > { %v3422_v38 = vsel %vm922_vm2, %v6146_v48, %v3338_v61 }
 0x4c7   : > { %v3370_v17 = vpop.permute.xlu2 %3369 }
 0x4c8   : > { %v3431_v32 = vsel %vm3427_vm5, %v3422_v38, %v3370_v17  ;;  %v3340_v24 = vpop.permute.xlu1 %3339 }
 0x4c9   : > { %v3423_v62 = vsel %vm922_vm2, %v6135_v33, %v3340_v24  ;;  %v6213_v33 = vld [vmem:[%s5127_s12 + $0x8] sm:$0xff] }
 0x4ca   : > { %v6216_v40 = vperm.slane %v6213_v33, 3 }
 0x4cf   : > { %v3372_v26 = vpop.permute.xlu2 %3371 }
 0x4d0   : > { %v3432_v12 = vsel %vm3427_vm5, %v3423_v62, %v3372_v26  ;;  %v3342_v48 = vpop.permute.xlu1 %3341 }
 0x4d1   : > { %v3424_v20 = vsel %vm922_vm2, %v6138_v27, %v3342_v48 }
 0x4d7   : > { %v3398_v58 = vpop.permute.xlu0 %3397  ;;  %v3374_v57 = vpop.permute.xlu2 %3373 }
 0x4d8   : > { %v3438_v16 = vsel %vm3436_vm6, %v3429_v44, %v3398_v58  ;;  %v3433_v52 = vsel %vm3427_vm5, %v3424_v20, %v3374_v57  ;;  %v3344_v27 = vpop.permute.xlu1 %3343  ;;  %v4797_v44 = vld [vmem:[#allocation7 + $0x20] sm:$0xff]  ;;  %v4799_v20 = vld [vmem:[#allocation7 + $0x30] sm:$0xff] }
 0x4d9   : > { %4377 = vmatmul.msk.f32.gmra.mxu2 %vm567_vm1, %v3438_v16  ;;  %v3425_v51 = vsel %vm922_vm2, %v6148_v7, %v3344_v27  ;;  %v4959_v16 = vmov 32.0  }
 0x4da   : > { %4758 = vrcp.f32 %v4959_v16 }
 0x4dc   : > { %v3294_v14 = vpop.f32.mrf.mxu0 }
 0x4dd   : > { %3407 = vrot.lane.b32.xlu0 %v3294_v14, %s4958_s30 }
 0x4df   : > { %v3400_v22 = vpop.permute.xlu0 %3399  ;;  %v3376_v4 = vpop.permute.xlu2 %3375 }
 0x4e0   : > { %v3439_v56 = vsel %vm3436_vm6, %v3430_v43, %v3400_v22  ;;  %v3434_v5 = vsel %vm3427_vm5, %v3425_v51, %v3376_v4  ;;  %v3346_v54 = vpop.permute.xlu1 %3345  ;;  %v4759_v14 = vpop.eup %4758  ;;  %v4800_v4 = vld [vmem:[#allocation7 + $0x38] sm:$0xff] }
 0x4e1   : > { %4378 = vmatmul.msk.f32.gmra.mxu2 %vm567_vm1, %v3439_v56  ;;  %v3426_v6 = vsel %vm922_vm2, %v6151_v2, %v3346_v54  ;;  %v3544_v22 = vmul.f32 32.0, %v4759_v14  ;;  %v4798_v56 = vld [vmem:[#allocation7 + $0x28] sm:$0xff]  ;;  %vm3548_vm2 = vweird.f32 %v4759_v14 }
 0x4e4   : > { %v3320_v41 = vpop.f32.mrf.mxu1 }
 0x4e5   : > { %3409 = vrot.lane.b32.xlu0 %v3320_v41, %s4958_s30  ;;  %v3545_v41 = vsub.f32 1.0, %v3544_v22  ;;  %v6297_v22 = vperm.slane %v6213_v33, 5 }
 0x4e7   : > { %v3402_v55 = vpop.permute.xlu0 %3401  ;;  %v3378_v13 = vpop.permute.xlu2 %3377  ;;  %v3546_v38 = vmul.f32 %v4759_v14, %v3545_v41 }
 0x4e8   : > { %v3440_v46 = vsel %vm3436_vm6, %v3431_v32, %v3402_v55  ;;  %v3435_v39 = vsel %vm3427_vm5, %v3426_v6, %v3378_v13 }
 0x4e9   : > { %4379 = vmatmul.msk.f32.gmra.mxu2 %vm567_vm1, %v3440_v46  ;;  %v3547_v32 = vadd.f32 %v4759_v14, %v3546_v38 }
 0x4eb   : > { %v6240_v55 = vsel %vm3548_vm2, %v4759_v14, %v3547_v32 }
 0x4ef   : > { %v3404_v9 = vpop.permute.xlu0 %3403 }
 0x4f0   : > { %v3441_v31 = vsel %vm3436_vm6, %v3432_v12, %v3404_v9 }
 0x4f1   : > { %4380 = vmatmul.msk.f32.gmra.mxu2 %vm567_vm1, %v3441_v31 }
 0x51d   : > { %v3406_v36 = vpop.permute.xlu0 %3405 }
 0x51e   : > { %v3442_v47 = vsel %vm3436_vm6, %v3433_v52, %v3406_v36 }
 0x51f   : > { %4381 = vmatmul.msk.f32.gmra.mxu2 %vm567_vm1, %v3442_v47 }
 0x53c   : > { %v3487_v59 = vpop.f32.mrf.mxu2 }
 0x53d   : > { %v3488_v1 = vadd.f32 %v3487_v59, %v6216_v40 }
 0x53f   : > { %v3511_v21 = vadd.f32 %v4793_v60, %v3488_v1 }
 0x541   : > { %v3519_v45 = vsel %vm567_vm1, %v3511_v21, 0.0 }
 0x542   : > { %3520 = vadd.xlane.f32.xlu1 %v3519_v45 }
 0x54f   : > { %v3408_v23 = vpop.permute.xlu0 %3407 }
 0x550   : > { %v3443_v3 = vsel %vm3436_vm6, %v3434_v5, %v3408_v23 }
 0x551   : > { %4382 = vmatmul.msk.f32.gmra.mxu2 %vm567_vm1, %v3443_v3 }
 0x557   : > { %v3410_v34 = vpop.permute.xlu0 %3409 }
 0x558   : > { %v3444_v25 = vsel %vm3436_vm6, %v3435_v39, %v3410_v34 }
 0x559   : > { %4383 = vmatmul.msk.f32.gmra.mxu2 %vm567_vm1, %v3444_v25 }
 0x55c   : > { %v3490_v7 = vpop.f32.mrf.mxu2 }
 0x55d   : > { %v3491_v53 = vadd.f32 %v3490_v7, %v6216_v40 }
 0x55f   : > { %v3512_v63 = vadd.f32 %v4794_v8, %v3491_v53 }
 0x561   : > { %v3522_v42 = vsel %vm567_vm1, %v3512_v63, 0.0 }
 0x562   : > { %3523 = vadd.xlane.f32.xlu2 %v3522_v42 }
 0x564   : > { %v3493_v15 = vpop.f32.mrf.mxu2 }
 0x565   : > { %v3494_v49 = vadd.f32 %v3493_v15, %v6216_v40 }
 0x567   : > { %v3513_v2 = vadd.f32 %v4795_v29, %v3494_v49 }
 0x569   : > { %v3525_v37 = vsel %vm567_vm1, %v3513_v2, 0.0 }
 0x56a   : > { %3526 = vadd.xlane.f32.xlu0 %v3525_v37  ;;  %v534_v37 = vld [vmem:[%s5092_s20 + $0x18] sm:$0xff] }
 0x56b   : > { %3759 = vmatpush.msrb.mxu3 %v534_v37 }
 0x56c   : > { %v3496_v18 = vpop.f32.mrf.mxu2 }
 0x56d   : > { %v3497_v50 = vadd.f32 %v3496_v18, %v6216_v40  ;;  %v533_v18 = vld [vmem:[%s5092_s20 + $0x10] sm:$0xff] }
 0x56e   : > { %3760 = vmatpush.msrb.mxu3 %v533_v18 }
 0x56f   : > { %v3514_v28 = vadd.f32 %v4796_v35, %v3497_v50  ;;  %v532_v50 = vld [vmem:[%s5092_s20 + $0x8] sm:$0xff]  ;;  %v531_v35 = vld [vmem:[%s5092_s20] sm:$0xff] }
 0x570   : > { %3761 = vmatpush.msrb.mxu3 %v532_v50 }
 0x571   : > { %v3528_v30 = vsel %vm567_vm1, %v3514_v28, 0.0 }
 0x572   : > { %3529 = vadd.xlane.f32.xlu1 %v3528_v30  ;;  %3762 = vmatpush.msrb.mxu3 %v531_v35 }
 0x574   : > { %v3499_v0 = vpop.f32.mrf.mxu2 }
 0x575   : > { %v3500_v19 = vadd.f32 %v3499_v0, %v6216_v40 }
 0x577   : > { %v3515_v58 = vadd.f32 %v4797_v44, %v3500_v19 }
 0x579   : > { %v3531_v10 = vsel %vm567_vm1, %v3515_v58, 0.0 }
 0x57a   : > { %3532 = vadd.xlane.f32.xlu2 %v3531_v10 }
 0x5a2   : > { %v3502_v11 = vpop.f32.mrf.mxu2 }
 0x5a3   : > { %v3503_v43 = vadd.f32 %v3502_v11, %v6216_v40  ;;  %v6294_v11 = vperm.slane %v6213_v33, 4 }
 0x5a5   : > { %v3516_v61 = vadd.f32 %v4798_v56, %v3503_v43 }
 0x5a7   : > { %v3534_v17 = vsel %vm567_vm1, %v3516_v61, 0.0 }
 0x5a8   : > { %3535 = vadd.xlane.f32.xlu0 %v3534_v17 }
 0x5b5   : > { %v3521_v46 = vpop.xlane.xlu1 %3520 }
 0x5b6   : > { %v3550_v24 = vmul.f32 %v6240_v55, %v3521_v46 }
 0x5b8   : > { %v6243_v26 = vsub.f32 %v3511_v21, %v3550_v24 }
 0x5ba   : > { %v3566_v62 = vmul.f32 %v6243_v26, %v6243_v26 }
 0x5bc   : > { %v3574_v12 = vsel %vm567_vm1, %v3566_v62, 0.0 }
 0x5bd   : > { %3575 = vadd.xlane.f32.xlu1 %v3574_v12 }
 0x5d4   : > { %v3505_v9 = vpop.f32.mrf.mxu2 }
 0x5d5   : > { %v3506_v31 = vadd.f32 %v3505_v9, %v6216_v40  ;;  %v3524_v48 = vpop.xlane.xlu2 %3523 }
 0x5d6   : > { %v3551_v57 = vmul.f32 %v6240_v55, %v3524_v48 }
 0x5d7   : > { %v6250_v52 = vadd.f32 %v4799_v20, %v3506_v31 }
 0x5d8   : > { %v6252_v36 = vsub.f32 %v3512_v63, %v3551_v57 }
 0x5d9   : > { %v3537_v47 = vsel %vm567_vm1, %v6250_v52, 0.0 }
 0x5da   : > { %3538 = vadd.xlane.f32.xlu2 %v3537_v47  ;;  %v3567_v59 = vmul.f32 %v6252_v36, %v6252_v36 }
 0x5dc   : > { %v3508_v1 = vpop.f32.mrf.mxu2  ;;  %v3577_v60 = vsel %vm567_vm1, %v3567_v59, 0.0 }
 0x5dd   : > { %v3509_v21 = vadd.f32 %v3508_v1, %v6216_v40  ;;  %3578 = vadd.xlane.f32.xlu0 %v3577_v60  ;;  %v3527_v45 = vpop.xlane.xlu0 %3526 }
 0x5de   : > { %v3552_v27 = vmul.f32 %v6240_v55, %v3527_v45 }
 0x5df   : > { %v6261_v51 = vadd.f32 %v4800_v4, %v3509_v21 }
 0x5e0   : > { %v6263_v5 = vsub.f32 %v3513_v2, %v3552_v27 }
 0x5e1   : > { %v3540_v23 = vsel %vm567_vm1, %v6261_v51, 0.0 }
 0x5e2   : > { %3541 = vadd.xlane.f32.xlu1 %v3540_v23  ;;  %v3568_v3 = vmul.f32 %v6263_v5, %v6263_v5 }
 0x5e4   : > { %v3580_v54 = vsel %vm567_vm1, %v3568_v3, 0.0 }
 0x5e5   : > { %v3530_v13 = vpop.xlane.xlu1 %3529  ;;  %3581 = vadd.xlane.f32.xlu2 %v3580_v54 }
 0x5e6   : > { %v3553_v40 = vmul.f32 %v6240_v55, %v3530_v13 }
 0x5e8   : > { %v6271_v6 = vsub.f32 %v3514_v28, %v3553_v40 }
 0x5ea   : > { %v3569_v39 = vmul.f32 %v6271_v6, %v6271_v6 }
 0x5ec   : > { %v3583_v34 = vsel %vm567_vm1, %v3569_v39, 0.0 }
 0x5ed   : > { %v3533_v25 = vpop.xlane.xlu2 %3532  ;;  %3584 = vadd.xlane.f32.xlu0 %v3583_v34 }
 0x5ee   : > { %v3554_v7 = vmul.f32 %v6240_v55, %v3533_v25 }
 0x5f0   : > { %v6277_v53 = vsub.f32 %v3515_v58, %v3554_v7 }
 0x5f2   : > { %v3570_v8 = vmul.f32 %v6277_v53, %v6277_v53 }
 0x5f4   : > { %v3586_v63 = vsel %vm567_vm1, %v3570_v8, 0.0 }
 0x5f5   : > { %3587 = vadd.xlane.f32.xlu1 %v3586_v63 }
 0x61b   : > { %v3536_v42 = vpop.xlane.xlu0 %3535 }
 0x61c   : > { %v3555_v15 = vmul.f32 %v6240_v55, %v3536_v42 }
 0x61e   : > { %v6283_v49 = vsub.f32 %v3516_v61, %v3555_v15 }
 0x620   : > { %v3571_v29 = vmul.f32 %v6283_v49, %v6283_v49 }
 0x622   : > { %v3589_v2 = vsel %vm567_vm1, %v3571_v29, 0.0 }
 0x623   : > { %3590 = vadd.xlane.f32.xlu2 %v3589_v2 }
 0x630   : > { %v3576_v28 = vpop.xlane.xlu1 %3575 }
 0x631   : > { %v3598_v30 = vmul.f32 %v3576_v28, %v6240_v55 }
 0x633   : > { %v3606_v0 = vadd.f32 1e-05, %v3598_v30 }
 0x635   : > { %4760 = vrsqrt.f32 %v3606_v0  ;;  %vm3620_vm8 = vweird.f32 %v3606_v0 }
 0x63b   : > { %v4761_v19 = vpop.eup %4760 }
 0x63c   : > { %v3615_v44 = vmul.f32 %v4761_v19, %v3606_v0  ;;  %vm3621_vm7 = vweird.f32 %v4761_v19 }
 0x63d   : > { %vm3622_vm9 = vmor %vm3620_vm8, %vm3621_vm7 }
 0x63e   : > { %v3616_v58 = vmul.f32 %v4761_v19, %v3615_v44 }
 0x640   : > { %v3617_v10 = vmul.f32 0.5, %v3616_v58 }
 0x642   : > { %v3618_v16 = vsub.f32 1.5, %v3617_v10 }
 0x644   : > { %v3619_v14 = vmul.f32 %v4761_v19, %v3618_v16 }
 0x646   : > { %v3623_v43 = vsel %vm3622_vm9, %v4761_v19, %v3619_v14 }
 0x647   : > { %v3694_v56 = vmul.f32 %v3623_v43, %v6243_v26 }
 0x649   : > { %v3703_v61 = vmul.f32 %v6294_v11, %v3694_v56 }
 0x64b   : > { %v6302_v17 = vadd.f32 %v6297_v22, %v3703_v61 }
 0x64d   : > { %4384 = vmatmul.msk.f32.vlgmr.msrb.gmra.mxu3 %vm567_vm1, %v6302_v17  ;;  %v3539_v41 = vpop.xlane.xlu2 %3538 }
 0x64e   : > { %v3556_v38 = vmul.f32 %v6240_v55, %v3539_v41 }
 0x650   : > { %v6308_v32 = vsub.f32 %v6250_v52, %v3556_v38  ;;  %v3579_v46 = vpop.xlane.xlu0 %3578 }
 0x651   : > { %v3599_v24 = vmul.f32 %v3579_v46, %v6240_v55 }
 0x652   : > { %v3572_v26 = vmul.f32 %v6308_v32, %v6308_v32 }
 0x653   : > { %v3607_v62 = vadd.f32 1e-05, %v3599_v24 }
 0x654   : > { %v3592_v12 = vsel %vm567_vm1, %v3572_v26, 0.0 }
 0x655   : > { %4762 = vrsqrt.f32 %v3607_v62  ;;  %3593 = vadd.xlane.f32.xlu0 %v3592_v12  ;;  %v3542_v9 = vpop.xlane.xlu1 %3541  ;;  %vm3630_vm11 = vweird.f32 %v3607_v62  ;;  %v541_v12 = vld [vmem:[%s5117_s15 + $0x30] sm:$0xff] }
 0x656   : > { %v3557_v31 = vmul.f32 %v6240_v55, %v3542_v9 }
 0x658   : > { %v6316_v48 = vsub.f32 %v6261_v51, %v3557_v31  ;;  %v3582_v57 = vpop.xlane.xlu2 %3581 }
 0x659   : > { %v3600_v20 = vmul.f32 %v3582_v57, %v6240_v55 }
 0x65a   : > { %v3573_v52 = vmul.f32 %v6316_v48, %v6316_v48 }
 0x65b   : > { %v4763_v47 = vpop.eup %4762  ;;  %v3608_v59 = vadd.f32 1e-05, %v3600_v20 }
 0x65c   : > { %v3625_v1 = vmul.f32 %v4763_v47, %v3607_v62  ;;  %v3595_v60 = vsel %vm567_vm1, %v3573_v52, 0.0  ;;  %vm3631_vm10 = vweird.f32 %v4763_v47  ;;  %v542_v62 = vld [vmem:[%s5117_s15 + $0x38] sm:$0xff] }
 0x65d   : > { %4764 = vrsqrt.f32 %v3608_v59  ;;  %3596 = vadd.xlane.f32.xlu1 %v3595_v60  ;;  %vm3632_vm12 = vmor %vm3630_vm11, %vm3631_vm10  ;;  %vm3640_vm15 = vweird.f32 %v3608_v59  ;;  %3830 = vmatpush.msrb.mxu0 %v542_v62  ;;  %vm3797_vm10 = vcmask 523264  }
 0x65e   : > { %v3626_v21 = vmul.f32 %v4763_v47, %v3625_v1 }
 0x65f   : > { %3831 = vmatpush.msrb.mxu0 %v541_v12 }
 0x660   : > { %v3627_v45 = vmul.f32 0.5, %v3626_v21  ;;  %v3585_v27 = vpop.xlane.xlu0 %3584 }
 0x661   : > { %v3601_v4 = vmul.f32 %v3585_v27, %v6240_v55 }
 0x662   : > { %v3628_v51 = vsub.f32 1.5, %v3627_v45  ;;  %v540_v45 = vld [vmem:[%s5117_s15 + $0x28] sm:$0xff] }
 0x663   : > { %v4765_v23 = vpop.eup %4764  ;;  %v3609_v3 = vadd.f32 1e-05, %v3601_v4  ;;  %3832 = vmatpush.msrb.mxu0 %v540_v45  ;;  %v539_v4 = vld [vmem:[%s5117_s15 + $0x20] sm:$0xff] }
 0x664   : > { %v3629_v54 = vmul.f32 %v4763_v47, %v3628_v51  ;;  %v3635_v13 = vmul.f32 %v4765_v23, %v3608_v59  ;;  %vm3641_vm13 = vweird.f32 %v4765_v23 }
 0x665   : > { %4766 = vrsqrt.f32 %v3609_v3  ;;  %vm3642_vm0 = vmor %vm3640_vm15, %vm3641_vm13  ;;  %vm3650_vm3 = vweird.f32 %v3609_v3  ;;  %3833 = vmatpush.msrb.mxu0 %v539_v4 }
 0x666   : > { %v3633_v40 = vsel %vm3632_vm12, %v4763_v47, %v3629_v54  ;;  %v3636_v39 = vmul.f32 %v4765_v23, %v3635_v13  ;;  %v536_v54 = vld [vmem:[%s5117_s15 + $0x8] sm:$0xff] }
 0x667   : > { %v3695_v34 = vmul.f32 %v3633_v40, %v6252_v36 }
 0x668   : > { %v3637_v25 = vmul.f32 0.5, %v3636_v39  ;;  %v3588_v7 = vpop.xlane.xlu1 %3587 }
 0x669   : > { %v3602_v8 = vmul.f32 %v3588_v7, %v6240_v55  ;;  %v3704_v63 = vmul.f32 %v6294_v11, %v3695_v34  ;;  %v6374_v34 = vld [vmem:[%s488_s25] ss:$0 sm:$0xff] }
 0x66a   : > { %v3638_v42 = vsub.f32 1.5, %v3637_v25 }
 0x66b   : > { %v4767_v15 = vpop.eup %4766  ;;  %v3610_v29 = vadd.f32 1e-05, %v3602_v8  ;;  %v6327_v2 = vadd.f32 %v6297_v22, %v3704_v63 }
 0x66c   : > { %v3639_v37 = vmul.f32 %v4765_v23, %v3638_v42  ;;  %v3645_v18 = vmul.f32 %v4767_v15, %v3609_v3  ;;  %vm3651_vm14 = vweird.f32 %v4767_v15  ;;  %v537_v3 = vld [vmem:[%s5117_s15 + $0x10] sm:$0xff] }
 0x66d   : > { %4768 = vrsqrt.f32 %v3610_v29  ;;  %4385 = vmatmul.msk.f32.gmra.mxu3 %vm567_vm1, %v6327_v2  ;;  %vm3652_vm4 = vmor %vm3650_vm3, %vm3651_vm14  ;;  %vm3660_vm6 = vweird.f32 %v3610_v29 }
 0x66e   : > { %v3643_v36 = vsel %vm3642_vm0, %v4765_v23, %v3639_v37  ;;  %v3646_v50 = vmul.f32 %v4767_v15, %v3645_v18  ;;  %v538_v23 = vld [vmem:[%s5117_s15 + $0x18] sm:$0xff] }
 0x66f   : > { %v3696_v35 = vmul.f32 %v3643_v36, %v6263_v5  ;;  %3834 = vmatpush.msrb.mxu0 %v538_v23 }
 0x670   : > { %v3647_v28 = vmul.f32 0.5, %v3646_v50 }
 0x671   : > { %v3705_v30 = vmul.f32 %v6294_v11, %v3696_v35  ;;  %3835 = vmatpush.msrb.mxu0 %v537_v3 }
 0x672   : > { %v3648_v0 = vsub.f32 1.5, %v3647_v28 }
 0x673   : > { %v4769_v19 = vpop.eup %4768  ;;  %v6334_v44 = vadd.f32 %v6297_v22, %v3705_v30  ;;  %3836 = vmatpush.msrb.mxu0 %v536_v54 }
 0x674   : > { %v3649_v58 = vmul.f32 %v4767_v15, %v3648_v0  ;;  %v3655_v10 = vmul.f32 %v4769_v19, %v3610_v29  ;;  %vm3661_vm5 = vweird.f32 %v4769_v19 }
 0x675   : > { %4386 = vmatmul.msk.f32.gmra.mxu3 %vm567_vm1, %v6334_v44  ;;  %vm3662_vm2 = vmor %vm3660_vm6, %vm3661_vm5 }
 0x676   : > { %v3653_v16 = vsel %vm3652_vm4, %v4767_v15, %v3649_v58  ;;  %v3656_v14 = vmul.f32 %v4769_v19, %v3655_v10 }
 0x677   : > { %v3697_v5 = vmul.f32 %v3653_v16, %v6271_v6 }
 0x678   : > { %v3657_v43 = vmul.f32 0.5, %v3656_v14 }
 0x679   : > { %v3706_v56 = vmul.f32 %v6294_v11, %v3697_v5 }
 0x67a   : > { %v3658_v61 = vsub.f32 1.5, %v3657_v43 }
 0x67b   : > { %v6341_v41 = vadd.f32 %v6297_v22, %v3706_v56 }
 0x67c   : > { %v3659_v38 = vmul.f32 %v4769_v19, %v3658_v61 }
 0x67d   : > { %4387 = vmatmul.msk.f32.gmra.mxu3 %vm567_vm1, %v6341_v41 }
 0x67e   : > { %v3663_v46 = vsel %vm3662_vm2, %v4769_v19, %v3659_v38 }
 0x67f   : > { %v3698_v24 = vmul.f32 %v3663_v46, %v6277_v53 }
 0x681   : > { %v3707_v6 = vmul.f32 %v6294_v11, %v3698_v24 }
 0x683   : > { %v6348_v26 = vadd.f32 %v6297_v22, %v3707_v6 }
 0x685   : > { %4388 = vmatmul.msk.f32.gmra.mxu3 %vm567_vm1, %v6348_v26 }
 0x696   : > { %v3591_v9 = vpop.xlane.xlu2 %3590 }
 0x697   : > { %v3603_v31 = vmul.f32 %v3591_v9, %v6240_v55 }
 0x699   : > { %v3611_v57 = vadd.f32 1e-05, %v3603_v31 }
 0x69b   : > { %4770 = vrsqrt.f32 %v3611_v57  ;;  %vm3670_vm8 = vweird.f32 %v3611_v57 }
 0x6a1   : > { %v4771_v53 = vpop.eup %4770 }
 0x6a2   : > { %v3665_v20 = vmul.f32 %v4771_v53, %v3611_v57  ;;  %vm3671_vm7 = vweird.f32 %v4771_v53 }
 0x6a3   : > { %vm3672_vm9 = vmor %vm3670_vm8, %vm3671_vm7 }
 0x6a4   : > { %v3666_v52 = vmul.f32 %v4771_v53, %v3665_v20 }
 0x6a6   : > { %v3667_v47 = vmul.f32 0.5, %v3666_v52 }
 0x6a8   : > { %v3668_v59 = vsub.f32 1.5, %v3667_v47 }
 0x6aa   : > { %v3669_v1 = vmul.f32 %v4771_v53, %v3668_v59  ;;  %v3796_v59 = vperm.slane %v6213_v33, 6 }
 0x6ac   : > { %v3673_v60 = vsel %vm3672_vm9, %v4771_v53, %v3669_v1 }
 0x6ad   : > { %v3699_v21 = vmul.f32 %v3673_v60, %v6283_v49  ;;  %v535_v49 = vld [vmem:[%s5117_s15] sm:$0xff]  ;;  %s4081_s15 = sshll.u32 %s4960_s3, 4  ;;  %s4082_s15 = int_to_ptr.vmem [resolvable:$true] %s4081_s15 }
 0x6ae   : > { %3837 = vmatpush.msrb.mxu0 %v535_v49 }
 0x6af   : > { %v3708_v27 = vmul.f32 %v6294_v11, %v3699_v21 }
 0x6b1   : > { %v6360_v51 = vadd.f32 %v6297_v22, %v3708_v27 }
 0x6b3   : > { %4389 = vmatmul.msk.f32.gmra.mxu3 %vm567_vm1, %v6360_v51 }
 0x6c8   : > { %v3594_v13 = vpop.xlane.xlu0 %3593 }
 0x6c9   : > { %v3604_v40 = vmul.f32 %v3594_v13, %v6240_v55 }
 0x6cb   : > { %v3612_v39 = vadd.f32 1e-05, %v3604_v40 }
 0x6cd   : > { %4772 = vrsqrt.f32 %v3612_v39  ;;  %vm3680_vm12 = vweird.f32 %v3612_v39 }
 0x6d0   : > { %v3764_v25 = vpop.f32.mrf.mxu3  ;;  %v3597_v7 = vpop.xlane.xlu1 %3596 }
 0x6d1   : > { %v3765_v8 = vadd.f32 %v6374_v34, %v3764_v25  ;;  %v3605_v63 = vmul.f32 %v3597_v7, %v6240_v55 }
 0x6d3   : > { %v4773_v42 = vpop.eup %4772  ;;  %v3788_v15 = vmax.f32 %v3765_v8, 0.0  ;;  %v3613_v29 = vadd.f32 1e-05, %v3605_v63 }
 0x6d4   : > { %v3675_v37 = vmul.f32 %v4773_v42, %v3612_v39  ;;  %vm3681_vm11 = vweird.f32 %v4773_v42 }
 0x6d5   : > { %4774 = vrsqrt.f32 %v3613_v29  ;;  %4392 = vmatmul.msk.f32.vlgmr.msrb.gmra.mxu0 %vm3797_vm10, %v3788_v15  ;;  %vm3682_vm13 = vmor %vm3680_vm12, %vm3681_vm11  ;;  %vm3690_vm0 = vweird.f32 %v3613_v29 }
 0x6d6   : > { %v3676_v18 = vmul.f32 %v4773_v42, %v3675_v37 }
 0x6d8   : > { %v3677_v36 = vmul.f32 0.5, %v3676_v18 }
 0x6da   : > { %v3678_v50 = vsub.f32 1.5, %v3677_v36 }
 0x6db   : > { %v4775_v35 = vpop.eup %4774 }
 0x6dc   : > { %v3679_v28 = vmul.f32 %v4773_v42, %v3678_v50  ;;  %v3685_v30 = vmul.f32 %v4775_v35, %v3613_v29  ;;  %vm3691_vm15 = vweird.f32 %v4775_v35 }
 0x6dd   : > { %vm3692_vm14 = vmor %vm3690_vm0, %vm3691_vm15 }
 0x6de   : > { %v3683_v0 = vsel %vm3682_vm13, %v4773_v42, %v3679_v28  ;;  %v3686_v19 = vmul.f32 %v4775_v35, %v3685_v30 }
 0x6df   : > { %v3700_v58 = vmul.f32 %v3683_v0, %v6308_v32 }
 0x6e0   : > { %v3687_v10 = vmul.f32 0.5, %v3686_v19 }
 0x6e1   : > { %v3709_v16 = vmul.f32 %v6294_v11, %v3700_v58 }
 0x6e2   : > { %v3688_v14 = vsub.f32 1.5, %v3687_v10 }
 0x6e3   : > { %v6382_v5 = vadd.f32 %v6297_v22, %v3709_v16 }
 0x6e4   : > { %v3689_v43 = vmul.f32 %v4775_v35, %v3688_v14 }
 0x6e5   : > { %4390 = vmatmul.msk.f32.gmra.mxu3 %vm567_vm1, %v6382_v5 }
 0x6e6   : > { %v3693_v56 = vsel %vm3692_vm14, %v4775_v35, %v3689_v43 }
 0x6e7   : > { %v3701_v61 = vmul.f32 %v3693_v56, %v6316_v48 }
 0x6e9   : > { %v3710_v38 = vmul.f32 %v6294_v11, %v3701_v61 }
 0x6eb   : > { %v6389_v32 = vadd.f32 %v6297_v22, %v3710_v38 }
 0x6ed   : > { %4391 = vmatmul.msk.f32.gmra.mxu3 %vm567_vm1, %v6389_v32 }
 0x6f0   : > { %v3767_v46 = vpop.f32.mrf.mxu3 }
 0x6f1   : > { %v3768_v24 = vadd.f32 %v6374_v34, %v3767_v46 }
 0x6f3   : > { %v3789_v6 = vmax.f32 %v3768_v24, 0.0 }
 0x6f5   : > { %4393 = vmatmul.msk.f32.gmra.mxu0 %vm3797_vm10, %v3789_v6 }
 0x6f8   : > { %v3770_v62 = vpop.f32.mrf.mxu3 }
 0x6f9   : > { %v3771_v12 = vadd.f32 %v6374_v34, %v3770_v62 }
 0x6fb   : > { %v3790_v9 = vmax.f32 %v3771_v12, 0.0 }
 0x6fd   : > { %4394 = vmatmul.msk.f32.gmra.mxu0 %vm3797_vm10, %v3790_v9 }
 0x700   : > { %v3773_v48 = vpop.f32.mrf.mxu3 }
 0x701   : > { %v3774_v11 = vadd.f32 %v6374_v34, %v3773_v48 }
 0x703   : > { %v3791_v22 = vmax.f32 %v3774_v11, 0.0 }
 0x705   : > { %4395 = vmatmul.msk.f32.gmra.mxu0 %vm3797_vm10, %v3791_v22 }
 0x708   : > { %v3776_v31 = vpop.f32.mrf.mxu3 }
 0x709   : > { %v3777_v57 = vadd.f32 %v6374_v34, %v3776_v31 }
 0x70b   : > { %v3792_v53 = vmax.f32 %v3777_v57, 0.0 }
 0x70d   : > { %4396 = vmatmul.msk.f32.gmra.mxu0 %vm3797_vm10, %v3792_v53 }
 0x736   : > { %v3779_v20 = vpop.f32.mrf.mxu3 }
 0x737   : > { %v3780_v52 = vadd.f32 %v6374_v34, %v3779_v20 }
 0x739   : > { %v3793_v47 = vmax.f32 %v3780_v52, 0.0 }
 0x73b   : > { %4397 = vmatmul.msk.f32.gmra.mxu0 %vm3797_vm10, %v3793_v47 }
 0x752   : > { %v3839_v1 = vpop.f32.mrf.mxu0 }
 0x753   : > { %v3840_v60 = vadd.f32 %v3839_v1, %v3796_v59 }
 0x755   : > { %v3863_v21 = vadd.f32 %v3840_v60, %v6302_v17 }
 0x757   : > { %v3871_v45 = vsel %vm567_vm1, %v3863_v21, 0.0 }
 0x758   : > { %3872 = vadd.xlane.f32.xlu2 %v3871_v45 }
 0x768   : > { %v3782_v27 = vpop.f32.mrf.mxu3 }
 0x769   : > { %v3783_v4 = vadd.f32 %v6374_v34, %v3782_v27 }
 0x76b   : > { %v3794_v23 = vmax.f32 %v3783_v4, 0.0 }
 0x76d   : > { %4398 = vmatmul.msk.f32.gmra.mxu0 %vm3797_vm10, %v3794_v23 }
 0x770   : > { %v3785_v3 = vpop.f32.mrf.mxu3 }
 0x771   : > { %v3786_v54 = vadd.f32 %v6374_v34, %v3785_v3 }
 0x772   : > { %v3842_v49 = vpop.f32.mrf.mxu0 }
 0x773   : > { %v3795_v13 = vmax.f32 %v3786_v54, 0.0  ;;  %v3843_v40 = vadd.f32 %v3842_v49, %v3796_v59 }
 0x775   : > { %v3864_v39 = vadd.f32 %v3843_v40, %v6327_v2  ;;  %4399 = vmatmul.msk.f32.gmra.mxu0 %vm3797_vm10, %v3795_v13 }
 0x777   : > { %v3874_v17 = vsel %vm567_vm1, %v3864_v39, 0.0 }
 0x778   : > { %3875 = vadd.xlane.f32.xlu0 %v3874_v17 }
 0x77a   : > { %v3845_v25 = vpop.f32.mrf.mxu0 }
 0x77b   : > { %v3846_v7 = vadd.f32 %v3845_v25, %v3796_v59 }
 0x77d   : > { %v3865_v8 = vadd.f32 %v3846_v7, %v6334_v44  ;;  %v6458_v7 = vperm.slane %v6213_v33, 7 }
 0x77f   : > { %v3877_v63 = vsel %vm567_vm1, %v3865_v8, 0.0 }
 0x780   : > { %3878 = vadd.xlane.f32.xlu1 %v3877_v63  ;;  %v6461_v63 = vld [vmem:[%s5127_s12 + $0x10] ss:$0 sm:$0xff] }
 0x782   : > { %v3848_v42 = vpop.f32.mrf.mxu0 }
 0x783   : > { %v3849_v15 = vadd.f32 %v3848_v42, %v3796_v59 }
 0x785   : > { %v3866_v34 = vadd.f32 %v3849_v15, %v6341_v41 }
 0x787   : > { %v3880_v29 = vsel %vm567_vm1, %v3866_v34, 0.0 }
 0x788   : > { %3881 = vadd.xlane.f32.xlu2 %v3880_v29 }
 0x78a   : > { %v3851_v2 = vpop.f32.mrf.mxu0 }
 0x78b   : > { %v3852_v37 = vadd.f32 %v3851_v2, %v3796_v59 }
 0x78d   : > { %v3867_v18 = vadd.f32 %v3852_v37, %v6348_v26 }
 0x78f   : > { %v3883_v36 = vsel %vm567_vm1, %v3867_v18, 0.0 }
 0x790   : > { %3884 = vadd.xlane.f32.xlu0 %v3883_v36 }
 0x7b8   : > { %v3854_v50 = vpop.f32.mrf.mxu0 }
 0x7b9   : > { %v3855_v35 = vadd.f32 %v3854_v50, %v3796_v59 }
 0x7bb   : > { %v3868_v44 = vadd.f32 %v3855_v35, %v6360_v51 }
 0x7bd   : > { %v3886_v28 = vsel %vm567_vm1, %v3868_v44, 0.0 }
 0x7be   : > { %3887 = vadd.xlane.f32.xlu1 %v3886_v28 }
 0x7cb   : > { %v3873_v30 = vpop.xlane.xlu2 %3872 }
 0x7cc   : > { %v3895_v41 = vmul.f32 %v3873_v30, %v6240_v55 }
 0x7ce   : > { %v3903_v0 = vsub.f32 %v3863_v21, %v3895_v41 }
 0x7d0   : > { %v3911_v19 = vmul.f32 %v3903_v0, %v3903_v0 }
 0x7d2   : > { %v3919_v58 = vsel %vm567_vm1, %v3911_v19, 0.0 }
 0x7d3   : > { %3920 = vadd.xlane.f32.xlu1 %v3919_v58 }
 0x7ea   : > { %v3857_v10 = vpop.f32.mrf.mxu0 }
 0x7eb   : > { %v3858_v26 = vadd.f32 %v3857_v10, %v3796_v59  ;;  %v3876_v16 = vpop.xlane.xlu0 %3875 }
 0x7ec   : > { %v3896_v14 = vmul.f32 %v3876_v16, %v6240_v55 }
 0x7ed   : > { %v3869_v43 = vadd.f32 %v3858_v26, %v6382_v5 }
 0x7ee   : > { %v6424_v56 = vsub.f32 %v3864_v39, %v3896_v14 }
 0x7ef   : > { %v3889_v51 = vsel %vm567_vm1, %v3869_v43, 0.0 }
 0x7f0   : > { %3890 = vadd.xlane.f32.xlu2 %v3889_v51  ;;  %v3912_v24 = vmul.f32 %v6424_v56, %v6424_v56 }
 0x7f2   : > { %v3860_v61 = vpop.f32.mrf.mxu0  ;;  %v3922_v5 = vsel %vm567_vm1, %v3912_v24, 0.0 }
 0x7f3   : > { %v3861_v38 = vadd.f32 %v3860_v61, %v3796_v59  ;;  %v3879_v46 = vpop.xlane.xlu1 %3878 }
 0x7f4   : > { %v3897_v6 = vmul.f32 %v3879_v46, %v6240_v55 }
 0x7f5   : > { %v3870_v62 = vadd.f32 %v3861_v38, %v6389_v32 }
 0x7f6   : > { %v6431_v12 = vsub.f32 %v3865_v8, %v3897_v6 }
 0x7f7   : > { %v3892_v9 = vsel %vm567_vm1, %v3870_v62, 0.0 }
 0x7f8   : > { %3893 = vadd.xlane.f32.xlu0 %v3892_v9  ;;  %3923 = vadd.xlane.f32.xlu2 %v3922_v5  ;;  %v3913_v11 = vmul.f32 %v6431_v12, %v6431_v12 }
 0x7fa   : > { %v3925_v57 = vsel %vm567_vm1, %v3913_v11, 0.0 }
 0x7fb   : > { %v3882_v48 = vpop.xlane.xlu2 %3881 }
 0x7fc   : > { %v3898_v22 = vmul.f32 %v3882_v48, %v6240_v55 }
 0x7fe   : > { %v6438_v31 = vsub.f32 %v3866_v34, %v3898_v22 }
 0x800   : > { %3926 = vadd.xlane.f32.xlu0 %v3925_v57  ;;  %v3914_v32 = vmul.f32 %v6438_v31, %v6438_v31 }
 0x802   : > { %v3928_v53 = vsel %vm567_vm1, %v3914_v32, 0.0 }
 0x803   : > { %v3885_v20 = vpop.xlane.xlu0 %3884  ;;  %3929 = vadd.xlane.f32.xlu1 %v3928_v53 }
 0x804   : > { %v3899_v52 = vmul.f32 %v3885_v20, %v6240_v55 }
 0x806   : > { %v6445_v47 = vsub.f32 %v3867_v18, %v3899_v52 }
 0x808   : > { %v3915_v59 = vmul.f32 %v6445_v47, %v6445_v47 }
 0x80a   : > { %v3931_v1 = vsel %vm567_vm1, %v3915_v59, 0.0 }
 0x80b   : > { %3932 = vadd.xlane.f32.xlu2 %v3931_v1 }
 0x831   : > { %v3888_v60 = vpop.xlane.xlu1 %3887 }
 0x832   : > { %v3900_v21 = vmul.f32 %v3888_v60, %v6240_v55 }
 0x834   : > { %v6451_v45 = vsub.f32 %v3868_v44, %v3900_v21 }
 0x836   : > { %v3916_v27 = vmul.f32 %v6451_v45, %v6451_v45 }
 0x838   : > { %v3934_v4 = vsel %vm567_vm1, %v3916_v27, 0.0 }
 0x839   : > { %3935 = vadd.xlane.f32.xlu0 %v3934_v4 }
 0x846   : > { %v3921_v23 = vpop.xlane.xlu1 %3920 }
 0x847   : > { %v3943_v3 = vmul.f32 %v3921_v23, %v6240_v55 }
 0x849   : > { %v3951_v54 = vadd.f32 1e-05, %v3943_v3 }
 0x84b   : > { %4776 = vrsqrt.f32 %v3951_v54  ;;  %vm3965_vm4 = vweird.f32 %v3951_v54 }
 0x851   : > { %v4777_v49 = vpop.eup %4776 }
 0x852   : > { %v3960_v13 = vmul.f32 %v4777_v49, %v3951_v54  ;;  %vm3966_vm3 = vweird.f32 %v4777_v49 }
 0x853   : > { %vm3967_vm5 = vmor %vm3965_vm4, %vm3966_vm3 }
 0x854   : > { %v3961_v40 = vmul.f32 %v4777_v49, %v3960_v13 }
 0x856   : > { %v3962_v39 = vmul.f32 0.5, %v3961_v40 }
 0x858   : > { %v3963_v17 = vsub.f32 1.5, %v3962_v39 }
 0x85a   : > { %v3964_v25 = vmul.f32 %v4777_v49, %v3963_v17 }
 0x85c   : > { %v3968_v8 = vsel %vm3967_vm5, %v4777_v49, %v3964_v25 }
 0x85d   : > { %v4039_v42 = vmul.f32 %v3968_v8, %v3903_v0 }
 0x85f   : > { %v4048_v15 = vmul.f32 %v6458_v7, %v4039_v42 }
 0x861   : > { %v4057_v34 = vadd.f32 %v6461_v63, %v4048_v15 }
 0x863   : > { %4065 = vst.msk [vmem:[#allocation7] sm:$0xff] %vm567_vm1, %v4057_v34  ;;  %v3891_v29 = vpop.xlane.xlu2 %3890 }
 0x864   : > { %v3901_v2 = vmul.f32 %v3891_v29, %v6240_v55 }
 0x866   : > { %v6467_v37 = vsub.f32 %v3869_v43, %v3901_v2 }
 0x868   : > { %v3917_v33 = vmul.f32 %v6467_v37, %v6467_v37 }
 0x86a   : > { %v3937_v18 = vsel %vm567_vm1, %v3917_v33, 0.0 }
 0x86b   : > { %v3894_v36 = vpop.xlane.xlu0 %3893  ;;  %3938 = vadd.xlane.f32.xlu1 %v3937_v18  ;;  %v3924_v50 = vpop.xlane.xlu2 %3923 }
 0x86c   : > { %v3902_v35 = vmul.f32 %v3894_v36, %v6240_v55  ;;  %v3944_v44 = vmul.f32 %v3924_v50, %v6240_v55 }
 0x86e   : > { %v6474_v28 = vsub.f32 %v3870_v62, %v3902_v35  ;;  %v3952_v30 = vadd.f32 1e-05, %v3944_v44 }
 0x870   : > { %4778 = vrsqrt.f32 %v3952_v30  ;;  %v3918_v41 = vmul.f32 %v6474_v28, %v6474_v28  ;;  %vm3975_vm2 = vweird.f32 %v3952_v30 }
 0x872   : > { %v3940_v0 = vsel %vm567_vm1, %v3918_v41, 0.0 }
 0x873   : > { %v3927_v19 = vpop.xlane.xlu0 %3926  ;;  %3941 = vadd.xlane.f32.xlu2 %v3940_v0 }
 0x874   : > { %v3945_v58 = vmul.f32 %v3927_v19, %v6240_v55 }
 0x876   : > { %v4779_v10 = vpop.eup %4778  ;;  %v3953_v26 = vadd.f32 1e-05, %v3945_v58  ;;  %v3930_v16 = vpop.xlane.xlu1 %3929 }
 0x877   : > { %v3970_v14 = vmul.f32 %v4779_v10, %v3952_v30  ;;  %v3946_v43 = vmul.f32 %v3930_v16, %v6240_v55  ;;  %vm3976_vm6 = vweird.f32 %v4779_v10 }
 0x878   : > { %4780 = vrsqrt.f32 %v3953_v26  ;;  %vm3977_vm7 = vmor %vm3975_vm2, %vm3976_vm6  ;;  %vm3985_vm9 = vweird.f32 %v3953_v26 }
 0x879   : > { %v3971_v51 = vmul.f32 %v4779_v10, %v3970_v14  ;;  %v3954_v61 = vadd.f32 1e-05, %v3946_v43 }
 0x87b   : > { %v3972_v38 = vmul.f32 0.5, %v3971_v51  ;;  %4782 = vrsqrt.f32 %v3954_v61  ;;  %vm3995_vm12 = vweird.f32 %v3954_v61 }
 0x87d   : > { %v3973_v46 = vsub.f32 1.5, %v3972_v38 }
 0x87e   : > { %v4781_v24 = vpop.eup %4780  ;;  %v3933_v6 = vpop.xlane.xlu2 %3932 }
 0x87f   : > { %v3974_v62 = vmul.f32 %v4779_v10, %v3973_v46  ;;  %v3980_v9 = vmul.f32 %v4781_v24, %v3953_v26  ;;  %v3947_v5 = vmul.f32 %v3933_v6, %v6240_v55  ;;  %vm3986_vm8 = vweird.f32 %v4781_v24 }
 0x880   : > { %vm3987_vm10 = vmor %vm3985_vm9, %vm3986_vm8 }
 0x881   : > { %v4783_v48 = vpop.eup %4782  ;;  %v3978_v11 = vsel %vm3977_vm7, %v4779_v10, %v3974_v62  ;;  %v3981_v22 = vmul.f32 %v4781_v24, %v3980_v9  ;;  %v3955_v57 = vadd.f32 1e-05, %v3947_v5 }
 0x882   : > { %v4040_v32 = vmul.f32 %v3978_v11, %v6424_v56  ;;  %v3990_v53 = vmul.f32 %v4783_v48, %v3954_v61  ;;  %vm3996_vm11 = vweird.f32 %v4783_v48 }
 0x883   : > { %v3982_v20 = vmul.f32 0.5, %v3981_v22  ;;  %4784 = vrsqrt.f32 %v3955_v57  ;;  %vm3997_vm13 = vmor %vm3995_vm12, %vm3996_vm11  ;;  %vm4005_vm0 = vweird.f32 %v3955_v57 }
 0x884   : > { %v4049_v52 = vmul.f32 %v6458_v7, %v4040_v32  ;;  %v3991_v59 = vmul.f32 %v4783_v48, %v3990_v53 }
 0x885   : > { %v3983_v1 = vsub.f32 1.5, %v3982_v20 }
 0x886   : > { %v4058_v60 = vadd.f32 %v6461_v63, %v4049_v52  ;;  %v3992_v21 = vmul.f32 0.5, %v3991_v59 }
 0x887   : > { %v3984_v27 = vmul.f32 %v4781_v24, %v3983_v1 }
 0x888   : > { %4066 = vst.msk [vmem:[#allocation7 + $0x8] sm:$0xff] %vm567_vm1, %v4058_v60  ;;  %v3993_v4 = vsub.f32 1.5, %v3992_v21 }
 0x889   : > { %v4785_v23 = vpop.eup %4784  ;;  %v3988_v56 = vsel %vm3987_vm10, %v4781_v24, %v3984_v27 }
 0x88a   : > { %v4041_v3 = vmul.f32 %v3988_v56, %v6431_v12  ;;  %v3994_v54 = vmul.f32 %v4783_v48, %v3993_v4  ;;  %v4000_v49 = vmul.f32 %v4785_v23, %v3955_v57  ;;  %vm4006_vm15 = vweird.f32 %v4785_v23 }
 0x88b   : > { %vm4007_vm14 = vmor %vm4005_vm0, %vm4006_vm15 }
 0x88c   : > { %v4050_v13 = vmul.f32 %v6458_v7, %v4041_v3  ;;  %v3998_v40 = vsel %vm3997_vm13, %v4783_v48, %v3994_v54  ;;  %v4001_v39 = vmul.f32 %v4785_v23, %v4000_v49 }
 0x88d   : > { %v4042_v17 = vmul.f32 %v3998_v40, %v6438_v31 }
 0x88e   : > { %v4059_v25 = vadd.f32 %v6461_v63, %v4050_v13  ;;  %v4002_v8 = vmul.f32 0.5, %v4001_v39 }
 0x88f   : > { %v4051_v42 = vmul.f32 %v6458_v7, %v4042_v17 }
 0x890   : > { %4067 = vst.msk [vmem:[#allocation7 + $0x10] sm:$0xff] %vm567_vm1, %v4059_v25  ;;  %v4003_v15 = vsub.f32 1.5, %v4002_v8 }
 0x891   : > { %v4060_v12 = vadd.f32 %v6461_v63, %v4051_v42 }
 0x892   : > { %v4004_v34 = vmul.f32 %v4785_v23, %v4003_v15 }
 0x893   : > { %4068 = vst.msk [vmem:[#allocation7 + $0x18] sm:$0xff] %vm567_vm1, %v4060_v12 }
 0x894   : > { %v4008_v29 = vsel %vm4007_vm14, %v4785_v23, %v4004_v34 }
 0x895   : > { %v4043_v2 = vmul.f32 %v4008_v29, %v6445_v47 }
 0x897   : > { %v4052_v31 = vmul.f32 %v6458_v7, %v4043_v2 }
 0x899   : > { %v4061_v33 = vadd.f32 %v6461_v63, %v4052_v31 }
 0x89b   : > { %4069 = vst.msk [vmem:[#allocation7 + $0x20] sm:$0xff] %vm567_vm1, %v4061_v33 }
 0x8ac   : > { %v3936_v18 = vpop.xlane.xlu0 %3935 }
 0x8ad   : > { %v3948_v36 = vmul.f32 %v3936_v18, %v6240_v55 }
 0x8af   : > { %v3956_v50 = vadd.f32 1e-05, %v3948_v36 }
 0x8b1   : > { %4786 = vrsqrt.f32 %v3956_v50  ;;  %vm4015_vm4 = vweird.f32 %v3956_v50 }
 0x8b7   : > { %v4787_v35 = vpop.eup %4786 }
 0x8b8   : > { %v4010_v44 = vmul.f32 %v4787_v35, %v3956_v50  ;;  %vm4016_vm3 = vweird.f32 %v4787_v35 }
 0x8b9   : > { %vm4017_vm5 = vmor %vm4015_vm4, %vm4016_vm3 }
 0x8ba   : > { %v4011_v30 = vmul.f32 %v4787_v35, %v4010_v44 }
 0x8bc   : > { %v4012_v41 = vmul.f32 0.5, %v4011_v30 }
 0x8be   : > { %v4013_v0 = vsub.f32 1.5, %v4012_v41 }
 0x8c0   : > { %v4014_v19 = vmul.f32 %v4787_v35, %v4013_v0 }
 0x8c2   : > { %v4018_v47 = vsel %vm4017_vm5, %v4787_v35, %v4014_v19 }
 0x8c3   : > { %v4044_v58 = vmul.f32 %v4018_v47, %v6451_v45 }
 0x8c5   : > { %v4053_v10 = vmul.f32 %v6458_v7, %v4044_v58 }
 0x8c7   : > { %v4062_v26 = vadd.f32 %v6461_v63, %v4053_v10 }
 0x8c9   : > { %4070 = vst.msk [vmem:[#allocation7 + $0x28] sm:$0xff] %vm567_vm1, %v4062_v26 }
 0x8de   : > { %v3939_v16 = vpop.xlane.xlu1 %3938 }
 0x8df   : > { %v3949_v14 = vmul.f32 %v3939_v16, %v6240_v55 }
 0x8e1   : > { %v3957_v43 = vadd.f32 1e-05, %v3949_v14 }
 0x8e3   : > { %4788 = vrsqrt.f32 %v3957_v43  ;;  %vm4025_vm2 = vweird.f32 %v3957_v43 }
 0x8e6   : > { %v3942_v51 = vpop.xlane.xlu2 %3941 }
 0x8e7   : > { %v3950_v61 = vmul.f32 %v3942_v51, %v6240_v55 }
 0x8e9   : > { %v4789_v38 = vpop.eup %4788  ;;  %v3958_v46 = vadd.f32 1e-05, %v3950_v61 }
 0x8ea   : > { %v4020_v24 = vmul.f32 %v4789_v38, %v3957_v43  ;;  %vm4026_vm6 = vweird.f32 %v4789_v38 }
 0x8eb   : > { %4790 = vrsqrt.f32 %v3958_v46  ;;  %vm4027_vm7 = vmor %vm4025_vm2, %vm4026_vm6  ;;  %vm4035_vm9 = vweird.f32 %v3958_v46 }
 0x8ec   : > { %v4021_v6 = vmul.f32 %v4789_v38, %v4020_v24 }
 0x8ee   : > { %v4022_v45 = vmul.f32 0.5, %v4021_v6 }
 0x8f0   : > { %v4023_v62 = vsub.f32 1.5, %v4022_v45 }
 0x8f1   : > { %v4791_v9 = vpop.eup %4790 }
 0x8f2   : > { %v4024_v5 = vmul.f32 %v4789_v38, %v4023_v62  ;;  %v4030_v48 = vmul.f32 %v4791_v9, %v3958_v46  ;;  %vm4036_vm8 = vweird.f32 %v4791_v9 }
 0x8f3   : > { %vm4037_vm10 = vmor %vm4035_vm9, %vm4036_vm8 }
 0x8f4   : > { %v4028_v11 = vsel %vm4027_vm7, %v4789_v38, %v4024_v5  ;;  %v4031_v22 = vmul.f32 %v4791_v9, %v4030_v48 }
 0x8f5   : > { %v4045_v57 = vmul.f32 %v4028_v11, %v6467_v37 }
 0x8f6   : > { %v4032_v32 = vmul.f32 0.5, %v4031_v22 }
 0x8f7   : > { %v4054_v55 = vmul.f32 %v6458_v7, %v4045_v57 }
 0x8f8   : > { %v4033_v53 = vsub.f32 1.5, %v4032_v32 }
 0x8f9   : > { %v4063_v20 = vadd.f32 %v6461_v63, %v4054_v55 }
 0x8fa   : > { %v4034_v52 = vmul.f32 %v4791_v9, %v4033_v53 }
 0x8fb   : > { %4071 = vst.msk [vmem:[#allocation7 + $0x30] sm:$0xff] %vm567_vm1, %v4063_v20 }
 0x8fc   : > { %v4038_v59 = vsel %vm4037_vm10, %v4791_v9, %v4034_v52 }
 0x8fd   : > { %v4046_v1 = vmul.f32 %v4038_v59, %v6474_v28 }
 0x8ff   : > { %v4055_v37 = vmul.f32 %v6458_v7, %v4046_v1 }
 0x901   : > { %v4064_v60 = vadd.f32 %v6461_v63, %v4055_v37 }
 0x903   : > { %4072 = vst.msk [vmem:[#allocation7 + $0x38] sm:$0xff] %vm567_vm1, %v4064_v60 }
 0x904   : > { %4419 = dma.vmem_to_hbm [thread:$0]  (%p4430_p1), %s4082_s15, 1024, %s4084_s22, [#allocation4], %s4961_s14, %s4961_s14, %s4956_s13  }
 0x905   : > { %4922 = dma.done.wait (%p4430_p1), [#allocation4], 1024  }
 0x906   : > { %4924 = vsyncadd (%p4430_p1), [#allocation4], 4294966272 }
 0x907 PF: > { %s25_s10 = sadd.s32 1, %s4947_s10   ;;  %s6584_s19 = sld [smem:[#allocation11_spill]] }
 0x908   : > { %p22_p2 = scmp.ge.s32.totalorder %s25_s10, 4   ;;  %s6585_s29 = sld [smem:[#allocation14_spill]] }
 0x909   : > { %s6586_s30 = sld [smem:[#allocation12_spill]]  ;;  %s6588_s27 = smov %s4931_s28 }
 0x90a   : > { %s6587_s9 = sld [smem:[#allocation13_spill]]  ;;  %24 = sbr.rel (!%p22_p2) target bundleno = 9 (0x9), region = 129 }
 0x90d   : > { %s6589_s28 = smov %s6584_s19 }
 0x90f   :  { %4100 = vsyncpa [#allocation3], 1 }
 0x910   :  { %4102 = vsyncpa [#allocation3 + $0x1], 1 }
 0x911   :  { %4103 = vsyncpa [#allocation6], 1 }
 0x912   :  { %4105 = vsyncpa [#allocation6 + $0x1], 1 }
 0x913   :  { %4106 = vsyncpa [#allocation4], 1 }
 0x914   :  { %4108 = vsyncpa [#allocation4 + $0x1], 1 }

</bundles_post_ra>
